<compile_context>
chip_gen: v6e
topology: v6e:2x2x1
jax: 0.10.0
libtpu: 0.0.40
codegen_flags: <defaults>
</compile_context>

<pallas_src>
import functools

import jax
import jax.numpy as jnp
from jax.experimental import pallas as pl
from jax.experimental.pallas import tpu as pltpu

NORM_TEMPERATURE = 50.0   # ZeroShotClassifier default norm_temperature
DIST_SCALE = 1.0          # ZeroShotClassifier2.dist_scale
EPS = 1e-12               # F.normalize eps
LANE = 128                # TPU lane width
COL_ALIGN = 256           # MXU column width on v6e/v7x


# ------------------------------ helpers ------------------------------------ #
def _round_up(n, m):
    return ((n + m - 1) // m) * m


def _pad_to(a, shape):
    pads = [(0, t - s) for s, t in zip(a.shape, shape)]
    if all(p == (0, 0) for p in pads):
        return a
    return jnp.pad(a, pads)


def _pick_tile_n(n):
    # Largest MXU-sized row tile that still yields >= 2 grid steps, so the
    # ("parallel",) grid axis can feed both v7x TensorCores.
    for t in (512, 256, 128):
        if _round_up(n, t) // t >= 2:
            return t
    return 128


def _default_vmem_limit():
    # Generation-split VMEM budget: 96 MiB on 128-MiB parts (v5e/v6e); a
    # conservative 32 MiB on v7x (64 MiB physical) or unknown hardware.
    cap = None
    try:
        cap = getattr(pltpu.get_tpu_info(), "vmem_capacity_bytes", None)
    except Exception:
        cap = None
    if cap is not None and cap >= 128 * 1024 * 1024:
        return 96 * 1024 * 1024
    return 32 * 1024 * 1024


# ----------------------------- Pallas kernel ------------------------------ #
def _detic_cls_head_kernel(dz_p, x_ref, wf_ref, bf_ref, zsw_ref, cb_ref,
                           wb2_ref, bb2_ref, scores_ref, deltas_ref, feat_ref):
    # x_ref: (TN, Din_p) bf16 tile of pooled box features for this grid step.
    x = x_ref[...]

    # Fused projection: x streamed through the MXU once against [W_lin | Wb1]
    # (bf16 operands, f32 accumulation), then split with static aligned slices.
    xh = jnp.dot(x, wf_ref[...], preferred_element_type=jnp.float32) + bf_ref[...]
    xo = xh[:, :dz_p]          # encode_features linear output
    h = xh[:, dz_p:]           # bbox-MLP hidden pre-activation

    # F.normalize(dim=1): rsqrt(max(sumsq, eps^2)) == 1 / max(||xo||, eps)
    # (exact equivalence); rsqrt runs on the EUP slot.
    sumsq = jnp.sum(xo * xo, axis=-1, keepdims=True)
    inv = jax.lax.rsqrt(jnp.maximum(sumsq, EPS * EPS))
    xn = (xo * inv).astype(feat_ref.dtype)      # bf16 clip features
    feat_ref[...] = xn

    # Zero-shot cosine-similarity logits: bf16 operands, f32 accumulation.
    # Temperature (and dist_scale) applied AFTER the f32 accumulation so no
    # scaled values round through bf16.
    scores_ref[...] = ((NORM_TEMPERATURE * DIST_SCALE)
                       * jnp.dot(xn, zsw_ref[...],
                                 preferred_element_type=jnp.float32)
                       + cb_ref[...])

    # class-agnostic bbox_pred tail: ReLU -> Linear. The 4 output columns are
    # zero-padded to 128 lanes so the (bf16) store is unmasked and lane-dense.
    hr = jnp.maximum(h, 0.0).astype(wb2_ref.dtype)
    deltas_ref[...] = (jnp.dot(hr, wb2_ref[...],
                               preferred_element_type=jnp.float32)
                       + bb2_ref[...]).astype(deltas_ref.dtype)


# ------------------------------ JAX wrappers ------------------------------ #
def prepare_classifier(class_embeddings, norm_weight=True):
    """class_embeddings: (C, Dz) float32 -> zs_weight (Dz, C+1), columns L2-normed."""
    zs = class_embeddings.T                                     # (Dz, C)
    bg = jnp.zeros((zs.shape[0], 1), zs.dtype)                  # background emb
    zs = jnp.concatenate([zs, bg], axis=1)                      # (Dz, C+1)
    if norm_weight:
        nrm = jnp.sqrt(jnp.sum(zs * zs, axis=0, keepdims=True))
        zs = zs / jnp.maximum(nrm, EPS)                         # bg col stays 0
    return zs


def prepare_detic_head_params(params, *, col_align=COL_ALIGN):
    """Pad + cast + fuse the head weights ONCE (hoisted out of the call path).

    Zero padding is exact: padded xo / h / score / delta columns are
    identically zero and are sliced away; the row norm is unchanged.
    """
    f32, bf16 = jnp.float32, jnp.bfloat16
    Din, Dz = params["w_lin"].shape
    C1 = params["zs_weight"].shape[1]
    H = params["wb1"].shape[1]

    Din_p = _round_up(Din, LANE)        # K dim: 128-alignment is enough
    Dz_p = _round_up(Dz, col_align)     # matmul column dims -> 256-aligned
    H_p = _round_up(H, col_align)
    C1_p = _round_up(C1, col_align)

    # Cast to bf16 BEFORE padding (halves pad traffic); biases stay f32.
    w_lin = _pad_to(params["w_lin"].astype(bf16), (Din_p, Dz_p))
    wb1 = _pad_to(params["wb1"].astype(bf16), (Din_p, H_p))
    w_fused = jnp.concatenate([w_lin, wb1], axis=1)            # (Din_p, Dz_p+H_p)

    b_lin = _pad_to(params["b_lin"].astype(f32).reshape(1, -1), (1, Dz_p))
    bb1 = _pad_to(params["bb1"].astype(f32).reshape(1, -1), (1, H_p))
    b_fused = jnp.concatenate([b_lin, bb1], axis=1)            # (1, Dz_p+H_p)

    zsw = _pad_to(params["zs_weight"].astype(bf16), (Dz_p, C1_p))
    cbias = _pad_to(params["cls_bias"].astype(f32).reshape(1, -1), (1, C1_p))

    wb2 = _pad_to(params["wb2"].astype(bf16), (H_p, LANE))     # 4 -> 128 lanes
    bb2 = _pad_to(params["bb2"].astype(f32).reshape(1, -1), (1, LANE))

    dims = dict(din=Din, dz=Dz, c1=C1, h=H,
                din_p=Din_p, dz_p=Dz_p, h_p=H_p, c1_p=C1_p)
    return dict(w_fused=w_fused, b_fused=b_fused, zsw=zsw, cbias=cbias,
                wb2=wb2, bb2=bb2, dims=dims)


def _call_head(x_p, prepared, N, Np, tile_n, vmem_limit_bytes, single_buffer):
    d = prepared["dims"]
    din_p, dz_p, h_p, c1_p = d["din_p"], d["dz_p"], d["h_p"], d["c1_p"]
    wide = dz_p + h_p

    def resident(shape):
        # Constant-index weight/bias block: fetched once; request a single
        # buffer to halve its VMEM footprint (matters on v7x's 64 MiB VMEM).
        if single_buffer:
            return pl.BlockSpec(shape, lambda i: (0, 0),
                                pipeline_mode=pl.Buffered(1))
        return pl.BlockSpec(shape, lambda i: (0, 0))

    out_shape = (
        jax.ShapeDtypeStruct((Np, c1_p), jnp.float32),   # scores (lane-dense)
        jax.ShapeDtypeStruct((Np, LANE), jnp.bfloat16),  # deltas padded 4 -> 128
        jax.ShapeDtypeStruct((Np, dz_p), jnp.bfloat16),  # clip features
    )

    scores_p, deltas_p, feat_p = pl.pallas_call(
        functools.partial(_detic_cls_head_kernel, dz_p),
        out_shape=out_shape,
        grid_spec=pltpu.PrefetchScalarGridSpec(
            num_scalar_prefetch=0,
            grid=(Np // tile_n,),
            in_specs=[
                pl.BlockSpec((tile_n, din_p), lambda i: (i, 0)),  # x (tiled over N)
                resident((din_p, wide)),                          # [W_lin | Wb1]
                resident((1, wide)),                              # [b_lin | bb1]
                resident((dz_p, c1_p)),                           # zs_weight
                resident((1, c1_p)),                              # cls_bias
                resident((h_p, LANE)),                            # bbox Wb2 (4 -> 128)
                resident((1, LANE)),                              # bbox bb2 (4 -> 128)
            ],
            out_specs=[
                pl.BlockSpec((tile_n, c1_p), lambda i: (i, 0)),   # scores
                pl.BlockSpec((tile_n, LANE), lambda i: (i, 0)),   # deltas
                pl.BlockSpec((tile_n, dz_p), lambda i: (i, 0)),   # clip features
            ],
        ),
        compiler_params=pltpu.CompilerParams(
            dimension_semantics=("parallel",),
            vmem_limit_bytes=vmem_limit_bytes),
    )(x_p, prepared["w_fused"], prepared["b_fused"], prepared["zsw"],
      prepared["cbias"], prepared["wb2"], prepared["bb2"])

    # Free layout plumbing: strip the zero padding back off. Downstream gets
    # f32; the HBM writeback (what matters for BW) stayed bf16.
    return (scores_p[:N, :d["c1"]],
            deltas_p[:N, :4].astype(jnp.float32),
            feat_p[:N, :d["dz"]].astype(jnp.float32))


def detic_cls_head(x, prepared, *, tile_n=None, vmem_limit_bytes=None,
                   single_buffer_weights=True):
    """Runs the Detic zero-shot classification head.

    x: (N, Din) pooled+flattened box features.
    prepared: output of prepare_detic_head_params (padded / fused constants).
    Returns (scores (N, C+1), proposal_deltas (N, 4), clip_features (N, Dz)).
    """
    N = x.shape[0]
    tile_n = tile_n or _pick_tile_n(N)
    vmem_limit_bytes = vmem_limit_bytes or _default_vmem_limit()

    Np = _round_up(N, tile_n)
    # Cast to bf16 BEFORE padding (no redundant f32 padded copy in HBM).
    x_p = _pad_to(x.astype(jnp.bfloat16), (Np, prepared["dims"]["din_p"]))

    if single_buffer_weights:
        try:
            return _call_head(x_p, prepared, N, Np, tile_n, vmem_limit_bytes, True)
        except Exception:
            # pl.Buffered(1) unsupported on this JAX build -> default buffering.
            pass
    return _call_head(x_p, prepared, N, Np, tile_n, vmem_limit_bytes, False)


def reference_cls_head(x, params):
    xo = x @ params["w_lin"] + params["b_lin"]
    xn = xo / jnp.maximum(jnp.sqrt(jnp.sum(xo * xo, -1, keepdims=True)), EPS)
    y = (NORM_TEMPERATURE * xn) @ params["zs_weight"] * DIST_SCALE + params["cls_bias"]
    h = jnp.maximum(x @ params["wb1"] + params["bb1"], 0.0)
    d = h @ params["wb2"] + params["bb2"]
    return y, d, xn


# --------------------------------- main ----------------------------------- #
if __name__ == "__main__":
    key = jax.random.PRNGKey(0)
    k_x, k_emb, k_w, k_b, k_w1, k_b1, k_w2, k_b2 = jax.random.split(key, 8)

    # proposals, box-feat dim, zs dim, classes -- intentionally not multiples
    # of 128/256 so the padding / lane-dense plumbing is exercised.
    N, DIN, DZ, C = 200, 192, 96, 60

    # "box features" (what box_pooler + box_head would have produced)
    x = jax.random.normal(k_x, (N, DIN), jnp.float32)

    # synthetic CLIP class embeddings (what the text encoder / .npy gives)
    class_emb = jax.random.normal(k_emb, (C, DZ), jnp.float32)
    zs_weight = prepare_classifier(class_emb, norm_weight=True)   # (DZ, C+1)

    params = {
        "w_lin": jax.random.normal(k_w, (DIN, DZ), jnp.float32) * 0.05,
        "b_lin": jax.random.normal(k_b, (1, DZ), jnp.float32) * 0.01,
        "zs_weight": zs_weight,
        "cls_bias": jnp.full((1, C + 1), -0.5, jnp.float32),
        "wb1": jax.random.normal(k_w1, (DIN, DIN), jnp.float32) * 0.05,
        "bb1": jax.random.normal(k_b1, (1, DIN), jnp.float32) * 0.01,
        "wb2": jax.random.normal(k_w2, (DIN, 4), jnp.float32) * 0.05,
        "bb2": jax.random.normal(k_b2, (1, 4), jnp.float32) * 0.01,
    }

    # Hoisted: pad/cast/fuse the weights once, reuse across calls.
    prepared = prepare_detic_head_params(params)

    scores, deltas, feats = jax.block_until_ready(detic_cls_head(x, prepared))

    ref_scores, ref_deltas, ref_feats = reference_cls_head(x, params)
    assert scores.shape == (N, C + 1) and deltas.shape == (N, 4) and feats.shape == (N, DZ)
    # bf16-operand / f32-accumulate (and bf16 feat/delta writeback) tolerances
    # vs. the pure-f32 reference.
    assert jnp.allclose(scores, ref_scores, rtol=3e-2, atol=3e-1)
    assert jnp.allclose(deltas, ref_deltas, rtol=3e-2, atol=5e-2)
    assert jnp.allclose(feats, ref_feats, rtol=3e-2, atol=2e-2)

    print("KERNEL_OK")
</pallas_src>

<mosaic_0001>
module attributes {stable_mosaic.version = 11 : i64} {
  func.func @_detic_cls_head_kernel(%arg0: i32, %arg1: memref<128x256xbf16, #tpu.memory_space<vmem>>, %arg2: memref<256x512xbf16, #tpu.memory_space<vmem>>, %arg3: memref<1x512xf32, #tpu.memory_space<vmem>>, %arg4: memref<256x256xbf16, #tpu.memory_space<vmem>>, %arg5: memref<1x256xf32, #tpu.memory_space<vmem>>, %arg6: memref<256x128xbf16, #tpu.memory_space<vmem>>, %arg7: memref<1x128xf32, #tpu.memory_space<vmem>>, %arg8: memref<128x256xf32, #tpu.memory_space<vmem>>, %arg9: memref<128x128xbf16, #tpu.memory_space<vmem>>, %arg10: memref<128x256xbf16, #tpu.memory_space<vmem>>) attributes {dimension_semantics = [#tpu.dimension_semantics<parallel>], iteration_bounds = array<i64: 2>, scalar_prefetch = 0 : i64, scratch_operands = 0 : i64, tpu.core_type = #tpu.core_type<tc>, window_params = [{transform_indices = @transform_0, window_bounds = array<i64: 128, 256>}, {pipeline_mode = #tpu.pipeline_mode<synchronous>, transform_indices = @transform_1, window_bounds = array<i64: 256, 512>}, {pipeline_mode = #tpu.pipeline_mode<synchronous>, transform_indices = @transform_2, window_bounds = array<i64: 1, 512>}, {pipeline_mode = #tpu.pipeline_mode<synchronous>, transform_indices = @transform_3, window_bounds = array<i64: 256, 256>}, {pipeline_mode = #tpu.pipeline_mode<synchronous>, transform_indices = @transform_4, window_bounds = array<i64: 1, 256>}, {pipeline_mode = #tpu.pipeline_mode<synchronous>, transform_indices = @transform_5, window_bounds = array<i64: 256, 128>}, {pipeline_mode = #tpu.pipeline_mode<synchronous>, transform_indices = @transform_6, window_bounds = array<i64: 1, 128>}, {transform_indices = @transform_7, window_bounds = array<i64: 128, 256>}, {transform_indices = @transform_8, window_bounds = array<i64: 128, 128>}, {transform_indices = @transform_9, window_bounds = array<i64: 128, 256>}]} {
    %c0 = arith.constant 0 : index
    %c0_0 = arith.constant 0 : index
    %0 = vector.load %arg1[%c0, %c0_0] : memref<128x256xbf16, #tpu.memory_space<vmem>>, vector<128x256xbf16>
    %c0_1 = arith.constant 0 : index
    %c0_2 = arith.constant 0 : index
    %1 = vector.load %arg2[%c0_1, %c0_2] : memref<256x512xbf16, #tpu.memory_space<vmem>>, vector<256x512xbf16>
    %cst = arith.constant dense<0.000000e+00> : vector<128x512xf32>
    %2 = tpu.matmul %0, %1, %cst {dimension_numbers = #tpu.dot_dimension_numbers<[1], [0], [0], [1], [0, 0, 1, 1], [], []>} : vector<128x256xbf16>, vector<256x512xbf16>, vector<128x512xf32> -> vector<128x512xf32>
    %c0_3 = arith.constant 0 : index
    %c0_4 = arith.constant 0 : index
    %3 = vector.load %arg3[%c0_3, %c0_4] : memref<1x512xf32, #tpu.memory_space<vmem>>, vector<1x512xf32>
    %4 = vector.broadcast %3 : vector<1x512xf32> to vector<128x512xf32>
    %5 = arith.addf %2, %4 : vector<128x512xf32>
    %6 = vector.extract_strided_slice %5 {offsets = [0, 0], sizes = [128, 256], strides = [1, 1]} : vector<128x512xf32> to vector<128x256xf32>
    %7 = vector.extract_strided_slice %5 {offsets = [0, 256], sizes = [128, 256], strides = [1, 1]} : vector<128x512xf32> to vector<128x256xf32>
    %8 = arith.mulf %6, %6 : vector<128x256xf32>
    %cst_5 = arith.constant dense<0.000000e+00> : vector<128xf32>
    %9 = vector.multi_reduction <add>, %8, %cst_5 [1] : vector<128x256xf32> to vector<128xf32>
    %10 = vector.shape_cast %9 : vector<128xf32> to vector<128x1xf32>
    %cst_6 = arith.constant 1.000000e-24 : f32
    %11 = vector.broadcast %cst_6 : f32 to vector<128x1xf32>
    %12 = arith.maximumf %10, %11 : vector<128x1xf32>
    %13 = math.rsqrt %12 : vector<128x1xf32>
    %14 = vector.broadcast %13 : vector<128x1xf32> to vector<128x256xf32>
    %15 = arith.mulf %6, %14 : vector<128x256xf32>
    %16 = arith.truncf %15 : vector<128x256xf32> to vector<128x256xbf16>
    %c0_7 = arith.constant 0 : index
    %c0_8 = arith.constant 0 : index
    %17 = vector.load %arg10[%c0_7, %c0_8] : memref<128x256xbf16, #tpu.memory_space<vmem>>, vector<128x256xbf16>
    tpu.vector_store %arg10[%c0_7, %c0_8], %16 {strides = array<i32>} : memref<128x256xbf16, #tpu.memory_space<vmem>>, vector<128x256xbf16>,
    %c0_9 = arith.constant 0 : index
    %c0_10 = arith.constant 0 : index
    %18 = vector.load %arg4[%c0_9, %c0_10] : memref<256x256xbf16, #tpu.memory_space<vmem>>, vector<256x256xbf16>
    %cst_11 = arith.constant dense<0.000000e+00> : vector<128x256xf32>
    %19 = tpu.matmul %16, %18, %cst_11 {dimension_numbers = #tpu.dot_dimension_numbers<[1], [0], [0], [1], [0, 0, 1, 1], [], []>} : vector<128x256xbf16>, vector<256x256xbf16>, vector<128x256xf32> -> vector<128x256xf32>
    %cst_12 = arith.constant 5.000000e+01 : f32
    %20 = vector.broadcast %cst_12 : f32 to vector<128x256xf32>
    %21 = arith.mulf %20, %19 : vector<128x256xf32>
    %c0_13 = arith.constant 0 : index
    %c0_14 = arith.constant 0 : index
    %22 = vector.load %arg5[%c0_13, %c0_14] : memref<1x256xf32, #tpu.memory_space<vmem>>, vector<1x256xf32>
    %23 = vector.broadcast %22 : vector<1x256xf32> to vector<128x256xf32>
    %24 = arith.addf %21, %23 : vector<128x256xf32>
    %c0_15 = arith.constant 0 : index
    %c0_16 = arith.constant 0 : index
    %25 = vector.load %arg8[%c0_15, %c0_16] : memref<128x256xf32, #tpu.memory_space<vmem>>, vector<128x256xf32>
    tpu.vector_store %arg8[%c0_15, %c0_16], %24 {strides = array<i32>} : memref<128x256xf32, #tpu.memory_space<vmem>>, vector<128x256xf32>,
    %cst_17 = arith.constant 0.000000e+00 : f32
    %26 = vector.broadcast %cst_17 : f32 to vector<128x256xf32>
    %27 = arith.maximumf %7, %26 : vector<128x256xf32>
    %28 = arith.truncf %27 : vector<128x256xf32> to vector<128x256xbf16>
    %c0_18 = arith.constant 0 : index
    %c0_19 = arith.constant 0 : index
    %29 = vector.load %arg6[%c0_18, %c0_19] : memref<256x128xbf16, #tpu.memory_space<vmem>>, vector<256x128xbf16>
    %cst_20 = arith.constant dense<0.000000e+00> : vector<128x128xf32>
    %30 = tpu.matmul %28, %29, %cst_20 {dimension_numbers = #tpu.dot_dimension_numbers<[1], [0], [0], [1], [0, 0, 1, 1], [], []>} : vector<128x256xbf16>, vector<256x128xbf16>, vector<128x128xf32> -> vector<128x128xf32>
    %c0_21 = arith.constant 0 : index
    %c0_22 = arith.constant 0 : index
    %31 = vector.load %arg7[%c0_21, %c0_22] : memref<1x128xf32, #tpu.memory_space<vmem>>, vector<1x128xf32>
    %32 = vector.broadcast %31 : vector<1x128xf32> to vector<128x128xf32>
    %33 = arith.addf %30, %32 : vector<128x128xf32>
    %34 = arith.truncf %33 : vector<128x128xf32> to vector<128x128xbf16>
    %c0_23 = arith.constant 0 : index
    %c0_24 = arith.constant 0 : index
    %35 = vector.load %arg9[%c0_23, %c0_24] : memref<128x128xbf16, #tpu.memory_space<vmem>>, vector<128x128xbf16>
    tpu.vector_store %arg9[%c0_23, %c0_24], %34 {strides = array<i32>} : memref<128x128xbf16, #tpu.memory_space<vmem>>, vector<128x128xbf16>,
    return
  }
  func.func @transform_0(%arg0: i32) -> (i32, i32) {
    %c0_i32 = arith.constant 0 : i32
    %c0_i32_0 = arith.constant 0 : i32
    return %arg0, %c0_i32 : i32, i32
  }
  func.func @transform_1(%arg0: i32) -> (i32, i32) {
    %c0_i32 = arith.constant 0 : i32
    %c0_i32_0 = arith.constant 0 : i32
    %c0_i32_1 = arith.constant 0 : i32
    return %c0_i32, %c0_i32_0 : i32, i32
  }
  func.func @transform_2(%arg0: i32) -> (i32, i32) {
    %c0_i32 = arith.constant 0 : i32
    %c0_i32_0 = arith.constant 0 : i32
    %c0_i32_1 = arith.constant 0 : i32
    return %c0_i32, %c0_i32_0 : i32, i32
  }
  func.func @transform_3(%arg0: i32) -> (i32, i32) {
    %c0_i32 = arith.constant 0 : i32
    %c0_i32_0 = arith.constant 0 : i32
    %c0_i32_1 = arith.constant 0 : i32
    return %c0_i32, %c0_i32_0 : i32, i32
  }
  func.func @transform_4(%arg0: i32) -> (i32, i32) {
    %c0_i32 = arith.constant 0 : i32
    %c0_i32_0 = arith.constant 0 : i32
    %c0_i32_1 = arith.constant 0 : i32
    return %c0_i32, %c0_i32_0 : i32, i32
  }
  func.func @transform_5(%arg0: i32) -> (i32, i32) {
    %c0_i32 = arith.constant 0 : i32
    %c0_i32_0 = arith.constant 0 : i32
    %c0_i32_1 = arith.constant 0 : i32
    return %c0_i32, %c0_i32_0 : i32, i32
  }
  func.func @transform_6(%arg0: i32) -> (i32, i32) {
    %c0_i32 = arith.constant 0 : i32
    %c0_i32_0 = arith.constant 0 : i32
    %c0_i32_1 = arith.constant 0 : i32
    return %c0_i32, %c0_i32_0 : i32, i32
  }
  func.func @transform_7(%arg0: i32) -> (i32, i32) {
    %c0_i32 = arith.constant 0 : i32
    %c0_i32_0 = arith.constant 0 : i32
    return %arg0, %c0_i32 : i32, i32
  }
  func.func @transform_8(%arg0: i32) -> (i32, i32) {
    %c0_i32 = arith.constant 0 : i32
    %c0_i32_0 = arith.constant 0 : i32
    return %arg0, %c0_i32 : i32, i32
  }
  func.func @transform_9(%arg0: i32) -> (i32, i32) {
    %c0_i32 = arith.constant 0 : i32
    %c0_i32_0 = arith.constant 0 : i32
    return %arg0, %c0_i32 : i32, i32
  }
}

module attributes {stable_mosaic.version = 11 : i64} {
  func.func @_detic_cls_head_kernel(%arg0: i32, %arg1: memref<128x256xbf16, #tpu.memory_space<vmem>>, %arg2: memref<256x512xbf16, #tpu.memory_space<vmem>>, %arg3: memref<1x512xf32, #tpu.memory_space<vmem>>, %arg4: memref<256x256xbf16, #tpu.memory_space<vmem>>, %arg5: memref<1x256xf32, #tpu.memory_space<vmem>>, %arg6: memref<256x128xbf16, #tpu.memory_space<vmem>>, %arg7: memref<1x128xf32, #tpu.memory_space<vmem>>, %arg8: memref<128x256xf32, #tpu.memory_space<vmem>>, %arg9: memref<128x128xbf16, #tpu.memory_space<vmem>>, %arg10: memref<128x256xbf16, #tpu.memory_space<vmem>>) attributes {dimension_semantics = [#tpu.dimension_semantics<parallel>], iteration_bounds = array<i64: 2>, scalar_prefetch = 0 : i64, scratch_operands = 0 : i64, tpu.core_type = #tpu.core_type<tc>, window_params = [{transform_indices = @transform_0, window_bounds = array<i64: 128, 256>}, {pipeline_mode = #tpu.pipeline_mode<synchronous>, transform_indices = @transform_1, window_bounds = array<i64: 256, 512>}, {pipeline_mode = #tpu.pipeline_mode<synchronous>, transform_indices = @transform_2, window_bounds = array<i64: 1, 512>}, {pipeline_mode = #tpu.pipeline_mode<synchronous>, transform_indices = @transform_3, window_bounds = array<i64: 256, 256>}, {pipeline_mode = #tpu.pipeline_mode<synchronous>, transform_indices = @transform_4, window_bounds = array<i64: 1, 256>}, {pipeline_mode = #tpu.pipeline_mode<synchronous>, transform_indices = @transform_5, window_bounds = array<i64: 256, 128>}, {pipeline_mode = #tpu.pipeline_mode<synchronous>, transform_indices = @transform_6, window_bounds = array<i64: 1, 128>}, {transform_indices = @transform_7, window_bounds = array<i64: 128, 256>}, {transform_indices = @transform_8, window_bounds = array<i64: 128, 128>}, {transform_indices = @transform_9, window_bounds = array<i64: 128, 256>}]} {
    %c0 = arith.constant 0 : index
    %c0_0 = arith.constant 0 : index
    %0 = vector.load %arg1[%c0, %c0_0] : memref<128x256xbf16, #tpu.memory_space<vmem>>, vector<128x256xbf16>
    %c0_1 = arith.constant 0 : index
    %c0_2 = arith.constant 0 : index
    %1 = vector.load %arg2[%c0_1, %c0_2] : memref<256x512xbf16, #tpu.memory_space<vmem>>, vector<256x512xbf16>
    %cst = arith.constant dense<0.000000e+00> : vector<128x512xf32>
    %2 = tpu.matmul %0, %1, %cst {dimension_numbers = #tpu.dot_dimension_numbers<[1], [0], [0], [1], [0, 0, 1, 1], [], []>} : vector<128x256xbf16>, vector<256x512xbf16>, vector<128x512xf32> -> vector<128x512xf32>
    %c0_3 = arith.constant 0 : index
    %c0_4 = arith.constant 0 : index
    %3 = vector.load %arg3[%c0_3, %c0_4] : memref<1x512xf32, #tpu.memory_space<vmem>>, vector<1x512xf32>
    %4 = vector.broadcast %3 : vector<1x512xf32> to vector<128x512xf32>
    %5 = arith.addf %2, %4 : vector<128x512xf32>
    %6 = vector.extract_strided_slice %5 {offsets = [0, 0], sizes = [128, 256], strides = [1, 1]} : vector<128x512xf32> to vector<128x256xf32>
    %7 = vector.extract_strided_slice %5 {offsets = [0, 256], sizes = [128, 256], strides = [1, 1]} : vector<128x512xf32> to vector<128x256xf32>
    %8 = arith.mulf %6, %6 : vector<128x256xf32>
    %cst_5 = arith.constant dense<0.000000e+00> : vector<128xf32>
    %9 = vector.multi_reduction <add>, %8, %cst_5 [1] : vector<128x256xf32> to vector<128xf32>
    %10 = vector.shape_cast %9 : vector<128xf32> to vector<128x1xf32>
    %cst_6 = arith.constant 1.000000e-24 : f32
    %11 = vector.broadcast %cst_6 : f32 to vector<128x1xf32>
    %12 = arith.maximumf %10, %11 : vector<128x1xf32>
    %13 = math.rsqrt %12 : vector<128x1xf32>
    %14 = vector.broadcast %13 : vector<128x1xf32> to vector<128x256xf32>
    %15 = arith.mulf %6, %14 : vector<128x256xf32>
    %16 = arith.truncf %15 : vector<128x256xf32> to vector<128x256xbf16>
    %c0_7 = arith.constant 0 : index
    %c0_8 = arith.constant 0 : index
    %17 = vector.load %arg10[%c0_7, %c0_8] : memref<128x256xbf16, #tpu.memory_space<vmem>>, vector<128x256xbf16>
    tpu.vector_store %arg10[%c0_7, %c0_8], %16 {strides = array<i32>} : memref<128x256xbf16, #tpu.memory_space<vmem>>, vector<128x256xbf16>,
    %c0_9 = arith.constant 0 : index
    %c0_10 = arith.constant 0 : index
    %18 = vector.load %arg4[%c0_9, %c0_10] : memref<256x256xbf16, #tpu.memory_space<vmem>>, vector<256x256xbf16>
    %cst_11 = arith.constant dense<0.000000e+00> : vector<128x256xf32>
    %19 = tpu.matmul %16, %18, %cst_11 {dimension_numbers = #tpu.dot_dimension_numbers<[1], [0], [0], [1], [0, 0, 1, 1], [], []>} : vector<128x256xbf16>, vector<256x256xbf16>, vector<128x256xf32> -> vector<128x256xf32>
    %cst_12 = arith.constant 5.000000e+01 : f32
    %20 = vector.broadcast %cst_12 : f32 to vector<128x256xf32>
    %21 = arith.mulf %20, %19 : vector<128x256xf32>
    %c0_13 = arith.constant 0 : index
    %c0_14 = arith.constant 0 : index
    %22 = vector.load %arg5[%c0_13, %c0_14] : memref<1x256xf32, #tpu.memory_space<vmem>>, vector<1x256xf32>
    %23 = vector.broadcast %22 : vector<1x256xf32> to vector<128x256xf32>
    %24 = arith.addf %21, %23 : vector<128x256xf32>
    %c0_15 = arith.constant 0 : index
    %c0_16 = arith.constant 0 : index
    %25 = vector.load %arg8[%c0_15, %c0_16] : memref<128x256xf32, #tpu.memory_space<vmem>>, vector<128x256xf32>
    tpu.vector_store %arg8[%c0_15, %c0_16], %24 {strides = array<i32>} : memref<128x256xf32, #tpu.memory_space<vmem>>, vector<128x256xf32>,
    %cst_17 = arith.constant 0.000000e+00 : f32
    %26 = vector.broadcast %cst_17 : f32 to vector<128x256xf32>
    %27 = arith.maximumf %7, %26 : vector<128x256xf32>
    %28 = arith.truncf %27 : vector<128x256xf32> to vector<128x256xbf16>
    %c0_18 = arith.constant 0 : index
    %c0_19 = arith.constant 0 : index
    %29 = vector.load %arg6[%c0_18, %c0_19] : memref<256x128xbf16, #tpu.memory_space<vmem>>, vector<256x128xbf16>
    %cst_20 = arith.constant dense<0.000000e+00> : vector<128x128xf32>
    %30 = tpu.matmul %28, %29, %cst_20 {dimension_numbers = #tpu.dot_dimension_numbers<[1], [0], [0], [1], [0, 0, 1, 1], [], []>} : vector<128x256xbf16>, vector<256x128xbf16>, vector<128x128xf32> -> vector<128x128xf32>
    %c0_21 = arith.constant 0 : index
    %c0_22 = arith.constant 0 : index
    %31 = vector.load %arg7[%c0_21, %c0_22] : memref<1x128xf32, #tpu.memory_space<vmem>>, vector<1x128xf32>
    %32 = vector.broadcast %31 : vector<1x128xf32> to vector<128x128xf32>
    %33 = arith.addf %30, %32 : vector<128x128xf32>
    %34 = arith.truncf %33 : vector<128x128xf32> to vector<128x128xbf16>
    %c0_23 = arith.constant 0 : index
    %c0_24 = arith.constant 0 : index
    %35 = vector.load %arg9[%c0_23, %c0_24] : memref<128x128xbf16, #tpu.memory_space<vmem>>, vector<128x128xbf16>
    tpu.vector_store %arg9[%c0_23, %c0_24], %34 {strides = array<i32>} : memref<128x128xbf16, #tpu.memory_space<vmem>>, vector<128x128xbf16>,
    return
  }
  func.func @transform_0(%arg0: i32) -> (i32, i32) {
    %c0_i32 = arith.constant 0 : i32
    %c0_i32_0 = arith.constant 0 : i32
    return %arg0, %c0_i32 : i32, i32
  }
  func.func @transform_1(%arg0: i32) -> (i32, i32) {
    %c0_i32 = arith.constant 0 : i32
    %c0_i32_0 = arith.constant 0 : i32
    %c0_i32_1 = arith.constant 0 : i32
    return %c0_i32, %c0_i32_0 : i32, i32
  }
  func.func @transform_2(%arg0: i32) -> (i32, i32) {
    %c0_i32 = arith.constant 0 : i32
    %c0_i32_0 = arith.constant 0 : i32
    %c0_i32_1 = arith.constant 0 : i32
    return %c0_i32, %c0_i32_0 : i32, i32
  }
  func.func @transform_3(%arg0: i32) -> (i32, i32) {
    %c0_i32 = arith.constant 0 : i32
    %c0_i32_0 = arith.constant 0 : i32
    %c0_i32_1 = arith.constant 0 : i32
    return %c0_i32, %c0_i32_0 : i32, i32
  }
  func.func @transform_4(%arg0: i32) -> (i32, i32) {
    %c0_i32 = arith.constant 0 : i32
    %c0_i32_0 = arith.constant 0 : i32
    %c0_i32_1 = arith.constant 0 : i32
    return %c0_i32, %c0_i32_0 : i32, i32
  }
  func.func @transform_5(%arg0: i32) -> (i32, i32) {
    %c0_i32 = arith.constant 0 : i32
    %c0_i32_0 = arith.constant 0 : i32
    %c0_i32_1 = arith.constant 0 : i32
    return %c0_i32, %c0_i32_0 : i32, i32
  }
  func.func @transform_6(%arg0: i32) -> (i32, i32) {
    %c0_i32 = arith.constant 0 : i32
    %c0_i32_0 = arith.constant 0 : i32
    %c0_i32_1 = arith.constant 0 : i32
    return %c0_i32, %c0_i32_0 : i32, i32
  }
  func.func @transform_7(%arg0: i32) -> (i32, i32) {
    %c0_i32 = arith.constant 0 : i32
    %c0_i32_0 = arith.constant 0 : i32
    return %arg0, %c0_i32 : i32, i32
  }
  func.func @transform_8(%arg0: i32) -> (i32, i32) {
    %c0_i32 = arith.constant 0 : i32
    %c0_i32_0 = arith.constant 0 : i32
    return %arg0, %c0_i32 : i32, i32
  }
  func.func @transform_9(%arg0: i32) -> (i32, i32) {
    %c0_i32 = arith.constant 0 : i32
    %c0_i32_0 = arith.constant 0 : i32
    return %arg0, %c0_i32 : i32, i32
  }
}

</mosaic_0001>

<bundles_post_ra>
// kernel: tpu_custom_call.1
= control target key start
LH: loop header
LB: loop body
LE: loop exit
PB: predicated region body
PF: predicated region fallthrough
CT: control target
= control target key end

     0   :  { %s4101_s0 = inlined_call_operand.hbm [shape: bf16[256,256], index: 0, kind: input, shape index: {}]   ;;  %s4102_s1 = inlined_call_operand.hbm [shape: bf16[256,512], index: 1, kind: input, shape index: {}]   ;;  %s4103_s2 = inlined_call_operand.hbm [shape: f32[1,512], index: 2, kind: input, shape index: {}]   ;;  %s4104_s3 = inlined_call_operand.hbm [shape: bf16[256,256], index: 3, kind: input, shape index: {}]   ;;  %s4105_s4 = inlined_call_operand.vmem [shape: f32[1,256], index: 4, kind: input, shape index: {}]   ;;  %s4106_s5 = inlined_call_operand.hbm [shape: bf16[256,128], index: 5, kind: input, shape index: {}]   ;;  %s4107_s6 = inlined_call_operand.vmem [shape: f32[1,128], index: 6, kind: input, shape index: {}]   ;;  %s4108_s7 = inlined_call_operand.hbm [shape: f32[256,256], index: 7, kind: output, shape index: {0}]   ;;  %s4109_s8 = inlined_call_operand.hbm [shape: bf16[256,128], index: 8, kind: output, shape index: {1}]   ;;  %s4110_s9 = inlined_call_operand.hbm [shape: bf16[256,256], index: 9, kind: output, shape index: {2}]  }
   0x1   :  { %4118 = sst [smem:[#allocation20_spill]] %s4102_s1 }
   0x2   :  { %4119 = sst [smem:[#allocation21_spill]] %s4103_s2 }
   0x3   :  { %4120 = sst [smem:[#allocation22_spill]] %s4104_s3 }
   0x4   :  { %15 = vsyncpa [#allocation3], 0 }
   0x5   :  { %17 = vsyncpa [#allocation3 + $0x1], 0 }
   0x6   :  { %18 = vsyncpa [#allocation6], 0 }
   0x7   :  { %19 = vsyncpa [#allocation9], 0 }
   0x8   :  { %20 = vsyncpa [#allocation4], 0 }
   0x9   :  { %22 = vsyncpa [#allocation4 + $0x1], 0 }
   0xa   :  { %23 = vsyncpa [#allocation13], 0 }
   0xb   :  { %25 = vsyncpa [#allocation13 + $0x1], 0  ;;  %s3419_s30 = smov 0   ;;  %s3421_s10 = smov 0  }
   0xc   :  { %s3423_s11 = smov 0   ;;  %s3425_s12 = smov 0  }
   0xd LB: > { %s3440_s13 = sadd.s32 4294967295, %s3347_s12   ;;  %s4114_s14 = sadd.s32 4294967294, %s3347_s12   ;;  %s3347_s12 = sphi %s3425_s12, %s4146_s12   ;;  %s3343_s11 = sphi %s3423_s11, %s4145_s11   ;;  %s3339_s10 = sphi %s3421_s10, %s4144_s10   ;;  %s3335_s30 = sphi %s3419_s30, %s4143_s30  }
   0xe   : > { %p51_p0 = scmp.ne.s32.totalorder %s3339_s10, %s3335_s30  ;;  %p4111_p1 = scmp.eq.s32.totalorder %s3440_s13, 0 }
   0xf   : > { %p207_p3 = scmp.eq.s32.totalorder %s4114_s14, 1  ;;  %p2419_p5 = scmp.ge.s32.totalorder %s3347_s12, 1 }
  0x10   : > { %p3451_p4 = por %p4111_p1, %p51_p0  ;;  %p266_p7 = scmp.lt.s32.totalorder %s3347_s12, 3 }
  0x11   : > { %p3456_p6 = por %p207_p3, %p51_p0  ;;  %s3349_s18 = smov [#allocation5]  }
  0x12   : > { %s4121_s15 = scalar_select %p3451_p4, 1, 0 }
  0x13   : > { %s4122_s16 = scalar_select %p3456_p6, 1, 0 }
  0x14   : > { %p3461_p8 = pnand %p2419_p5, %p266_p7  ;;  %s278_s19 = sshll.u32 %s3349_s18, 4  ;;  %s279_s19 = int_to_ptr.vmem [resolvable:$true] %s278_s19 }
  0x15   : > { %s3350_s21 = smov [#allocation8]   ;;  %s3098_s23 = scalar_lea.vmem %s279_s19, 8192 }
  0x16   : > { %s4123_s17 = scalar_select %p3461_p8, 1, 0 }
  0x17   : > { %p2786_p9 = pneg %p3461_p8  ;;  %s302_s22 = sshll.u32 %s3350_s21, 4  ;;  %s303_s22 = int_to_ptr.vmem [resolvable:$true] %s302_s22 }
  0x18   : > { %p3099_p13 = scmp.ne.s32.totalorder %s279_s19, %s3098_s23  ;;  %p3106_p5 = scmp.lt.s32.totalorder %s279_s19, %s279_s19 }
  0x19   : > { %p3470_p11 = pnand %p2786_p9, %p4111_p1  ;;  %p3107_p7 = scmp.lt.s32.totalorder %s3098_s23, %s3098_s23 }
  0x1b   : > { %p3089_p12 = pneg %p3470_p11  ;;  %p3108_p10 = por %p3107_p7, %p3106_p5 }
  0x1d   : > { %p3101_p0 = pnand %p3099_p13, %p3089_p12 }
  0x1f   : > { %p3102_p3 = pneg %p3101_p0 }
  0x21   : > { %p3109_p9 = pnand %p3108_p10, %p3102_p3 }
  0x23   : > { %3112 = shalt.err (!%p3109_p9)
}
  0x24   : > { %s3351_s24 = smov 256   ;;  %s3352_s25 = smov 16  }
  0x25   : > { %s4125_s1 = sld [smem:[#allocation20_spill]]  ;;  %s3124_s28 = scalar_lea.vmem %s303_s22, 4096 }
  0x26   : > { %p3125_p1 = scmp.ne.s32.totalorder %s303_s22, %s3124_s28  ;;  %p3132_p2 = scmp.lt.s32.totalorder %s303_s22, %s303_s22 }
  0x27   : > { %p3133_p6 = scmp.lt.s32.totalorder %s3124_s28, %s3124_s28 }
  0x28   : > { %p3127_p13 = pnand %p3125_p1, %p3089_p12 }
  0x29   : > { %p3134_p5 = por %p3133_p6, %p3132_p2 }
  0x2a   : > { %p3128_p0 = pneg %p3127_p13 }
  0x2b   : > { %2789 = dma.hbm_to_vmem [thread:$0]  (!%p3470_p11), %s4125_s1, 8192, %s279_s19, [#allocation6], %s3351_s24, %s3351_s24, %s3352_s25  }
  0x2c   : > { %p3135_p10 = pnand %p3134_p5, %p3128_p0 }
  0x2e   : > { %3138 = shalt.err (!%p3135_p10)
}
  0x2f   : > { %s4115_s29 = smov 128   ;;  %s4116_s18 = smov 8  }
  0x30   : > { %s4126_s3 = sld [smem:[#allocation22_spill]]  ;;  %s3355_s23 = smov [#allocation7]  }
  0x31   : > { %s292_s24 = sshll.u32 %s3355_s23, 4  ;;  %s3356_s25 = smov [#allocation10]   ;;  %s293_s24 = int_to_ptr.vmem [resolvable:$true] %s292_s24 }
  0x32   : > { %s318_s26 = sshll.u32 %s3356_s25, 4  ;;  %s3150_s27 = scalar_lea.vmem %s293_s24, 64  ;;  %s319_s26 = int_to_ptr.vmem [resolvable:$true] %s318_s26 }
  0x33   : > { %p3151_p1 = scmp.ne.s32.totalorder %s293_s24, %s3150_s27  ;;  %p3158_p3 = scmp.lt.s32.totalorder %s293_s24, %s293_s24 }
  0x34   : > { %p3159_p7 = scmp.lt.s32.totalorder %s3150_s27, %s3150_s27 }
  0x35   : > { %p3153_p2 = pnand %p3151_p1, %p3089_p12 }
  0x36   : > { %2795 = dma.hbm_to_vmem [thread:$0]  (!%p3470_p11), %s4126_s3, 4096, %s303_s22, [#allocation9], %s4115_s29, %s4115_s29, %s4116_s18  }
  0x37   : > { %p3154_p6 = pneg %p3153_p2  ;;  %p3160_p9 = por %p3159_p7, %p3158_p3 }
  0x39   : > { %p3161_p13 = pnand %p3160_p9, %p3154_p6 }
  0x3b   : > { %3164 = shalt.err (!%p3161_p13)
}
  0x3c   : > { %s4127_s2 = sld [smem:[#allocation21_spill]]  ;;  %s3176_s19 = scalar_lea.vmem %s319_s26, 2048 }
  0x3d   : > { %p3177_p0 = scmp.ne.s32.totalorder %s319_s26, %s3176_s19  ;;  %p3184_p1 = scmp.lt.s32.totalorder %s319_s26, %s319_s26 }
  0x3e   : > { %p3185_p2 = scmp.lt.s32.totalorder %s3176_s19, %s3176_s19 }
  0x3f   : > { %p3179_p5 = pnand %p3177_p0, %p3089_p12 }
  0x40   : > { %p3186_p4 = por %p3185_p2, %p3184_p1 }
  0x41   : > { %p3180_p10 = pneg %p3179_p5 }
  0x42   : > { %2792 = dma.hbm_to_vmem [thread:$0]  (!%p3470_p11), %s4127_s2, 64, %s293_s24, [#allocation6]  }
  0x43   : > { %p3187_p8 = pnand %p3186_p4, %p3180_p10 }
  0x45   : > { %3190 = shalt.err (!%p3187_p8)
}
  0x46   : > { %s3357_s21 = smov 64   ;;  %s3358_s23 = smov 4  }
  0x47   : > { %2798 = dma.hbm_to_vmem [thread:$0]  (!%p3470_p11), %s4106_s5, 2048, %s319_s26, [#allocation9], %s3357_s21, %s3357_s21, %s3358_s23  }
  0x48   : > { %s3512_s27 = sadd.s32 1, %s3347_s12   ;;  %s38_s28 = sadd.s32 1, %s3343_s11 }
  0x49   : > { %s35_s22 = ssub.s32 %s3347_s12, %s3512_s27  ;;  %p45_p8 = scmp.ne.s32.totalorder %s3343_s11, %s3339_s10 }
  0x4a   : > { %p36_p4 = scmp.eq.s32.totalorder %s35_s22, 0  ;;  %p46_p12 = scmp.eq.s32.totalorder %s3347_s12, 0 }
  0x4b   : > { %p4128_p3 = scmp.eq.s32.totalorder %s3440_s13, 1  ;;  %p2817_p9 = scmp.lt.s32.totalorder %s3347_s12, 2 }
  0x4c   : > { %s3521_s19 = scalar_select %p36_p4, %s3343_s11, %s38_s28  }
  0x4d   : > { %p47_p6 = por %p46_p12, %p45_p8  ;;  %p3525_p7 = por %p4128_p3, %p45_p8 }
  0x4e   : > { %s335_s20 = sand.u32 1, %s3343_s11   ;;  %s2613_s26 = sshll.u32 %s3347_s12, 11 }
  0x4f   : > { %s4129_s14 = scalar_select %p3525_p7, 1, 0 }
  0x50   : > { %s2425_s24 = sshll.u32 %s335_s20, 7  ;;  %s3535_s25 = scalar_lea.hbm %s4101_s0, %s2613_s26 }
  0x51   : > { %s339_s22 = scalar_lea.vmem [#allocation2], %s2425_s24  ;;  %p3539_p11 = pnand %p2817_p9, %p47_p6 }
  0x52   : > { %s347_s28 = sshll.u32 %s339_s22, 4  ;;  %s3543_s18 = scalar_lea.sflag [#allocation3], %s335_s20  ;;  %s3537_s28 = int_to_ptr.vmem [resolvable:$true] %s347_s28 }
  0x53   : > { %s3191_s1 = scalar_lea.hbm %s3535_s25, 2048  ;;  %p3193_p0 = pneg %p3539_p11 }
  0x54   : > { %p3192_p13 = scmp.ne.s32.totalorder %s3535_s25, %s3191_s1  ;;  %s3196_s24 = scalar_lea.hbm %s4101_s0, 4096 }
  0x55   : > { %p3197_p1 = scmp.lt.s32.totalorder %s3535_s25, %s4101_s0  ;;  %p3198_p2 = scmp.lt.s32.totalorder %s3196_s24, %s3191_s1 }
  0x56   : > { %p3194_p5 = pnand %p3193_p0, %p3192_p13 }
  0x57   : > { %p3199_p4 = por %p3198_p2, %p3197_p1 }
  0x58   : > { %p3195_p10 = pneg %p3194_p5 }
  0x5a   : > { %p3200_p8 = pnand %p3199_p4, %p3195_p10 }
  0x5c   : > { %3203 = shalt.err (!%p3200_p8)
}
  0x5d   : > { %s3204_s20 = scalar_lea.vmem %s3537_s28, 2048  ;;  %s3359_s2 = smov [#allocation2]  }
  0x5e   : > { %p3205_p12 = scmp.ne.s32.totalorder %s3537_s28, %s3204_s20  ;;  %s3209_s3 = sshll.u32 %s3359_s2, 4  ;;  %s3210_s3 = int_to_ptr.vmem [resolvable:$false] %s3209_s3 }
  0x5f   : > { %s3211_s26 = scalar_lea.vmem %s3210_s3, 4096  ;;  %p3212_p9 = scmp.lt.s32.totalorder %s3537_s28, %s3210_s3 }
  0x60   : > { %p3207_p6 = pnand %p3205_p12, %p3193_p0  ;;  %p3213_p13 = scmp.lt.s32.totalorder %s3211_s26, %s3204_s20 }
  0x62   : > { %p3208_p3 = pneg %p3207_p6  ;;  %p3214_p5 = por %p3213_p13, %p3212_p9 }
  0x64   : > { %p3215_p7 = pnand %p3214_p5, %p3208_p3 }
  0x66   : > { %3218 = shalt.err (!%p3215_p7)
}
  0x67   : > { %s4131_s1 = smov 8   ;;  %s4132_s21 = smov 128  }
  0x68   : > { %2802 = dma.hbm_to_vmem [thread:$0]  (!%p3539_p11), %s3535_s25, 2048, %s3537_s28, %s3543_s18, %s4132_s21, %s4132_s21, %s4131_s1  }
  0x69   : > { %p4133_p0 = scmp.ne.s32.totalorder %s4123_s17, 0 }
  0x6a   : > { %s3570_s2 = sand.u32 (!%p4133_p0), 1, %s3339_s10   ;;  %p4134_p7 = scmp.ne.s32.totalorder (!%p4133_p0), %s4121_s15, 0 }
  0x6b   : > { %359 = sbr.rel (%p4133_p0) target bundleno = 822 (0x336), region = 48  ;;  %s2430_s3 = sshll.u32 (!%p4133_p0), %s3570_s2, 7 }
  0x6c   : > { %s362_s24 = scalar_lea.sflag (!%p4133_p0), [#allocation3], %s3570_s2  ;;  %s3576_s29 = scalar_lea.vmem (!%p4133_p0), [#allocation2], %s2430_s3 }
  0x70   : > { %3314 = dma.done.wait (%p4134_p7), %s362_s24, 2048  }
  0x71   : > { %3316 = vsyncadd (%p4134_p7), %s362_s24, 4294965248  ;;  %p4135_p11 = scmp.eq.s32.totalorder %s3440_s13, 0 }
  0x73   : > { %3318 = dma.done.wait (%p4135_p11), [#allocation6], 8256   ;;  %p4136_p10 = pmov %p4135_p11 }
  0x75   : > { %3320 = vsyncadd (%p4136_p10), [#allocation6], 4294959040  ;;  %p4137_p1 = pmov %p4136_p10 }
  0x77   : > { %3322 = dma.done.wait (%p4137_p1), [#allocation9], 6144   ;;  %p4138_p2 = pmov %p4137_p1 }
  0x78   : > { %v2871_v0 = vld [vmem:[#allocation5 + $0xe4] ss:$16 sps:$4 sm:$0xff]   ;;  %v2873_v1 = vld [vmem:[#allocation5 + $0xe0] ss:$16 sps:$4 sm:$0xff]   ;;  %v2943_v20 = vld [vmem:[#allocation5 + $0xec] ss:$16 sps:$4 sm:$0xff]  }
  0x79   : > { %3324 = vsyncadd (%p4138_p2), [#allocation9], 4294961152  ;;  %933 = vmatprep.subr.bf16.mxu0 %v2871_v0  ;;  %v2874_v2 = vld [vmem:[#allocation5 + $0xc4] ss:$16 sps:$4 sm:$0xff]   ;;  %v2876_v3 = vld [vmem:[#allocation5 + $0xc0] ss:$16 sps:$4 sm:$0xff]   ;;  %1046 = vmatprep.subr.bf16.mxu1 %v2943_v20 }
  0x7a   : > { %934 = vmatpush1.bf16.msra.mxu0 %v2873_v1  ;;  %v2877_v4 = vld [vmem:[#allocation5 + $0xa4] ss:$16 sps:$4 sm:$0xff]   ;;  %v2879_v5 = vld [vmem:[#allocation5 + $0xa0] ss:$16 sps:$4 sm:$0xff]   ;;  %v2945_v21 = vld [vmem:[#allocation5 + $0xe8] ss:$16 sps:$4 sm:$0xff]  }
  0x7b   : > { %935 = vmatprep.subr.bf16.mxu0 %v2874_v2  ;;  %v2880_v6 = vld [vmem:[#allocation5 + $0x84] ss:$16 sps:$4 sm:$0xff]   ;;  %v2882_v7 = vld [vmem:[#allocation5 + $0x80] ss:$16 sps:$4 sm:$0xff]   ;;  %v2946_v23 = vld [vmem:[#allocation5 + $0xcc] ss:$16 sps:$4 sm:$0xff]   ;;  %1047 = vmatpush1.bf16.msra.mxu1 %v2945_v21 }
  0x7c   : > { %v2883_v8 = vld [vmem:[#allocation5 + $0x64] ss:$16 sps:$4 sm:$0xff]   ;;  %v2885_v9 = vld [vmem:[#allocation5 + $0x60] ss:$16 sps:$4 sm:$0xff]   ;;  %v2948_v25 = vld [vmem:[#allocation5 + $0xc8] ss:$16 sps:$4 sm:$0xff]   ;;  %1048 = vmatprep.subr.bf16.mxu1 %v2946_v23 }
  0x7d   : > { %v2886_v10 = vld [vmem:[#allocation5 + $0x44] ss:$16 sps:$4 sm:$0xff]   ;;  %v2888_v11 = vld [vmem:[#allocation5 + $0x40] ss:$16 sps:$4 sm:$0xff]   ;;  %v2949_v26 = vld [vmem:[#allocation5 + $0xac] ss:$16 sps:$4 sm:$0xff]  }
  0x7e   : > { %936 = vmatpush1.bf16.msra.mxu0 %v2876_v3  ;;  %v2889_v12 = vld [vmem:[#allocation5 + $0x24] ss:$16 sps:$4 sm:$0xff]   ;;  %v2891_v14 = vld [vmem:[#allocation5 + $0x20] ss:$16 sps:$4 sm:$0xff]   ;;  %v2951_v29 = vld [vmem:[#allocation5 + $0xa8] ss:$16 sps:$4 sm:$0xff]  }
  0x7f   : > { %937 = vmatprep.subr.bf16.mxu0 %v2877_v4  ;;  %v2921_v13 = vld [vmem:[%s3576_s29 + $0x4] ss:$8 sps:$4 sm:$0xff]   ;;  %v2894_v16 = vld [vmem:[#allocation5] ss:$16 sps:$4 sm:$0xff]   ;;  %1049 = vmatpush1.bf16.msra.mxu1 %v2948_v25  ;;  %v2954_v33 = vld [vmem:[#allocation5 + $0x88] ss:$16 sps:$4 sm:$0xff]  }
  0x80   : > { %v2892_v15 = vld [vmem:[#allocation5 + $0x4] ss:$16 sps:$4 sm:$0xff]   ;;  %965 = vmatprep.mubr.bf16.mxu0 %v2921_v13  ;;  %1078 = vmatprep.mubr.bf16.mxu1 %v2921_v13  ;;  %v2897_v18 = vld [vmem:[#allocation5 + $0x1e0] ss:$16 sps:$4 sm:$0xff]   ;;  %v2952_v30 = vld [vmem:[#allocation5 + $0x8c] ss:$16 sps:$4 sm:$0xff]  }
  0x81   : > { %v2895_v17 = vld [vmem:[#allocation5 + $0x1e4] ss:$16 sps:$4 sm:$0xff]   ;;  %v2900_v22 = vld [vmem:[#allocation5 + $0x1c0] ss:$16 sps:$4 sm:$0xff]   ;;  %1050 = vmatprep.subr.bf16.mxu1 %v2949_v26  ;;  %v2955_v34 = vld [vmem:[#allocation5 + $0x6c] ss:$16 sps:$4 sm:$0xff]  }
  0x82   : > { %938 = vmatpush1.bf16.msra.mxu0 %v2879_v5  ;;  %v2898_v19 = vld [vmem:[#allocation5 + $0x1c4] ss:$16 sps:$4 sm:$0xff]   ;;  %v2903_v27 = vld [vmem:[#allocation5 + $0x1a0] ss:$16 sps:$4 sm:$0xff]   ;;  %v2957_v37 = vld [vmem:[#allocation5 + $0x68] ss:$16 sps:$4 sm:$0xff]  }
  0x83   : > { %939 = vmatprep.subr.bf16.mxu0 %v2880_v6  ;;  %v2901_v24 = vld [vmem:[#allocation5 + $0x1a4] ss:$16 sps:$4 sm:$0xff]   ;;  %v2906_v31 = vld [vmem:[#allocation5 + $0x180] ss:$16 sps:$4 sm:$0xff]   ;;  %1051 = vmatpush1.bf16.msra.mxu1 %v2951_v29  ;;  %v2958_v38 = vld [vmem:[#allocation5 + $0x4c] ss:$16 sps:$4 sm:$0xff]  }
  0x84   : > { %v2904_v28 = vld [vmem:[#allocation5 + $0x184] ss:$16 sps:$4 sm:$0xff]   ;;  %1052 = vmatprep.subr.bf16.mxu1 %v2952_v30  ;;  %v2909_v35 = vld [vmem:[#allocation5 + $0x160] ss:$16 sps:$4 sm:$0xff]   ;;  %v2960_v41 = vld [vmem:[#allocation5 + $0x48] ss:$16 sps:$4 sm:$0xff]  }
  0x85   : > { %v2907_v32 = vld [vmem:[#allocation5 + $0x164] ss:$16 sps:$4 sm:$0xff]   ;;  %v2912_v39 = vld [vmem:[#allocation5 + $0x140] ss:$16 sps:$4 sm:$0xff]   ;;  %v2961_v42 = vld [vmem:[#allocation5 + $0x2c] ss:$16 sps:$4 sm:$0xff]  }
  0x86   : > { %940 = vmatpush1.bf16.msra.mxu0 %v2882_v7  ;;  %v2910_v36 = vld [vmem:[#allocation5 + $0x144] ss:$16 sps:$4 sm:$0xff]   ;;  %v2915_v43 = vld [vmem:[#allocation5 + $0x120] ss:$16 sps:$4 sm:$0xff]   ;;  %v2963_v44 = vld [vmem:[#allocation5 + $0x28] ss:$16 sps:$4 sm:$0xff]  }
  0x87   : > { %941 = vmatprep.subr.bf16.mxu0 %v2883_v8  ;;  %1053 = vmatpush1.bf16.msra.mxu1 %v2954_v33  ;;  %v2913_v40 = vld [vmem:[#allocation5 + $0x124] ss:$16 sps:$4 sm:$0xff]   ;;  %v2964_v46 = vld [vmem:[#allocation5 + $0xc] ss:$16 sps:$4 sm:$0xff]   ;;  %v2918_v47 = vld [vmem:[#allocation5 + $0x100] ss:$16 sps:$4 sm:$0xff]  }
  0x88   : > { %1054 = vmatprep.subr.bf16.mxu1 %v2955_v34  ;;  %v2916_v45 = vld [vmem:[#allocation5 + $0x104] ss:$16 sps:$4 sm:$0xff]   ;;  %v2966_v48 = vld [vmem:[#allocation5 + $0x8] ss:$16 sps:$4 sm:$0xff]   ;;  %v2967_v49 = vld [vmem:[#allocation5 + $0x1ec] ss:$16 sps:$4 sm:$0xff]  }
  0x89   : > { %v2919_v50 = vld [vmem:[%s3576_s29] ss:$8 sps:$4 sm:$0xff]   ;;  %v2922_v51 = vld [vmem:[%s3576_s29 + $0x14] ss:$8 sps:$4 sm:$0xff]   ;;  %v2924_v56 = vld [vmem:[%s3576_s29 + $0x10] ss:$8 sps:$4 sm:$0xff]  }
  0x8a   : > { %942 = vmatpush1.bf16.msra.mxu0 %v2885_v9  ;;  %v2969_v52 = vld [vmem:[#allocation5 + $0x1e8] ss:$16 sps:$4 sm:$0xff]   ;;  %v2970_v53 = vld [vmem:[#allocation5 + $0x1cc] ss:$16 sps:$4 sm:$0xff]   ;;  %s3828_s15 = scalar_lea.vmem [#allocation14], %s2430_s3  ;;  %s2436_s25 = sshll.u32 %s3570_s2, 6 }
  0x8b   : > { %943 = vmatprep.subr.bf16.mxu0 %v2886_v10  ;;  %1055 = vmatpush1.bf16.msra.mxu1 %v2957_v37  ;;  %v2972_v54 = vld [vmem:[#allocation5 + $0x1c8] ss:$16 sps:$4 sm:$0xff]   ;;  %v2973_v55 = vld [vmem:[#allocation5 + $0x1ac] ss:$16 sps:$4 sm:$0xff]   ;;  %s3882_s28 = scalar_lea.vmem [#allocation12], %s2436_s25  ;;  %s2193_s23 = sand.u32 1, %s3440_s13  }
  0x8c   : > { %1056 = vmatprep.subr.bf16.mxu1 %v2958_v38  ;;  %v2925_v57 = vld [vmem:[%s3576_s29 + $0x24] ss:$8 sps:$4 sm:$0xff]   ;;  %v2975_v58 = vld [vmem:[#allocation5 + $0x1a8] ss:$16 sps:$4 sm:$0xff]   ;;  %v2928_v63 = vld [vmem:[%s3576_s29 + $0x34] ss:$8 sps:$4 sm:$0xff]  }
  0x8d   : > { %v2976_v59 = vld [vmem:[#allocation5 + $0x18c] ss:$16 sps:$4 sm:$0xff]   ;;  %v2978_v60 = vld [vmem:[#allocation5 + $0x188] ss:$16 sps:$4 sm:$0xff]   ;;  %s2648_s22 = sshll.u32 %s3440_s13, 10  ;;  %s2229_s20 = sshll.u32 %s3882_s28, 4  ;;  %s3913_s20 = int_to_ptr.vmem [resolvable:$true] %s2229_s20 }
  0x8e   : > { %944 = vmatpush1.bf16.msra.mxu0 %v2888_v11  ;;  %v2979_v61 = vld [vmem:[#allocation5 + $0x16c] ss:$16 sps:$4 sm:$0xff]   ;;  %v2927_v62 = vld [vmem:[%s3576_s29 + $0x20] ss:$8 sps:$4 sm:$0xff]   ;;  %v2930_v4 = vld [vmem:[%s3576_s29 + $0x30] ss:$8 sps:$4 sm:$0xff]   ;;  %s3911_s21 = scalar_lea.hbm %s4109_s8, %s2648_s22 }
  0x8f   : > { %945 = vmatprep.subr.bf16.mxu0 %v2889_v12  ;;  %1057 = vmatpush1.bf16.msra.mxu1 %v2960_v41  ;;  %v2981_v0 = vld [vmem:[#allocation5 + $0x168] ss:$16 sps:$4 sm:$0xff]   ;;  %v2982_v1 = vld [vmem:[#allocation5 + $0x14c] ss:$16 sps:$4 sm:$0xff]   ;;  %s2650_s3 = sshll.u32 %s3440_s13, 11  ;;  %s3917_s24 = scalar_lea.sflag [#allocation13], %s2193_s23 }
  0x90   : > { %1058 = vmatprep.subr.bf16.mxu1 %v2961_v42  ;;  %v2984_v2 = vld [vmem:[#allocation5 + $0x148] ss:$16 sps:$4 sm:$0xff]   ;;  %v2985_v3 = vld [vmem:[#allocation5 + $0x12c] ss:$16 sps:$4 sm:$0xff]   ;;  %p4139_p8 = scmp.ne.s32.totalorder %s4129_s14, 0  ;;  %s3360_s17 = smov [#allocation12]  }
  0x91   : > { %v2931_v5 = vld [vmem:[%s3576_s29 + $0x44] ss:$8 sps:$4 sm:$0xff]   ;;  %v2987_v6 = vld [vmem:[#allocation5 + $0x128] ss:$16 sps:$4 sm:$0xff]   ;;  %v2934_v10 = vld [vmem:[%s3576_s29 + $0x54] ss:$8 sps:$4 sm:$0xff]  }
  0x92   : > { %946 = vmatpush1.bf16.msra.mxu0 %v2891_v14  ;;  %v2988_v7 = vld [vmem:[#allocation5 + $0x10c] ss:$16 sps:$4 sm:$0xff]   ;;  %v2990_v8 = vld [vmem:[#allocation5 + $0x108] ss:$16 sps:$4 sm:$0xff]   ;;  %s3223_s18 = sshll.u32 %s3360_s17, 4  ;;  %s3224_s18 = int_to_ptr.vmem [resolvable:$false] %s3223_s18 }
  0x93   : > { %947 = vmatprep.subr.bf16.mxu0 %v2892_v15  ;;  %1059 = vmatpush1.bf16.msra.mxu1 %v2963_v44  ;;  %v2933_v9 = vld [vmem:[%s3576_s29 + $0x40] ss:$8 sps:$4 sm:$0xff]   ;;  %v2936_v11 = vld [vmem:[%s3576_s29 + $0x50] ss:$8 sps:$4 sm:$0xff]   ;;  %v2937_v12 = vld [vmem:[%s3576_s29 + $0x64] ss:$8 sps:$4 sm:$0xff]   ;;  %p3226_p3 = scmp.lt.s32.totalorder %s3913_s20, %s3224_s18 }
  0x94   : > { %1060 = vmatprep.subr.bf16.mxu1 %v2964_v46  ;;  %v2939_v13 = vld [vmem:[%s3576_s29 + $0x60] ss:$8 sps:$4 sm:$0xff]   ;;  %v2940_v14 = vld [vmem:[%s3576_s29 + $0x74] ss:$8 sps:$4 sm:$0xff]   ;;  %v2942_v15 = vld [vmem:[%s3576_s29 + $0x70] ss:$8 sps:$4 sm:$0xff]  }
  0x95   : > { %v2998_v20 = vld [vmem:[#allocation8 + $0x64] ss:$8 sps:$4 sm:$0xff]   ;;  %v2999_v21 = vld [vmem:[#allocation10 + $0x70] sm:$0xff]   ;;  %v2996_v23 = vld [vmem:[#allocation8 + $0x60] ss:$8 sps:$4 sm:$0xff]   ;;  %s3219_s29 = scalar_lea.vmem %s3913_s20, 1024 }
  0x96   : > { %948 = vmatpush1.bf16.msra.mxu0 %v2894_v16  ;;  %v2991_v16 = vld [vmem:[#allocation10 + $0x78] sm:$0xff]   ;;  %v3008_v26 = vld [vmem:[#allocation10 + $0x28] sm:$0xff]   ;;  %v3016_v30 = vld [vmem:[#allocation10 + $0x20] sm:$0xff]   ;;  %p3220_p4 = scmp.ne.s32.totalorder %s3913_s20, %s3219_s29  ;;  %s3225_s25 = scalar_lea.vmem %s3224_s18, 2048 }
  0x97   : > { %949 = vmatprep.subr.bf16.mxu0 %v2895_v17  ;;  %1061 = vmatpush1.bf16.msra.mxu1 %v2966_v48  ;;  %v2992_v17 = vld [vmem:[#allocation10 + $0x38] sm:$0xff]   ;;  %v3006_v29 = vld [vmem:[#allocation8 + $0x44] ss:$8 sps:$4 sm:$0xff]   ;;  %v3032_v38 = vld [vmem:[#allocation10 + $0x10] sm:$0xff]   ;;  %v513_v48 = vlaneseq  ;;  %p3227_p9 = scmp.lt.s32.totalorder %s3225_s25, %s3219_s29 }
  0x98   : > { %1062 = vmatprep.subr.bf16.mxu1 %v2967_v49  ;;  %v3003_v25 = vld [vmem:[#allocation8 + $0x54] ss:$8 sps:$4 sm:$0xff]   ;;  %v3014_v37 = vld [vmem:[#allocation8 + $0x24] ss:$8 sps:$4 sm:$0xff]   ;;  %v3017_v41 = vld [vmem:[#allocation8 + $0x10] ss:$8 sps:$4 sm:$0xff]   ;;  %p3221_p12 = pnand %p3220_p4, %p4139_p8 }
  0x99   : > { %v3011_v33 = vld [vmem:[#allocation8 + $0x34] ss:$8 sps:$4 sm:$0xff]   ;;  %v3022_v42 = vld [vmem:[#allocation8 + $0x4] ss:$8 sps:$4 sm:$0xff]   ;;  %v3606_v49 = vshrl.u32 %v513_v48, 7  ;;  %p3228_p13 = por %p3227_p9, %p3226_p3 }
  0x9a   : > { %950 = vmatpush2.bf16.msra.mxu0 %v2897_v18  ;;  %v2993_v18 = vld [vmem:[#allocation8 + $0x70] ss:$8 sps:$4 sm:$0xff]   ;;  %v3027_v44 = vld [vmem:[#allocation8 + $0xf4] ss:$8 sps:$4 sm:$0xff]   ;;  %v3030_v46 = vld [vmem:[#allocation8 + $0xe4] ss:$8 sps:$4 sm:$0xff]   ;;  %p3222_p6 = pneg %p3221_p12 }
  0x9b   : > { %951 = vmatprep.subr.bf16.mxu0 %v2898_v19  ;;  %1063 = vmatpush2.bf16.msra.mxu1 %v2969_v52  ;;  %v2995_v19 = vld [vmem:[#allocation8 + $0x74] ss:$8 sps:$4 sm:$0xff]   ;;  %v519_v52 = vsub.s32 1, %v3606_v49 }
  0x9c   : > { %1064 = vmatprep.subr.bf16.mxu1 %v2970_v53  ;;  %v3024_v34 = vld [vmem:[#allocation10 + $0x18] sm:$0xff]   ;;  %p3229_p5 = pnand %p3228_p13, %p3222_p6 }
  0x9e   : > { %952 = vmatpush2.bf16.msra.mxu0 %v2900_v22  ;;  %v3000_v22 = vld [vmem:[#allocation10 + $0x30] sm:$0xff]  }
  0x9f   : > { %953 = vmatprep.subr.bf16.mxu0 %v2901_v24  ;;  %1065 = vmatpush2.bf16.msra.mxu1 %v2972_v54  ;;  %v3007_v24 = vld [vmem:[#allocation10 + $0x68] sm:$0xff]  }
  0xa0   : > { %1066 = vmatprep.subr.bf16.mxu1 %v2973_v55 }
  0xa2   : > { %954 = vmatpush2.bf16.msra.mxu0 %v2903_v27  ;;  %v3001_v27 = vld [vmem:[#allocation8 + $0x50] ss:$8 sps:$4 sm:$0xff]  }
  0xa3   : > { %955 = vmatprep.subr.bf16.mxu0 %v2904_v28  ;;  %1067 = vmatpush2.bf16.msra.mxu1 %v2975_v58  ;;  %v3015_v28 = vld [vmem:[#allocation10 + $0x60] sm:$0xff]  }
  0xa4   : > { %1068 = vmatprep.subr.bf16.mxu1 %v2976_v59 }
  0xa6   : > { %956 = vmatpush2.bf16.msra.mxu0 %v2906_v31  ;;  %v3004_v31 = vld [vmem:[#allocation8 + $0x40] ss:$8 sps:$4 sm:$0xff]  }
  0xa7   : > { %957 = vmatprep.subr.bf16.mxu0 %v2907_v32  ;;  %1069 = vmatpush2.bf16.msra.mxu1 %v2978_v60  ;;  %v3023_v32 = vld [vmem:[#allocation10 + $0x58] sm:$0xff]  }
  0xa8   : > { %1070 = vmatprep.subr.bf16.mxu1 %v2979_v61 }
  0xaa   : > { %958 = vmatpush2.bf16.msra.mxu0 %v2909_v35  ;;  %v3009_v35 = vld [vmem:[#allocation8 + $0x30] ss:$8 sps:$4 sm:$0xff]  }
  0xab   : > { %959 = vmatprep.subr.bf16.mxu0 %v2910_v36  ;;  %1071 = vmatpush2.bf16.msra.mxu1 %v2981_v0  ;;  %v3031_v36 = vld [vmem:[#allocation10 + $0x50] sm:$0xff]  }
  0xac   : > { %1072 = vmatprep.subr.bf16.mxu1 %v2982_v1 }
  0xae   : > { %960 = vmatpush2.bf16.msra.mxu0 %v2912_v39  ;;  %v3012_v39 = vld [vmem:[#allocation8 + $0x20] ss:$8 sps:$4 sm:$0xff]  }
  0xaf   : > { %961 = vmatprep.subr.bf16.mxu0 %v2913_v40  ;;  %1073 = vmatpush2.bf16.msra.mxu1 %v2984_v2  ;;  %v3019_v40 = vld [vmem:[#allocation8 + $0x14] ss:$8 sps:$4 sm:$0xff]  }
  0xb0   : > { %1074 = vmatprep.subr.bf16.mxu1 %v2985_v3 }
  0xb2   : > { %962 = vmatpush2.bf16.msra.mxu0 %v2915_v43  ;;  %v3020_v43 = vld [vmem:[#allocation8] ss:$8 sps:$4 sm:$0xff]  }
  0xb3   : > { %963 = vmatprep.subr.bf16.mxu0 %v2916_v45  ;;  %1075 = vmatpush2.bf16.msra.mxu1 %v2987_v6  ;;  %v3025_v45 = vld [vmem:[#allocation8 + $0xf0] ss:$8 sps:$4 sm:$0xff]  }
  0xb4   : > { %1076 = vmatprep.subr.bf16.mxu1 %v2988_v7 }
  0xb6   : > { %964 = vmatpush2.bf16.msra.mxu0 %v2918_v47  ;;  %v3028_v47 = vld [vmem:[#allocation8 + $0xe0] ss:$8 sps:$4 sm:$0xff]  }
  0xb7   : > { %1077 = vmatpush2.bf16.msra.mxu1 %v2990_v8  ;;  %1607 = vmatprep.subr.bf16.mxu0 %v2995_v19 }
  0xb8   : > { %2698 = vmatprep.subr.bf16.mxu1 %v2991_v16 }
  0xb9   : > { %966 = vmatmul.mubr.bf16.vlgmr.msra.gmra.mxu0 %v2919_v50 }
  0xba   : > { %975 = vmatprep.mubr.bf16.mxu0 %v2922_v51  ;;  %1079 = vmatmul.mubr.bf16.vlgmr.msra.gmra.mxu1 %v2919_v50  ;;  %v515_v50 = vsub.s32 0, %v3606_v49 }
  0xbb   : > { %1088 = vmatprep.mubr.bf16.mxu1 %v2922_v51  ;;  %2699 = vmatpush3.bf16.msra.mxu1 %v2992_v17  ;;  %v3609_v51 = vld [vmem:[#allocation7] sm:$0xf] }
  0xbc   : > { %1608 = vmatpush1.bf16.msra.mxu0 %v2993_v18  ;;  %2700 = vmatprep.subr.bf16.mxu1 %v2999_v21  ;;  %v3615_v53 = vrot.slane %v3609_v51, %v515_v50  ;;  %v3620_v54 = vrot.slane %v3609_v51, %v519_v52  ;;  %v3035_v21 = vld [vmem:[#allocation8 + $0xd4] ss:$8 sps:$4 sm:$0xff]  }
  0xbd   : > { %1609 = vmatprep.subr.bf16.mxu0 %v2998_v20 }
  0xbf   : > { %2701 = vmatpush3.bf16.msra.mxu1 %v3000_v22  ;;  %v3036_v22 = vld [vmem:[#allocation10 + $0x48] sm:$0xff]  }
  0xc0   : > { %1610 = vmatpush1.bf16.msra.mxu0 %v2996_v23  ;;  %2702 = vmatprep.subr.bf16.mxu1 %v3007_v24 }
  0xc1   : > { %976 = vmatmul.mubr.bf16.gmra.mxu0 %v2924_v56  ;;  %1611 = vmatprep.subr.bf16.mxu0 %v3003_v25  ;;  %v3033_v25 = vld [vmem:[#allocation8 + $0xd0] ss:$8 sps:$4 sm:$0xff]  }
  0xc2   : > { %985 = vmatprep.mubr.bf16.mxu0 %v2925_v57  ;;  %1089 = vmatmul.mubr.bf16.gmra.mxu1 %v2924_v56 }
  0xc3   : > { %1098 = vmatprep.mubr.bf16.mxu1 %v2925_v57  ;;  %2703 = vmatpush3.bf16.msra.mxu1 %v3008_v26  ;;  %v3037_v26 = vld [vmem:[#allocation10 + $0x8] sm:$0xff]  }
  0xc4   : > { %1612 = vmatpush1.bf16.msra.mxu0 %v3001_v27  ;;  %2704 = vmatprep.subr.bf16.mxu1 %v3015_v28 }
  0xc5   : > { %1613 = vmatprep.subr.bf16.mxu0 %v3006_v29 }
  0xc7   : > { %2705 = vmatpush3.bf16.msra.mxu1 %v3016_v30 }
  0xc8   : > { %1614 = vmatpush1.bf16.msra.mxu0 %v3004_v31  ;;  %2706 = vmatprep.subr.bf16.mxu1 %v3023_v32  ;;  %v3040_v32 = vld [vmem:[#allocation8 + $0xc4] ss:$8 sps:$4 sm:$0xff]  }
  0xc9   : > { %986 = vmatmul.mubr.bf16.gmra.mxu0 %v2927_v62  ;;  %1615 = vmatprep.subr.bf16.mxu0 %v3011_v33  ;;  %v3041_v33 = vld [vmem:[#allocation10 + $0x40] sm:$0xff]  }
  0xca   : > { %995 = vmatprep.mubr.bf16.mxu0 %v2928_v63  ;;  %1099 = vmatmul.mubr.bf16.gmra.mxu1 %v2927_v62 }
  0xcb   : > { %1108 = vmatprep.mubr.bf16.mxu1 %v2928_v63  ;;  %2707 = vmatpush3.bf16.msra.mxu1 %v3024_v34 }
  0xcc   : > { %1616 = vmatpush1.bf16.msra.mxu0 %v3009_v35  ;;  %2708 = vmatprep.subr.bf16.mxu1 %v3031_v36  ;;  %v3038_v36 = vld [vmem:[#allocation8 + $0xc0] ss:$8 sps:$4 sm:$0xff]  }
  0xcd   : > { %1617 = vmatprep.subr.bf16.mxu0 %v3014_v37  ;;  %v3042_v37 = vld [vmem:[#allocation10] sm:$0xff]  }
  0xcf   : > { %2709 = vmatpush3.bf16.msra.mxu1 %v3032_v38 }
  0xd0   : > { %1618 = vmatpush1.bf16.msra.mxu0 %v3012_v39  ;;  %2710 = vmatprep.subr.bf16.mxu1 %v3036_v22 }
  0xd1   : > { %996 = vmatmul.mubr.bf16.gmra.mxu0 %v2930_v4  ;;  %1619 = vmatprep.subr.bf16.mxu0 %v3019_v40 }
  0xd2   : > { %1005 = vmatprep.mubr.bf16.mxu0 %v2931_v5  ;;  %1109 = vmatmul.mubr.bf16.gmra.mxu1 %v2930_v4 }
  0xd3   : > { %1118 = vmatprep.mubr.bf16.mxu1 %v2931_v5  ;;  %2711 = vmatpush3.bf16.msra.mxu1 %v3037_v26 }
  0xd4   : > { %1620 = vmatpush1.bf16.msra.mxu0 %v3017_v41  ;;  %2712 = vmatprep.subr.bf16.mxu1 %v3041_v33  ;;  %v3054_v33 = vld [vmem:[#allocation8 + $0x84] ss:$8 sps:$4 sm:$0xff]  }
  0xd5   : > { %1621 = vmatprep.subr.bf16.mxu0 %v3022_v42 }
  0xd7   : > { %2713 = vmatpush3.bf16.msra.mxu1 %v3042_v37 }
  0xd8   : > { %1622 = vmatpush1.bf16.msra.mxu0 %v3020_v43  ;;  %v3045_v43 = vld [vmem:[#allocation8 + $0xb4] ss:$8 sps:$4 sm:$0xff]  }
  0xd9   : > { %1006 = vmatmul.mubr.bf16.gmra.mxu0 %v2933_v9  ;;  %1623 = vmatprep.subr.bf16.mxu0 %v3027_v44 }
  0xda   : > { %1015 = vmatprep.mubr.bf16.mxu0 %v2934_v10  ;;  %1119 = vmatmul.mubr.bf16.gmra.mxu1 %v2933_v9 }
  0xdb   : > { %1128 = vmatprep.mubr.bf16.mxu1 %v2934_v10 }
  0xdc   : > { %1624 = vmatpush2.bf16.msra.mxu0 %v3025_v45 }
  0xdd   : > { %1625 = vmatprep.subr.bf16.mxu0 %v3030_v46  ;;  %v523_v46 = vsub.s32 2, %v3606_v49 }
  0xe0   : > { %1626 = vmatpush2.bf16.msra.mxu0 %v3028_v47  ;;  %v3043_v47 = vld [vmem:[#allocation8 + $0xb0] ss:$8 sps:$4 sm:$0xff]  }
  0xe1   : > { %1016 = vmatmul.mubr.bf16.gmra.mxu0 %v2936_v11  ;;  %1627 = vmatprep.subr.bf16.mxu0 %v3035_v21  ;;  %v3049_v21 = vld [vmem:[#allocation8 + $0x90] ss:$8 sps:$4 sm:$0xff]  }
  0xe2   : > { %1025 = vmatprep.mubr.bf16.mxu0 %v2937_v12  ;;  %1129 = vmatmul.mubr.bf16.gmra.mxu1 %v2936_v11 }
  0xe3   : > { %1138 = vmatprep.mubr.bf16.mxu1 %v2937_v12 }
  0xe4   : > { %1628 = vmatpush2.bf16.msra.mxu0 %v3033_v25 }
  0xe5   : > { %1629 = vmatprep.subr.bf16.mxu0 %v3040_v32 }
  0xe8   : > { %1630 = vmatpush2.bf16.msra.mxu0 %v3038_v36 }
  0xe9   : > { %1026 = vmatmul.mubr.bf16.gmra.mxu0 %v2939_v13  ;;  %1631 = vmatprep.subr.bf16.mxu0 %v3045_v43 }
  0xea   : > { %1035 = vmatprep.mubr.bf16.mxu0 %v2940_v14  ;;  %1139 = vmatmul.mubr.bf16.gmra.mxu1 %v2939_v13 }
  0xeb   : > { %1148 = vmatprep.mubr.bf16.mxu1 %v2940_v14 }
  0xec   : > { %1632 = vmatpush2.bf16.msra.mxu0 %v3043_v47 }
  0xf1   : > { %1036 = vmatmul.mubr.bf16.gmra.mxu0 %v2942_v15 }
  0xf2   : > { %1149 = vmatmul.mubr.bf16.gmra.mxu1 %v2942_v15 }
 0x179   : > { %v967_v55 = vpop.f32.mrf.mxu0 }
 0x17a   : > { %v3623_v56 = vadd.f32 %v967_v55, %v3615_v53  ;;  %v527_v55 = vsub.s32 3, %v3606_v49 }
 0x17b   : > { %v969_v57 = vpop.f32.mrf.mxu0 }
 0x17c   : > { %v3626_v58 = vadd.f32 %v969_v57, %v3620_v54  ;;  %v1159_v61 = vmul.f32 %v3623_v56, %v3623_v56 }
 0x17d   : > { %v971_v59 = vpop.f32.mrf.mxu0 }
 0x17e   : > { %v3629_v60 = vadd.f32 %v971_v59, %v3615_v53  ;;  %v1160_v62 = vmul.f32 %v3626_v58, %v3626_v58 }
 0x17f   : > { %v973_v63 = vpop.f32.mrf.mxu0 }
 0x180   : > { %v3636_v0 = vadd.f32 %v973_v63, %v3620_v54  ;;  %v1191_v1 = vadd.f32 %v1160_v62, %v1159_v61  ;;  %v1161_v3 = vmul.f32 %v3629_v60, %v3629_v60  ;;  %v3048_v63 = vld [vmem:[#allocation8 + $0xa4] ss:$8 sps:$4 sm:$0xff]  }
 0x181   : > { %v977_v2 = vpop.f32.mrf.mxu0  ;;  %1633 = vmatprep.subr.bf16.mxu0 %v3048_v63 }
 0x182   : > { %v1162_v4 = vmul.f32 %v3636_v0, %v3636_v0  ;;  %v3643_v5 = vadd.f32 %v977_v2, %v3615_v53  ;;  %1192 = vadd.xlane.f32.xlu0 %v1191_v1 }
 0x183   : > { %v979_v6 = vpop.f32.mrf.mxu0 }
 0x184   : > { %v3646_v7 = vadd.f32 %v979_v6, %v3620_v54  ;;  %v1194_v8 = vadd.f32 %v1162_v4, %v1161_v3  ;;  %v1163_v11 = vmul.f32 %v3643_v5, %v3643_v5  ;;  %v3701_v3 = vrot.slane %v3609_v51, %v523_v46  ;;  %v3046_v4 = vld [vmem:[#allocation8 + $0xa0] ss:$8 sps:$4 sm:$0xff]  }
 0x185   : > { %v981_v9 = vpop.f32.mrf.mxu0  ;;  %1634 = vmatpush2.bf16.msra.mxu0 %v3046_v4 }
 0x186   : > { %v3649_v10 = vadd.f32 %v981_v9, %v3615_v53  ;;  %1195 = vadd.xlane.f32.xlu0 %v1194_v8  ;;  %v1164_v12 = vmul.f32 %v3646_v7, %v3646_v7  ;;  %v1080_v8 = vpop.f32.mrf.mxu1  ;;  %v3704_v9 = vrot.slane %v3609_v51, %v527_v55 }
 0x187   : > { %v983_v13 = vpop.f32.mrf.mxu0 }
 0x188   : > { %v3656_v14 = vadd.f32 %v983_v13, %v3620_v54  ;;  %v1197_v15 = vadd.f32 %v1164_v12, %v1163_v11  ;;  %v1165_v17 = vmul.f32 %v3649_v10, %v3649_v10 }
 0x189   : > { %v987_v16 = vpop.f32.mrf.mxu0 }
 0x18a   : > { %v1166_v18 = vmul.f32 %v3656_v14, %v3656_v14  ;;  %v3663_v19 = vadd.f32 %v987_v16, %v3615_v53  ;;  %1198 = vadd.xlane.f32.xlu1 %v1197_v15  ;;  %v1082_v16 = vpop.f32.mrf.mxu1 }
 0x18b   : > { %v989_v20 = vpop.f32.mrf.mxu0  ;;  %v1083_v25 = vadd.f32 %v1082_v16, %v3704_v9 }
 0x18c   : > { %v3666_v23 = vadd.f32 %v989_v20, %v3620_v54  ;;  %v1200_v24 = vadd.f32 %v1166_v18, %v1165_v17  ;;  %v1167_v28 = vmul.f32 %v3663_v19, %v3663_v19  ;;  %v3051_v17 = vld [vmem:[#allocation8 + $0x94] ss:$8 sps:$4 sm:$0xff]   ;;  %v1081_v20 = vadd.f32 %v1080_v8, %v3701_v3  ;;  %v1084_v26 = vpop.f32.mrf.mxu1 }
 0x18d   : > { %v991_v27 = vpop.f32.mrf.mxu0  ;;  %1635 = vmatprep.subr.bf16.mxu0 %v3051_v17 }
 0x18e   : > { %v1168_v29 = vmul.f32 %v3666_v23, %v3666_v23  ;;  %v3673_v30 = vadd.f32 %v991_v27, %v3615_v53  ;;  %1201 = vadd.xlane.f32.xlu1 %v1200_v24  ;;  %1636 = vmatpush2.bf16.msra.mxu0 %v3049_v21  ;;  %v1086_v32 = vpop.f32.mrf.mxu1  ;;  %v1828_v37 = vmax.f32 %v1081_v20, 0.0 }
 0x18f   : > { %v993_v31 = vpop.f32.mrf.mxu0  ;;  %v1087_v43 = vadd.f32 %v1086_v32, %v3704_v9  ;;  %1637 = vmatprep.subr.bf16.mxu0 %v3054_v33 }
 0x190   : > { %v3676_v34 = vadd.f32 %v993_v31, %v3620_v54  ;;  %v1203_v35 = vadd.f32 %v1168_v29, %v1167_v28  ;;  %v1169_v39 = vmul.f32 %v3673_v30, %v3673_v30  ;;  %v1085_v29 = vadd.f32 %v1084_v26, %v3701_v3 }
 0x191   : > { %v997_v38 = vpop.f32.mrf.mxu0 }
 0x192   : > { %v1170_v40 = vmul.f32 %v3676_v34, %v3676_v34  ;;  %v3683_v41 = vadd.f32 %v997_v38, %v3615_v53  ;;  %1204 = vadd.xlane.f32.xlu0 %v1203_v35  ;;  %v1830_v38 = vmax.f32 %v1085_v29, 0.0 }
 0x193   : > { %v999_v42 = vpop.f32.mrf.mxu0 }
 0x194   : > { %v3686_v44 = vadd.f32 %v999_v42, %v3620_v54  ;;  %v1206_v45 = vadd.f32 %v1170_v40, %v1169_v39  ;;  %v1171_v57 = vmul.f32 %v3683_v41, %v3683_v41  ;;  %v3052_v39 = vld [vmem:[#allocation8 + $0x80] ss:$8 sps:$4 sm:$0xff]   ;;  %v1829_v42 = vmax.f32 %v1083_v25, 0.0 }
 0x195   : > { %v1001_v48 = vpop.f32.mrf.mxu0  ;;  %1638 = vmatpush2.bf16.msra.mxu0 %v3052_v39 }
 0x196   : > { %v1172_v59 = vmul.f32 %v3686_v44, %v3686_v44  ;;  %v3695_v61 = vadd.f32 %v1001_v48, %v3615_v53  ;;  %1207 = vadd.xlane.f32.xlu1 %v1206_v45  ;;  %v1090_v45 = vpop.f32.mrf.mxu1 }
 0x197   : > { %v1003_v62 = vpop.f32.mrf.mxu0  ;;  %v1091_v4 = vadd.f32 %v1090_v45, %v3701_v3 }
 0x198   : > { %v3698_v1 = vadd.f32 %v1003_v62, %v3620_v54  ;;  %v1209_v2 = vadd.f32 %v1172_v59, %v1171_v57  ;;  %v1173_v11 = vmul.f32 %v3695_v61, %v3695_v61  ;;  %v1831_v57 = vmax.f32 %v1087_v43, 0.0  ;;  %v1092_v59 = vpop.f32.mrf.mxu1 }
 0x199   : > { %v1007_v6 = vpop.f32.mrf.mxu0  ;;  %v1832_v25 = vmax.f32 %v1091_v4, 0.0 }
 0x19a   : > { %v1174_v12 = vmul.f32 %v3698_v1, %v3698_v1  ;;  %v3711_v13 = vadd.f32 %v1007_v6, %v3615_v53  ;;  %1210 = vadd.xlane.f32.xlu0 %v1209_v2  ;;  %v1860_v2 = vpack.c.bf16 %v1830_v38, %v1828_v37  ;;  %v1861_v8 = vpack.c.bf16 %v1831_v57, %v1829_v42 }
 0x19b   : > { %v1009_v15 = vpop.f32.mrf.mxu0 }
 0x19c   : > { %v3714_v18 = vadd.f32 %v1009_v15, %v3620_v54  ;;  %v1212_v51 = vadd.f32 %v1174_v12, %v1173_v11  ;;  %v1175_v22 = vmul.f32 %v3711_v13, %v3711_v13  ;;  %v1093_v11 = vadd.f32 %v1092_v59, %v3704_v9  ;;  %v1094_v12 = vpop.f32.mrf.mxu1  ;;  %2043 = vmatprep.mubr.bf16.mxu1 %v1861_v8 }
 0x19d   : > { %v1011_v24 = vpop.f32.mrf.mxu0  ;;  %2044 = vmatmul.mubr.bf16.vlgmr.msra.gmra.mxu1 %v1860_v2 }
 0x19e   : > { %v1176_v27 = vmul.f32 %v3714_v18, %v3714_v18  ;;  %v3723_v28 = vadd.f32 %v1011_v24, %v3615_v53  ;;  %1213 = vadd.xlane.f32.xlu1 %v1212_v51  ;;  %v1095_v51 = vadd.f32 %v1094_v12, %v3701_v3  ;;  %v1096_v21 = vpop.f32.mrf.mxu1  ;;  %v1833_v29 = vmax.f32 %v1093_v11, 0.0 }
 0x19f   : > { %v1013_v31 = vpop.f32.mrf.mxu0 }
 0x1a0   : > { %v3727_v35 = vadd.f32 %v1013_v31, %v3620_v54  ;;  %v1215_v36 = vadd.f32 %v1176_v27, %v1175_v22  ;;  %v1177_v46 = vmul.f32 %v3723_v28, %v3723_v28  ;;  %v1834_v26 = vmax.f32 %v1095_v51, 0.0  ;;  %v1100_v32 = vpop.f32.mrf.mxu1 }
 0x1a1   : > { %v1017_v40 = vpop.f32.mrf.mxu0  ;;  %v1097_v31 = vadd.f32 %v1096_v21, %v3704_v9 }
 0x1a2   : > { %v1178_v47 = vmul.f32 %v3727_v35, %v3727_v35  ;;  %v3735_v48 = vadd.f32 %v1017_v40, %v3615_v53  ;;  %1216 = vadd.xlane.f32.xlu0 %v1215_v36  ;;  %v1102_v40 = vpop.f32.mrf.mxu1  ;;  %v1862_v45 = vpack.c.bf16 %v1834_v26, %v1832_v25 }
 0x1a3   : > { %v1019_v55 = vpop.f32.mrf.mxu0  ;;  %v1835_v39 = vmax.f32 %v1097_v31, 0.0  ;;  %v1103_v57 = vadd.f32 %v1102_v40, %v3704_v9 }
 0x1a4   : > { %v3738_v62 = vadd.f32 %v1019_v55, %v3620_v54  ;;  %v1218_v63 = vadd.f32 %v1178_v47, %v1177_v46  ;;  %v1179_v15 = vmul.f32 %v3735_v48, %v3735_v48  ;;  %v1101_v46 = vadd.f32 %v1100_v32, %v3701_v3  ;;  %v1104_v59 = vpop.f32.mrf.mxu1 }
 0x1a5   : > { %v1021_v6 = vpop.f32.mrf.mxu0  ;;  %v1863_v55 = vpack.c.bf16 %v1835_v39, %v1833_v29  ;;  %v1837_v21 = vmax.f32 %v1103_v57, 0.0 }
 0x1a6   : > { %v1180_v16 = vmul.f32 %v3738_v62, %v3738_v62  ;;  %v3747_v17 = vadd.f32 %v1021_v6, %v3615_v53  ;;  %1219 = vadd.xlane.f32.xlu1 %v1218_v63  ;;  %v1105_v6 = vadd.f32 %v1104_v59, %v3701_v3  ;;  %v1106_v11 = vpop.f32.mrf.mxu1 }
 0x1a7   : > { %v1023_v20 = vpop.f32.mrf.mxu0  ;;  %2051 = vmatprep.mubr.bf16.mxu1 %v1863_v55 }
 0x1a8   : > { %v3751_v22 = vadd.f32 %v1023_v20, %v3620_v54  ;;  %v1221_v24 = vadd.f32 %v1180_v16, %v1179_v15  ;;  %v1181_v33 = vmul.f32 %v3747_v17, %v3747_v17  ;;  %v1836_v16 = vmax.f32 %v1101_v46, 0.0  ;;  %2052 = vmatmul.mubr.bf16.gmra.mxu1 %v1862_v45  ;;  %v1110_v25 = vpop.f32.mrf.mxu1 }
 0x1a9   : > { %v1027_v27 = vpop.f32.mrf.mxu0  ;;  %v1838_v51 = vmax.f32 %v1105_v6, 0.0  ;;  %v1111_v40 = vadd.f32 %v1110_v25, %v3701_v3 }
 0x1aa   : > { %v1182_v36 = vmul.f32 %v3751_v22, %v3751_v22  ;;  %v3759_v37 = vadd.f32 %v1027_v27, %v3615_v53  ;;  %1222 = vadd.xlane.f32.xlu0 %v1221_v24  ;;  %v1107_v24 = vadd.f32 %v1106_v11, %v3704_v9 }
 0x1ab   : > { %v1029_v38 = vpop.f32.mrf.mxu0  ;;  %v1864_v39 = vpack.c.bf16 %v1838_v51, %v1836_v16 }
 0x1ac   : > { %v3762_v42 = vadd.f32 %v1029_v38, %v3620_v54  ;;  %v1224_v43 = vadd.f32 %v1182_v36, %v1181_v33  ;;  %v1183_v63 = vmul.f32 %v3759_v37, %v3759_v37  ;;  %v1839_v32 = vmax.f32 %v1107_v24, 0.0  ;;  %v1112_v33 = vpop.f32.mrf.mxu1 }
 0x1ad   : > { %v1031_v47 = vpop.f32.mrf.mxu0  ;;  %v1113_v46 = vadd.f32 %v1112_v33, %v3704_v9 }
 0x1ae   : > { %v1184_v2 = vmul.f32 %v3762_v42, %v3762_v42  ;;  %v3771_v4 = vadd.f32 %v1031_v47, %v3615_v53  ;;  %1225 = vadd.xlane.f32.xlu1 %v1224_v43  ;;  %v1865_v45 = vpack.c.bf16 %v1839_v32, %v1837_v21  ;;  %v1114_v47 = vpop.f32.mrf.mxu1 }
 0x1af   : > { %v1033_v8 = vpop.f32.mrf.mxu0  ;;  %v1841_v51 = vmax.f32 %v1113_v46, 0.0 }
 0x1b0   : > { %v3775_v12 = vadd.f32 %v1033_v8, %v3620_v54  ;;  %v1227_v15 = vadd.f32 %v1184_v2, %v1183_v63  ;;  %v1185_v26 = vmul.f32 %v3771_v4, %v3771_v4  ;;  %v1115_v63 = vadd.f32 %v1114_v47, %v3701_v3  ;;  %2059 = vmatprep.mubr.bf16.mxu1 %v1865_v45  ;;  %v1116_v6 = vpop.f32.mrf.mxu1 }
 0x1b1   : > { %v1037_v20 = vpop.f32.mrf.mxu0  ;;  %2060 = vmatmul.mubr.bf16.gmra.mxu1 %v1864_v39 }
 0x1b2   : > { %v1186_v27 = vmul.f32 %v3775_v12, %v3775_v12  ;;  %v3783_v29 = vadd.f32 %v1037_v20, %v3615_v53  ;;  %1228 = vadd.xlane.f32.xlu0 %v1227_v15  ;;  %v1840_v15 = vmax.f32 %v1111_v40, 0.0  ;;  %v1842_v16 = vmax.f32 %v1115_v63, 0.0  ;;  %v1120_v21 = vpop.f32.mrf.mxu1 }
 0x1b3   : > { %v1039_v31 = vpop.f32.mrf.mxu0  ;;  %v1117_v20 = vadd.f32 %v1116_v6, %v3704_v9 }
 0x1b4   : > { %v3786_v36 = vadd.f32 %v1039_v31, %v3620_v54  ;;  %v1230_v38 = vadd.f32 %v1186_v27, %v1185_v26  ;;  %v1187_v55 = vmul.f32 %v3783_v29, %v3783_v29  ;;  %v1122_v26 = vpop.f32.mrf.mxu1  ;;  %v1121_v31 = vadd.f32 %v1120_v21, %v3701_v3 }
 0x1b5   : > { %v1041_v43 = vpop.f32.mrf.mxu0  ;;  %v1843_v25 = vmax.f32 %v1117_v20, 0.0  ;;  %v1123_v32 = vadd.f32 %v1122_v26, %v3704_v9 }
 0x1b6   : > { %v1188_v57 = vmul.f32 %v3786_v36, %v3786_v36  ;;  %v3795_v59 = vadd.f32 %v1041_v43, %v3615_v53  ;;  %1231 = vadd.xlane.f32.xlu1 %v1230_v38  ;;  %v1124_v38 = vpop.f32.mrf.mxu1  ;;  %v1844_v43 = vmax.f32 %v1121_v31, 0.0 }
 0x1b7   : > { %v1043_v2 = vpop.f32.mrf.mxu0  ;;  %v1867_v33 = vpack.c.bf16 %v1843_v25, %v1841_v51  ;;  %v1125_v39 = vadd.f32 %v1124_v38, %v3701_v3  ;;  %v1845_v45 = vmax.f32 %v1123_v32, 0.0 }
 0x1b8   : > { %v3799_v8 = vadd.f32 %v1043_v2, %v3620_v54  ;;  %v1233_v11 = vadd.f32 %v1188_v57, %v1187_v55  ;;  %v1189_v53 = vmul.f32 %v3795_v59, %v3795_v59  ;;  %v1866_v54 = vpack.c.bf16 %v1842_v16, %v1840_v15  ;;  %v1126_v40 = vpop.f32.mrf.mxu1 }
 0x1b9   : > { %2067 = vmatprep.mubr.bf16.mxu1 %v1867_v33  ;;  %v1846_v46 = vmax.f32 %v1125_v39, 0.0  ;;  %v1127_v47 = vadd.f32 %v1126_v40, %v3704_v9 }
 0x1ba   : > { %v1190_v24 = vmul.f32 %v3799_v8, %v3799_v8  ;;  %1234 = vadd.xlane.f32.xlu0 %v1233_v11  ;;  %2068 = vmatmul.mubr.bf16.gmra.mxu1 %v1866_v54  ;;  %v1130_v55 = vpop.f32.mrf.mxu1 }
 0x1bb   : > { %v1847_v57 = vmax.f32 %v1127_v47, 0.0  ;;  %v1868_v2 = vpack.c.bf16 %v1846_v46, %v1844_v43  ;;  %v1131_v11 = vadd.f32 %v1130_v55, %v3701_v3 }
 0x1bc   : > { %v1236_v27 = vadd.f32 %v1190_v24, %v1189_v53  ;;  %v1132_v63 = vpop.f32.mrf.mxu1 }
 0x1bd   : > { %v1869_v6 = vpack.c.bf16 %v1847_v57, %v1845_v45  ;;  %v1133_v15 = vadd.f32 %v1132_v63, %v3704_v9  ;;  %v1848_v21 = vmax.f32 %v1131_v11, 0.0 }
 0x1be   : > { %1237 = vadd.xlane.f32.xlu1 %v1236_v27  ;;  %v1134_v16 = vpop.f32.mrf.mxu1 }
 0x1bf   : > { %v1135_v51 = vadd.f32 %v1134_v16, %v3701_v3  ;;  %2075 = vmatprep.mubr.bf16.mxu1 %v1869_v6  ;;  %v1849_v53 = vmax.f32 %v1133_v15, 0.0 }
 0x1c0   : > { %v1136_v20 = vpop.f32.mrf.mxu1 }
 0x1c1   : > { %v1850_v24 = vmax.f32 %v1135_v51, 0.0  ;;  %v1137_v25 = vadd.f32 %v1136_v20, %v3704_v9 }
 0x1c2   : > { %2076 = vmatmul.mubr.bf16.gmra.mxu1 %v1868_v2  ;;  %v1140_v26 = vpop.f32.mrf.mxu1 }
 0x1c3   : > { %v1851_v27 = vmax.f32 %v1137_v25, 0.0  ;;  %v1870_v31 = vpack.c.bf16 %v1850_v24, %v1848_v21  ;;  %v1141_v33 = vadd.f32 %v1140_v26, %v3701_v3 }
 0x1c4   : > { %v1142_v54 = vpop.f32.mrf.mxu1 }
 0x1c5   : > { %v1871_v32 = vpack.c.bf16 %v1851_v27, %v1849_v53  ;;  %v1143_v38 = vadd.f32 %v1142_v54, %v3704_v9  ;;  %v1852_v45 = vmax.f32 %v1141_v33, 0.0 }
 0x1c6   : > { %v1144_v39 = vpop.f32.mrf.mxu1 }
 0x1c7   : > { %v1145_v40 = vadd.f32 %v1144_v39, %v3701_v3  ;;  %2083 = vmatprep.mubr.bf16.mxu1 %v1871_v32  ;;  %v1853_v46 = vmax.f32 %v1143_v38, 0.0 }
 0x1c8   : > { %v1146_v43 = vpop.f32.mrf.mxu1 }
 0x1c9   : > { %v1854_v47 = vmax.f32 %v1145_v40, 0.0  ;;  %v1147_v55 = vadd.f32 %v1146_v43, %v3704_v9 }
 0x1ca   : > { %2084 = vmatmul.mubr.bf16.gmra.mxu1 %v1870_v31  ;;  %v1150_v57 = vpop.f32.mrf.mxu1 }
 0x1cb   : > { %v1855_v63 = vmax.f32 %v1147_v55, 0.0  ;;  %v1872_v6 = vpack.c.bf16 %v1854_v47, %v1852_v45  ;;  %v1151_v15 = vadd.f32 %v1150_v57, %v3701_v3 }
 0x1cc   : > { %v1152_v2 = vpop.f32.mrf.mxu1 }
 0x1cd   : > { %v1873_v11 = vpack.c.bf16 %v1855_v63, %v1853_v46  ;;  %v1153_v16 = vadd.f32 %v1152_v2, %v3704_v9  ;;  %v1856_v53 = vmax.f32 %v1151_v15, 0.0 }
 0x1ce   : > { %v1154_v51 = vpop.f32.mrf.mxu1 }
 0x1cf   : > { %v1155_v20 = vadd.f32 %v1154_v51, %v3701_v3  ;;  %2091 = vmatprep.mubr.bf16.mxu1 %v1873_v11  ;;  %v1857_v24 = vmax.f32 %v1153_v16, 0.0 }
 0x1d0   : > { %v1156_v21 = vpop.f32.mrf.mxu1 }
 0x1d1   : > { %v1858_v25 = vmax.f32 %v1155_v20, 0.0  ;;  %v1157_v26 = vadd.f32 %v1156_v21, %v3704_v9 }
 0x1d2   : > { %2092 = vmatmul.mubr.bf16.gmra.mxu1 %v1872_v6 }
 0x1d3   : > { %v1859_v27 = vmax.f32 %v1157_v26, 0.0  ;;  %v1874_v54 = vpack.c.bf16 %v1858_v25, %v1856_v53 }
 0x1d5   : > { %v1875_v31 = vpack.c.bf16 %v1859_v27, %v1857_v24 }
 0x1d7   : > { %2099 = vmatprep.mubr.bf16.mxu1 %v1875_v31 }
 0x1da   : > { %2100 = vmatmul.mubr.bf16.gmra.mxu1 %v1874_v54 }
 0x20b   : > { %v1193_v32 = vpop.xlane.xlu0 %1192 }
 0x20c   : > { %v1239_v33 = vmax.f32 %v1193_v32, 1e-24 }
 0x20e   : > { %3055 = vrsqrt.f32 %v1239_v33 }
 0x20f   : > { %v1196_v38 = vpop.xlane.xlu0 %1195 }
 0x210   : > { %v1240_v39 = vmax.f32 %v1196_v38, 1e-24 }
 0x212   : > { %3057 = vrsqrt.f32 %v1240_v39 }
 0x213   : > { %v1199_v3 = vpop.xlane.xlu1 %1198 }
 0x214   : > { %v1241_v40 = vmax.f32 %v1199_v3, 1e-24 }
 0x216   : > { %3059 = vrsqrt.f32 %v1241_v40 }
 0x217   : > { %v1202_v43 = vpop.xlane.xlu1 %1201 }
 0x218   : > { %v1242_v45 = vmax.f32 %v1202_v43, 1e-24 }
 0x21a   : > { %3061 = vrsqrt.f32 %v1242_v45 }
 0x21b   : > { %v3056_v9 = vpop.eup %3055  ;;  %v1205_v46 = vpop.xlane.xlu0 %1204 }
 0x21c   : > { %v1243_v47 = vmax.f32 %v1205_v46, 1e-24  ;;  %v1271_v55 = vmul.f32 %v3056_v9, %v3623_v56  ;;  %v1272_v57 = vmul.f32 %v3056_v9, %v3626_v58 }
 0x21e   : > { %3063 = vrsqrt.f32 %v1243_v47  ;;  %v2614_v63 = vpack.c.bf16 %v1272_v57, %v1271_v55 }
 0x21f   : > { %v3058_v2 = vpop.eup %3057  ;;  %v1208_v6 = vpop.xlane.xlu1 %1207 }
 0x220   : > { %v1244_v11 = vmax.f32 %v1208_v6, 1e-24  ;;  %v1273_v15 = vmul.f32 %v3058_v2, %v3629_v60  ;;  %v1274_v16 = vmul.f32 %v3058_v2, %v3636_v0  ;;  %1399 = vst [vmem:[%s3828_s15] sm:$0xff] %v2614_v63 }
 0x222   : > { %3065 = vrsqrt.f32 %v1244_v11  ;;  %v1304_v51 = vpack.c.bf16 %v1274_v16, %v1272_v57  ;;  %v2615_v56 = vpack.c.bf16 %v1274_v16, %v1273_v15  ;;  %v1303_v20 = vpack.c.bf16 %v1273_v15, %v1271_v55 }
 0x223   : > { %v3060_v58 = vpop.eup %3059  ;;  %v1211_v21 = vpop.xlane.xlu0 %1210 }
 0x224   : > { %v1245_v53 = vmax.f32 %v1211_v21, 1e-24  ;;  %1400 = vst [vmem:[%s3828_s15 + $0x8] sm:$0xff] %v2615_v56  ;;  %1639 = vmatprep.mubr.bf16.mxu0 %v1304_v51  ;;  %v1276_v60 = vmul.f32 %v3060_v58, %v3646_v7  ;;  %v1275_v0 = vmul.f32 %v3060_v58, %v3643_v5 }
 0x225   : > { %1640 = vmatmul.mubr.bf16.vlgmr.msra.gmra.mxu0 %v1303_v20 }
 0x226   : > { %3067 = vrsqrt.f32 %v1245_v53  ;;  %v2616_v24 = vpack.c.bf16 %v1276_v60, %v1275_v0 }
 0x227   : > { %v3062_v25 = vpop.eup %3061  ;;  %v1214_v26 = vpop.xlane.xlu1 %1213 }
 0x228   : > { %v1246_v27 = vmax.f32 %v1214_v26, 1e-24  ;;  %v1278_v54 = vmul.f32 %v3062_v25, %v3656_v14  ;;  %v1277_v31 = vmul.f32 %v3062_v25, %v3649_v10  ;;  %1401 = vst [vmem:[%s3828_s15 + $0x10] sm:$0xff] %v2616_v24 }
 0x22a   : > { %3069 = vrsqrt.f32 %v1246_v27  ;;  %v1306_v32 = vpack.c.bf16 %v1278_v54, %v1276_v60  ;;  %v1305_v33 = vpack.c.bf16 %v1277_v31, %v1275_v0  ;;  %v2617_v38 = vpack.c.bf16 %v1278_v54, %v1277_v31 }
 0x22b   : > { %v3064_v7 = vpop.eup %3063  ;;  %v1217_v39 = vpop.xlane.xlu0 %1216 }
 0x22c   : > { %v1247_v5 = vmax.f32 %v1217_v39, 1e-24  ;;  %1649 = vmatprep.mubr.bf16.mxu0 %v1306_v32  ;;  %1402 = vst [vmem:[%s3828_s15 + $0x18] sm:$0xff] %v2617_v38  ;;  %v1280_v3 = vmul.f32 %v3064_v7, %v3666_v23  ;;  %v1279_v40 = vmul.f32 %v3064_v7, %v3663_v19 }
 0x22d   : > { %1650 = vmatmul.mubr.bf16.gmra.mxu0 %v1305_v33 }
 0x22e   : > { %3071 = vrsqrt.f32 %v1247_v5  ;;  %v2618_v14 = vpack.c.bf16 %v1280_v3, %v1279_v40 }
 0x22f   : > { %v3066_v10 = vpop.eup %3065  ;;  %v1220_v43 = vpop.xlane.xlu1 %1219 }
 0x230   : > { %v1248_v45 = vmax.f32 %v1220_v43, 1e-24  ;;  %v1282_v9 = vmul.f32 %v3066_v10, %v3676_v34  ;;  %v1281_v46 = vmul.f32 %v3066_v10, %v3673_v30  ;;  %1403 = vst [vmem:[%s3828_s15 + $0x20] sm:$0xff] %v2618_v14 }
 0x232   : > { %3073 = vrsqrt.f32 %v1248_v45  ;;  %v1308_v47 = vpack.c.bf16 %v1282_v9, %v1280_v3  ;;  %v1307_v55 = vpack.c.bf16 %v1281_v46, %v1279_v40  ;;  %v2619_v57 = vpack.c.bf16 %v1282_v9, %v1281_v46 }
 0x233   : > { %v3068_v23 = vpop.eup %3067  ;;  %v1223_v63 = vpop.xlane.xlu0 %1222 }
 0x234   : > { %v1249_v19 = vmax.f32 %v1223_v63, 1e-24  ;;  %1659 = vmatprep.mubr.bf16.mxu0 %v1308_v47  ;;  %1404 = vst [vmem:[%s3828_s15 + $0x28] sm:$0xff] %v2619_v57  ;;  %v1284_v2 = vmul.f32 %v3068_v23, %v3686_v44  ;;  %v1283_v6 = vmul.f32 %v3068_v23, %v3683_v41 }
 0x235   : > { %1660 = vmatmul.mubr.bf16.gmra.mxu0 %v1307_v55 }
 0x236   : > { %3075 = vrsqrt.f32 %v1249_v19  ;;  %v2620_v34 = vpack.c.bf16 %v1284_v2, %v1283_v6 }
 0x237   : > { %v3070_v30 = vpop.eup %3069  ;;  %v1226_v11 = vpop.xlane.xlu1 %1225 }
 0x238   : > { %v1250_v15 = vmax.f32 %v1226_v11, 1e-24  ;;  %v1286_v16 = vmul.f32 %v3070_v30, %v3698_v1  ;;  %v1285_v51 = vmul.f32 %v3070_v30, %v3695_v61  ;;  %1405 = vst [vmem:[%s3828_s15 + $0x30] sm:$0xff] %v2620_v34 }
 0x23a   : > { %3077 = vrsqrt.f32 %v1250_v15  ;;  %v1310_v56 = vpack.c.bf16 %v1286_v16, %v1284_v2  ;;  %v1309_v20 = vpack.c.bf16 %v1285_v51, %v1283_v6  ;;  %v2621_v58 = vpack.c.bf16 %v1286_v16, %v1285_v51 }
 0x23b   : > { %v3072_v44 = vpop.eup %3071  ;;  %v1229_v21 = vpop.xlane.xlu0 %1228 }
 0x23c   : > { %v1251_v41 = vmax.f32 %v1229_v21, 1e-24  ;;  %1669 = vmatprep.mubr.bf16.mxu0 %v1310_v56  ;;  %1406 = vst [vmem:[%s3828_s15 + $0x38] sm:$0xff] %v2621_v58  ;;  %v1288_v53 = vmul.f32 %v3072_v44, %v3714_v18  ;;  %v1287_v60 = vmul.f32 %v3072_v44, %v3711_v13 }
 0x23d   : > { %1670 = vmatmul.mubr.bf16.gmra.mxu0 %v1309_v20 }
 0x23e   : > { %3079 = vrsqrt.f32 %v1251_v41  ;;  %v2622_v1 = vpack.c.bf16 %v1288_v53, %v1287_v60 }
 0x23f   : > { %v3074_v61 = vpop.eup %3073  ;;  %v1232_v0 = vpop.xlane.xlu1 %1231 }
 0x240   : > { %v1252_v24 = vmax.f32 %v1232_v0, 1e-24  ;;  %v1290_v25 = vmul.f32 %v3074_v61, %v3727_v35  ;;  %v1289_v26 = vmul.f32 %v3074_v61, %v3723_v28  ;;  %1407 = vst [vmem:[%s3828_s15 + $0x40] sm:$0xff] %v2622_v1 }
 0x242   : > { %3081 = vrsqrt.f32 %v1252_v24  ;;  %v1312_v27 = vpack.c.bf16 %v1290_v25, %v1288_v53  ;;  %v1311_v54 = vpack.c.bf16 %v1289_v26, %v1287_v60  ;;  %v2623_v31 = vpack.c.bf16 %v1290_v25, %v1289_v26 }
 0x243   : > { %v3076_v18 = vpop.eup %3075  ;;  %v1235_v32 = vpop.xlane.xlu0 %1234 }
 0x244   : > { %v1253_v13 = vmax.f32 %v1235_v32, 1e-24  ;;  %1679 = vmatprep.mubr.bf16.mxu0 %v1312_v27  ;;  %1408 = vst [vmem:[%s3828_s15 + $0x48] sm:$0xff] %v2623_v31  ;;  %v1292_v33 = vmul.f32 %v3076_v18, %v3738_v62  ;;  %v1291_v38 = vmul.f32 %v3076_v18, %v3735_v48 }
 0x245   : > { %1680 = vmatmul.mubr.bf16.gmra.mxu0 %v1311_v54 }
 0x246   : > { %3083 = vrsqrt.f32 %v1253_v13  ;;  %v2624_v35 = vpack.c.bf16 %v1292_v33, %v1291_v38 }
 0x247   : > { %v3078_v28 = vpop.eup %3077  ;;  %v1238_v7 = vpop.xlane.xlu1 %1237 }
 0x248   : > { %v1254_v39 = vmax.f32 %v1238_v7, 1e-24  ;;  %v1294_v5 = vmul.f32 %v3078_v28, %v3751_v22  ;;  %v1293_v3 = vmul.f32 %v3078_v28, %v3747_v17  ;;  %1409 = vst [vmem:[%s3828_s15 + $0x50] sm:$0xff] %v2624_v35 }
 0x24a   : > { %3085 = vrsqrt.f32 %v1254_v39  ;;  %v1314_v40 = vpack.c.bf16 %v1294_v5, %v1292_v33  ;;  %v1313_v14 = vpack.c.bf16 %v1293_v3, %v1291_v38  ;;  %v2625_v10 = vpack.c.bf16 %v1294_v5, %v1293_v3 }
 0x24b   : > { %v3080_v62 = vpop.eup %3079 }
 0x24c   : > { %1689 = vmatprep.mubr.bf16.mxu0 %v1314_v40  ;;  %1410 = vst [vmem:[%s3828_s15 + $0x58] sm:$0xff] %v2625_v10  ;;  %v1296_v48 = vmul.f32 %v3080_v62, %v3762_v42  ;;  %v1295_v43 = vmul.f32 %v3080_v62, %v3759_v37 }
 0x24d   : > { %1690 = vmatmul.mubr.bf16.gmra.mxu0 %v1313_v14 }
 0x24e   : > { %v2626_v45 = vpack.c.bf16 %v1296_v48, %v1295_v43 }
 0x24f   : > { %v3082_v9 = vpop.eup %3081 }
 0x250   : > { %v1298_v22 = vmul.f32 %v3082_v9, %v3775_v12  ;;  %v1297_v17 = vmul.f32 %v3082_v9, %v3771_v4  ;;  %1411 = vst [vmem:[%s3828_s15 + $0x60] sm:$0xff] %v2626_v45 }
 0x252   : > { %v1316_v46 = vpack.c.bf16 %v1298_v22, %v1296_v48  ;;  %v1315_v47 = vpack.c.bf16 %v1297_v17, %v1295_v43  ;;  %v2627_v55 = vpack.c.bf16 %v1298_v22, %v1297_v17 }
 0x253   : > { %v3084_v57 = vpop.eup %3083 }
 0x254   : > { %1699 = vmatprep.mubr.bf16.mxu0 %v1316_v46  ;;  %1412 = vst [vmem:[%s3828_s15 + $0x68] sm:$0xff] %v2627_v55  ;;  %v1300_v42 = vmul.f32 %v3084_v57, %v3786_v36  ;;  %v1299_v37 = vmul.f32 %v3084_v57, %v3783_v29  ;;  %v3877_v29 = vld [vmem:[%s4107_s6] ss:$0 sm:$0xff] }
 0x255   : > { %1700 = vmatmul.mubr.bf16.gmra.mxu0 %v1315_v47 }
 0x256   : > { %v2628_v23 = vpack.c.bf16 %v1300_v42, %v1299_v37 }
 0x257   : > { %v3086_v63 = vpop.eup %3085 }
 0x258   : > { %v1302_v12 = vmul.f32 %v3086_v63, %v3799_v8  ;;  %v1301_v4 = vmul.f32 %v3086_v63, %v3795_v59  ;;  %1413 = vst [vmem:[%s3828_s15 + $0x70] sm:$0xff] %v2628_v23 }
 0x25a   : > { %v1318_v19 = vpack.c.bf16 %v1302_v12, %v1300_v42  ;;  %v1317_v2 = vpack.c.bf16 %v1301_v4, %v1299_v37  ;;  %v2629_v6 = vpack.c.bf16 %v1302_v12, %v1301_v4 }
 0x25c   : > { %1709 = vmatprep.mubr.bf16.mxu0 %v1318_v19  ;;  %1414 = vst [vmem:[%s3828_s15 + $0x78] sm:$0xff] %v2629_v6 }
 0x25d   : > { %1710 = vmatmul.mubr.bf16.gmra.mxu0 %v1317_v2  ;;  %v2714_v34 = vpop.f32.mrf.mxu1 }
 0x25f   : > { %v2715_v30 = vpop.f32.mrf.mxu1 }
 0x260   : > { %v2716_v36 = vadd.f32 %v2715_v30, %v2714_v34 }
 0x261   : > { %v2717_v11 = vpop.f32.mrf.mxu1 }
 0x262   : > { %v2046_v15 = vadd.f32 %v2716_v36, %v3877_v29 }
 0x263   : > { %v2718_v8 = vpop.f32.mrf.mxu1 }
 0x264   : > { %v2719_v59 = vadd.f32 %v2718_v8, %v2717_v11 }
 0x266   : > { %v2049_v51 = vadd.f32 %v2719_v59, %v3877_v29 }
 0x268   : > { %v2720_v16 = vpop.f32.mrf.mxu1  ;;  %v2654_v20 = vpack.c.bf16 %v2049_v51, %v2046_v15 }
 0x26a   : > { %v2721_v56 = vpop.f32.mrf.mxu1  ;;  %2655 = vst [vmem:[%s3882_s28] sm:$0xff] %v2654_v20  }
 0x26b   : > { %v2722_v58 = vadd.f32 %v2721_v56, %v2720_v16 }
 0x26c   : > { %v2723_v44 = vpop.f32.mrf.mxu1 }
 0x26d   : > { %v2054_v41 = vadd.f32 %v2722_v58, %v3877_v29 }
 0x26e   : > { %v2724_v21 = vpop.f32.mrf.mxu1 }
 0x26f   : > { %v2725_v53 = vadd.f32 %v2724_v21, %v2723_v44 }
 0x271   : > { %v2726_v60 = vpop.f32.mrf.mxu1  ;;  %v2057_v1 = vadd.f32 %v2725_v53, %v3877_v29 }
 0x273   : > { %v2727_v61 = vpop.f32.mrf.mxu1  ;;  %v2659_v0 = vpack.c.bf16 %v2057_v1, %v2054_v41 }
 0x274   : > { %v2728_v24 = vadd.f32 %v2727_v61, %v2726_v60 }
 0x275   : > { %v2729_v25 = vpop.f32.mrf.mxu1  ;;  %2691 = vst [vmem:[%s3882_s28 + $0x8] sm:$0xff] %v2659_v0  }
 0x276   : > { %v2062_v27 = vadd.f32 %v2728_v24, %v3877_v29 }
 0x277   : > { %v2730_v26 = vpop.f32.mrf.mxu1 }
 0x278   : > { %v2731_v54 = vadd.f32 %v2730_v26, %v2729_v25 }
 0x27a   : > { %v2732_v31 = vpop.f32.mrf.mxu1  ;;  %v2065_v18 = vadd.f32 %v2731_v54, %v3877_v29 }
 0x27c   : > { %v2733_v32 = vpop.f32.mrf.mxu1  ;;  %v2664_v13 = vpack.c.bf16 %v2065_v18, %v2062_v27 }
 0x27d   : > { %v2734_v33 = vadd.f32 %v2733_v32, %v2732_v31 }
 0x27e   : > { %v2735_v38 = vpop.f32.mrf.mxu1  ;;  %2692 = vst [vmem:[%s3882_s28 + $0x10] sm:$0xff] %v2664_v13  }
 0x27f   : > { %v2070_v28 = vadd.f32 %v2734_v33, %v3877_v29 }
 0x280   : > { %v2736_v35 = vpop.f32.mrf.mxu1 }
 0x281   : > { %v2737_v7 = vadd.f32 %v2736_v35, %v2735_v38 }
 0x282   : > { %v2738_v39 = vpop.f32.mrf.mxu1 }
 0x283   : > { %v2073_v5 = vadd.f32 %v2737_v7, %v3877_v29 }
 0x284   : > { %v2739_v3 = vpop.f32.mrf.mxu1 }
 0x285   : > { %v2669_v40 = vpack.c.bf16 %v2073_v5, %v2070_v28  ;;  %v2740_v14 = vadd.f32 %v2739_v3, %v2738_v39 }
 0x286   : > { %v2741_v10 = vpop.f32.mrf.mxu1 }
 0x287   : > { %2693 = vst [vmem:[%s3882_s28 + $0x18] sm:$0xff] %v2669_v40   ;;  %v2078_v48 = vadd.f32 %v2740_v14, %v3877_v29 }
 0x288   : > { %v2742_v62 = vpop.f32.mrf.mxu1 }
 0x289   : > { %v2743_v43 = vadd.f32 %v2742_v62, %v2741_v10 }
 0x28a   : > { %v2744_v45 = vpop.f32.mrf.mxu1 }
 0x28b   : > { %v2081_v9 = vadd.f32 %v2743_v43, %v3877_v29 }
 0x28c   : > { %v2745_v22 = vpop.f32.mrf.mxu1 }
 0x28d   : > { %v2674_v17 = vpack.c.bf16 %v2081_v9, %v2078_v48  ;;  %v2746_v46 = vadd.f32 %v2745_v22, %v2744_v45 }
 0x28e   : > { %v2747_v47 = vpop.f32.mrf.mxu1 }
 0x28f   : > { %2694 = vst [vmem:[%s3882_s28 + $0x20] sm:$0xff] %v2674_v17   ;;  %v2086_v57 = vadd.f32 %v2746_v46, %v3877_v29 }
 0x290   : > { %v2748_v55 = vpop.f32.mrf.mxu1 }
 0x291   : > { %v2749_v42 = vadd.f32 %v2748_v55, %v2747_v47 }
 0x292   : > { %v2750_v37 = vpop.f32.mrf.mxu1 }
 0x293   : > { %v2089_v23 = vadd.f32 %v2749_v42, %v3877_v29 }
 0x294   : > { %v2751_v63 = vpop.f32.mrf.mxu1 }
 0x295   : > { %v2679_v12 = vpack.c.bf16 %v2089_v23, %v2086_v57  ;;  %v2752_v4 = vadd.f32 %v2751_v63, %v2750_v37 }
 0x296   : > { %v2753_v19 = vpop.f32.mrf.mxu1 }
 0x297   : > { %2695 = vst [vmem:[%s3882_s28 + $0x28] sm:$0xff] %v2679_v12   ;;  %v2094_v6 = vadd.f32 %v2752_v4, %v3877_v29 }
 0x298   : > { %v2754_v2 = vpop.f32.mrf.mxu1 }
 0x299   : > { %v2755_v34 = vadd.f32 %v2754_v2, %v2753_v19 }
 0x29a   : > { %v2756_v30 = vpop.f32.mrf.mxu1 }
 0x29b   : > { %v2097_v36 = vadd.f32 %v2755_v34, %v3877_v29 }
 0x29c   : > { %v2757_v11 = vpop.f32.mrf.mxu1 }
 0x29d   : > { %v2684_v8 = vpack.c.bf16 %v2097_v36, %v2094_v6  ;;  %v2758_v15 = vadd.f32 %v2757_v11, %v2756_v30 }
 0x29e   : > { %v2759_v59 = vpop.f32.mrf.mxu1 }
 0x29f   : > { %2696 = vst [vmem:[%s3882_s28 + $0x30] sm:$0xff] %v2684_v8   ;;  %v2102_v51 = vadd.f32 %v2758_v15, %v3877_v29 }
 0x2a0   : > { %v2760_v16 = vpop.f32.mrf.mxu1 }
 0x2a1   : > { %v2761_v56 = vadd.f32 %v2760_v16, %v2759_v59 }
 0x2a3   : > { %v2105_v20 = vadd.f32 %v2761_v56, %v3877_v29 }
 0x2a5   : > { %v2689_v58 = vpack.c.bf16 %v2105_v20, %v2102_v51 }
 0x2a7   : > { %2697 = vst [vmem:[%s3882_s28 + $0x38] sm:$0xff] %v2689_v58  }
 0x2a8   : > { %3232 = shalt.err (!%p3229_p5)
}
 0x2a9   : > { %s3233_s28 = scalar_lea.hbm %s3911_s21, 1024  ;;  %s3237_s26 = scalar_lea.hbm %s4109_s8, 2048 }
 0x2aa   : > { %p3234_p0 = scmp.ne.s32.totalorder %s3911_s21, %s3233_s28  ;;  %p3238_p10 = scmp.lt.s32.totalorder %s3911_s21, %s4109_s8 }
 0x2ab   : > { %p3239_p1 = scmp.lt.s32.totalorder %s3237_s26, %s3233_s28 }
 0x2ac   : > { %p3235_p7 = pnand %p3234_p0, %p4139_p8 }
 0x2ad   : > { %p3240_p2 = por %p3239_p1, %p3238_p10 }
 0x2ae   : > { %p3236_p11 = pneg %p3235_p7 }
 0x2b0   : > { %p3241_p4 = pnand %p3240_p2, %p3236_p11 }
 0x2b2   : > { %3244 = shalt.err (!%p3241_p4)
}
 0x2b3   : > { %s3361_s29 = smov 64   ;;  %s3362_s18 = smov 4  }
 0x2b4   : > { %2781 = dma.vmem_to_hbm [thread:$0]  (%p4139_p8), %s3913_s20, 1024, %s3911_s21, %s3917_s24, %s3361_s29, %s3361_s29, %s3362_s18  }
 0x2b5   : > { %s3945_s22 = scalar_lea.hbm %s4110_s9, %s2650_s3  ;;  %s2246_s28 = sshll.u32 %s3828_s15, 4  ;;  %s3948_s28 = int_to_ptr.vmem [resolvable:$true] %s2246_s28 }
 0x2b6   : > { %s3245_s26 = scalar_lea.vmem %s3948_s28, 2048  ;;  %s3363_s1 = smov [#allocation14]  }
 0x2b7   : > { %p3246_p12 = scmp.ne.s32.totalorder %s3948_s28, %s3245_s26  ;;  %s3249_s17 = sshll.u32 %s3363_s1, 4  ;;  %s3250_s17 = int_to_ptr.vmem [resolvable:$false] %s3249_s17 }
 0x2b8   : > { %s3251_s20 = scalar_lea.vmem %s3250_s17, 4096  ;;  %p3252_p9 = scmp.lt.s32.totalorder %s3948_s28, %s3250_s17 }
 0x2b9   : > { %p3247_p6 = pnand %p3246_p12, %p4139_p8  ;;  %p3253_p13 = scmp.lt.s32.totalorder %s3251_s20, %s3245_s26 }
 0x2bb   : > { %p3248_p3 = pneg %p3247_p6  ;;  %p3254_p5 = por %p3253_p13, %p3252_p9 }
 0x2bd   : > { %p3255_p0 = pnand %p3254_p5, %p3248_p3 }
 0x2bf   : > { %3258 = shalt.err (!%p3255_p0)
}
 0x2c0   : > { %s3259_s15 = scalar_lea.hbm %s3945_s22, 2048  ;;  %s3263_s29 = scalar_lea.hbm %s4110_s9, 4096 }
 0x2c1   : > { %p3260_p7 = scmp.ne.s32.totalorder %s3945_s22, %s3259_s15  ;;  %p3264_p1 = scmp.lt.s32.totalorder %s3945_s22, %s4110_s9 }
 0x2c2   : > { %p3265_p2 = scmp.lt.s32.totalorder %s3263_s29, %s3259_s15 }
 0x2c3   : > { %p3261_p11 = pnand %p3260_p7, %p4139_p8 }
 0x2c4   : > { %p3266_p4 = por %p3265_p2, %p3264_p1 }
 0x2c5   : > { %p3262_p10 = pneg %p3261_p11 }
 0x2c7   : > { %p3267_p12 = pnand %p3266_p4, %p3262_p10 }
 0x2c9   : > { %3270 = shalt.err (!%p3267_p12)
}
 0x2ca   : > { %s3364_s23 = smov 128   ;;  %s3365_s26 = smov 8   ;;  %v1752_v29 = vld [vmem:[%s4105_s4] sm:$0x3] }
 0x2cb   : > { %2782 = dma.vmem_to_hbm [thread:$0]  (%p4139_p8), %s3948_s28, 2048, %s3945_s22, %s3917_s24, %s3364_s23, %s3364_s23, %s3365_s26   ;;  %v3977_v44 = vrot.slane %v1752_v29, %v515_v50  ;;  %v3981_v53 = vrot.slane %v1752_v29, %v519_v52 }
 0x2cc   : > { %s2435_s20 = sshll.u32 %s3570_s2, 8  ;;  %s2647_s22 = sshll.u32 %s3440_s13, 12 }
 0x2cd   : > { %s3984_s24 = scalar_lea.vmem [#allocation11], %s2435_s20  ;;  %s4051_s3 = scalar_lea.hbm %s4108_s7, %s2647_s22 }
 0x2ce   : > { %s2213_s28 = sshll.u32 %s3984_s24, 4  ;;  %s2189_s13 = scalar_lea.sflag [#allocation4], %s3570_s2  ;;  %s4053_s28 = int_to_ptr.vmem [resolvable:$true] %s2213_s28 }
 0x2cf   : > { %s3271_s29 = scalar_lea.vmem %s4053_s28, 4096  ;;  %s3366_s18 = smov [#allocation11]  }
 0x2d0   : > { %p3272_p6 = scmp.ne.s32.totalorder %s4053_s28, %s3271_s29  ;;  %s3275_s25 = sshll.u32 %s3366_s18, 4  ;;  %s3276_s25 = int_to_ptr.vmem [resolvable:$false] %s3275_s25 }
 0x2d1   : > { %s3277_s23 = scalar_lea.vmem %s3276_s25, 8192  ;;  %p3278_p13 = scmp.lt.s32.totalorder %s4053_s28, %s3276_s25 }
 0x2d2   : > { %p3273_p3 = pnand %p3272_p6, %p4139_p8  ;;  %p3279_p5 = scmp.lt.s32.totalorder %s3277_s23, %s3271_s29 }
 0x2d4   : > { %p3274_p9 = pneg %p3273_p3  ;;  %p3280_p0 = por %p3279_p5, %p3278_p13 }
 0x2d6   : > { %p3281_p7 = pnand %p3280_p0, %p3274_p9 }
 0x2e5   : > { %v1641_v21 = vpop.f32.mrf.mxu0 }
 0x2e6   : > { %v1720_v41 = vmul.f32 50.0, %v1641_v21 }
 0x2e7   : > { %v1643_v60 = vpop.f32.mrf.mxu0 }
 0x2e8   : > { %v1764_v1 = vadd.f32 %v3977_v44, %v1720_v41  ;;  %v1721_v61 = vmul.f32 50.0, %v1643_v60 }
 0x2e9   : > { %v1645_v0 = vpop.f32.mrf.mxu0 }
 0x2ea   : > { %1796 = vst [vmem:[%s3984_s24] sm:$0xff] %v1764_v1  ;;  %v1765_v50 = vadd.f32 %v3981_v53, %v1721_v61  ;;  %v1722_v24 = vmul.f32 50.0, %v1645_v0 }
 0x2eb   : > { %v1647_v25 = vpop.f32.mrf.mxu0 }
 0x2ec   : > { %1797 = vst [vmem:[%s3984_s24 + $0x8] sm:$0xff] %v1765_v50  ;;  %v1766_v49 = vadd.f32 %v3977_v44, %v1722_v24  ;;  %v1723_v52 = vmul.f32 50.0, %v1647_v25 }
 0x2ed   : > { %v1651_v26 = vpop.f32.mrf.mxu0 }
 0x2ee   : > { %1798 = vst [vmem:[%s3984_s24 + $0x10] sm:$0xff] %v1766_v49  ;;  %v1767_v27 = vadd.f32 %v3981_v53, %v1723_v52  ;;  %v1724_v54 = vmul.f32 50.0, %v1651_v26 }
 0x2ef   : > { %v1653_v31 = vpop.f32.mrf.mxu0 }
 0x2f0   : > { %1799 = vst [vmem:[%s3984_s24 + $0x18] sm:$0xff] %v1767_v27  ;;  %v1768_v18 = vadd.f32 %v3977_v44, %v1724_v54  ;;  %v1725_v32 = vmul.f32 50.0, %v1653_v31 }
 0x2f1   : > { %v1655_v13 = vpop.f32.mrf.mxu0 }
 0x2f2   : > { %1800 = vst [vmem:[%s3984_s24 + $0x20] sm:$0xff] %v1768_v18  ;;  %v1769_v33 = vadd.f32 %v3981_v53, %v1725_v32  ;;  %v1726_v38 = vmul.f32 50.0, %v1655_v13 }
 0x2f3   : > { %v1657_v35 = vpop.f32.mrf.mxu0 }
 0x2f4   : > { %1801 = vst [vmem:[%s3984_s24 + $0x28] sm:$0xff] %v1769_v33  ;;  %v1770_v28 = vadd.f32 %v3977_v44, %v1726_v38  ;;  %v1727_v7 = vmul.f32 50.0, %v1657_v35 }
 0x2f5   : > { %v1661_v39 = vpop.f32.mrf.mxu0 }
 0x2f6   : > { %1802 = vst [vmem:[%s3984_s24 + $0x30] sm:$0xff] %v1770_v28  ;;  %v1771_v5 = vadd.f32 %v3981_v53, %v1727_v7  ;;  %v1728_v3 = vmul.f32 50.0, %v1661_v39 }
 0x2f7   : > { %v1663_v40 = vpop.f32.mrf.mxu0 }
 0x2f8   : > { %1803 = vst [vmem:[%s3984_s24 + $0x38] sm:$0xff] %v1771_v5  ;;  %v1772_v14 = vadd.f32 %v3977_v44, %v1728_v3  ;;  %v1729_v10 = vmul.f32 50.0, %v1663_v40 }
 0x2f9   : > { %v1665_v62 = vpop.f32.mrf.mxu0 }
 0x2fa   : > { %1804 = vst [vmem:[%s3984_s24 + $0x40] sm:$0xff] %v1772_v14  ;;  %v1773_v48 = vadd.f32 %v3981_v53, %v1729_v10  ;;  %v1730_v43 = vmul.f32 50.0, %v1665_v62 }
 0x2fb   : > { %v1667_v45 = vpop.f32.mrf.mxu0 }
 0x2fc   : > { %1805 = vst [vmem:[%s3984_s24 + $0x48] sm:$0xff] %v1773_v48  ;;  %v1774_v9 = vadd.f32 %v3977_v44, %v1730_v43  ;;  %v1731_v22 = vmul.f32 50.0, %v1667_v45 }
 0x2fd   : > { %v1671_v17 = vpop.f32.mrf.mxu0 }
 0x2fe   : > { %1806 = vst [vmem:[%s3984_s24 + $0x50] sm:$0xff] %v1774_v9  ;;  %v1775_v46 = vadd.f32 %v3981_v53, %v1731_v22  ;;  %v1732_v47 = vmul.f32 50.0, %v1671_v17 }
 0x2ff   : > { %v1673_v55 = vpop.f32.mrf.mxu0 }
 0x300   : > { %1807 = vst [vmem:[%s3984_s24 + $0x58] sm:$0xff] %v1775_v46  ;;  %v1776_v57 = vadd.f32 %v3977_v44, %v1732_v47  ;;  %v1733_v42 = vmul.f32 50.0, %v1673_v55 }
 0x301   : > { %v1675_v37 = vpop.f32.mrf.mxu0 }
 0x302   : > { %1808 = vst [vmem:[%s3984_s24 + $0x60] sm:$0xff] %v1776_v57  ;;  %v1777_v23 = vadd.f32 %v3981_v53, %v1733_v42  ;;  %v1734_v63 = vmul.f32 50.0, %v1675_v37 }
 0x303   : > { %v1677_v12 = vpop.f32.mrf.mxu0 }
 0x304   : > { %1809 = vst [vmem:[%s3984_s24 + $0x68] sm:$0xff] %v1777_v23  ;;  %v1778_v4 = vadd.f32 %v3977_v44, %v1734_v63  ;;  %v1735_v19 = vmul.f32 50.0, %v1677_v12 }
 0x305   : > { %v1681_v2 = vpop.f32.mrf.mxu0 }
 0x306   : > { %1810 = vst [vmem:[%s3984_s24 + $0x70] sm:$0xff] %v1778_v4  ;;  %v1779_v6 = vadd.f32 %v3981_v53, %v1735_v19  ;;  %v1736_v34 = vmul.f32 50.0, %v1681_v2 }
 0x307   : > { %v1683_v30 = vpop.f32.mrf.mxu0 }
 0x308   : > { %1811 = vst [vmem:[%s3984_s24 + $0x78] sm:$0xff] %v1779_v6  ;;  %v1780_v36 = vadd.f32 %v3977_v44, %v1736_v34  ;;  %v1737_v11 = vmul.f32 50.0, %v1683_v30 }
 0x309   : > { %v1685_v8 = vpop.f32.mrf.mxu0 }
 0x30a   : > { %1812 = vst [vmem:[%s3984_s24 + $0x80] sm:$0xff] %v1780_v36  ;;  %v1781_v15 = vadd.f32 %v3981_v53, %v1737_v11  ;;  %v1738_v59 = vmul.f32 50.0, %v1685_v8 }
 0x30b   : > { %v1687_v16 = vpop.f32.mrf.mxu0 }
 0x30c   : > { %1813 = vst [vmem:[%s3984_s24 + $0x88] sm:$0xff] %v1781_v15  ;;  %v1782_v51 = vadd.f32 %v3977_v44, %v1738_v59  ;;  %v1739_v56 = vmul.f32 50.0, %v1687_v16 }
 0x30d   : > { %v1691_v20 = vpop.f32.mrf.mxu0 }
 0x30e   : > { %1814 = vst [vmem:[%s3984_s24 + $0x90] sm:$0xff] %v1782_v51  ;;  %v1783_v58 = vadd.f32 %v3981_v53, %v1739_v56  ;;  %v1740_v29 = vmul.f32 50.0, %v1691_v20 }
 0x30f   : > { %v1693_v21 = vpop.f32.mrf.mxu0 }
 0x310   : > { %1815 = vst [vmem:[%s3984_s24 + $0x98] sm:$0xff] %v1783_v58  ;;  %v1784_v41 = vadd.f32 %v3977_v44, %v1740_v29  ;;  %v1741_v60 = vmul.f32 50.0, %v1693_v21 }
 0x311   : > { %v1695_v1 = vpop.f32.mrf.mxu0 }
 0x312   : > { %1816 = vst [vmem:[%s3984_s24 + $0xa0] sm:$0xff] %v1784_v41  ;;  %v1785_v61 = vadd.f32 %v3981_v53, %v1741_v60  ;;  %v1742_v0 = vmul.f32 50.0, %v1695_v1 }
 0x313   : > { %v1697_v50 = vpop.f32.mrf.mxu0 }
 0x314   : > { %1817 = vst [vmem:[%s3984_s24 + $0xa8] sm:$0xff] %v1785_v61  ;;  %v1786_v24 = vadd.f32 %v3977_v44, %v1742_v0  ;;  %v1743_v25 = vmul.f32 50.0, %v1697_v50 }
 0x315   : > { %v1701_v49 = vpop.f32.mrf.mxu0 }
 0x316   : > { %1818 = vst [vmem:[%s3984_s24 + $0xb0] sm:$0xff] %v1786_v24  ;;  %v1787_v52 = vadd.f32 %v3981_v53, %v1743_v25  ;;  %v1744_v26 = vmul.f32 50.0, %v1701_v49 }
 0x317   : > { %v1703_v27 = vpop.f32.mrf.mxu0 }
 0x318   : > { %1819 = vst [vmem:[%s3984_s24 + $0xb8] sm:$0xff] %v1787_v52  ;;  %v1788_v54 = vadd.f32 %v3977_v44, %v1744_v26  ;;  %v1745_v31 = vmul.f32 50.0, %v1703_v27 }
 0x319   : > { %v1705_v18 = vpop.f32.mrf.mxu0 }
 0x31a   : > { %1820 = vst [vmem:[%s3984_s24 + $0xc0] sm:$0xff] %v1788_v54  ;;  %v1789_v32 = vadd.f32 %v3981_v53, %v1745_v31  ;;  %v1746_v13 = vmul.f32 50.0, %v1705_v18 }
 0x31b   : > { %v1707_v33 = vpop.f32.mrf.mxu0 }
 0x31c   : > { %1821 = vst [vmem:[%s3984_s24 + $0xc8] sm:$0xff] %v1789_v32  ;;  %v1790_v38 = vadd.f32 %v3977_v44, %v1746_v13  ;;  %v1747_v35 = vmul.f32 50.0, %v1707_v33 }
 0x31d   : > { %v1711_v28 = vpop.f32.mrf.mxu0 }
 0x31e   : > { %1822 = vst [vmem:[%s3984_s24 + $0xd0] sm:$0xff] %v1790_v38  ;;  %v1791_v7 = vadd.f32 %v3981_v53, %v1747_v35  ;;  %v1748_v39 = vmul.f32 50.0, %v1711_v28 }
 0x31f   : > { %v1713_v5 = vpop.f32.mrf.mxu0 }
 0x320   : > { %1823 = vst [vmem:[%s3984_s24 + $0xd8] sm:$0xff] %v1791_v7  ;;  %v1792_v3 = vadd.f32 %v3977_v44, %v1748_v39  ;;  %v1749_v40 = vmul.f32 50.0, %v1713_v5 }
 0x321   : > { %v1715_v14 = vpop.f32.mrf.mxu0 }
 0x322   : > { %1824 = vst [vmem:[%s3984_s24 + $0xe0] sm:$0xff] %v1792_v3  ;;  %v1793_v10 = vadd.f32 %v3981_v53, %v1749_v40  ;;  %v1750_v62 = vmul.f32 50.0, %v1715_v14 }
 0x323   : > { %v1717_v48 = vpop.f32.mrf.mxu0 }
 0x324   : > { %1825 = vst [vmem:[%s3984_s24 + $0xe8] sm:$0xff] %v1793_v10  ;;  %v1794_v43 = vadd.f32 %v3977_v44, %v1750_v62  ;;  %v1751_v45 = vmul.f32 50.0, %v1717_v48 }
 0x326   : > { %1826 = vst [vmem:[%s3984_s24 + $0xf0] sm:$0xff] %v1794_v43  ;;  %v1795_v9 = vadd.f32 %v3981_v53, %v1751_v45 }
 0x328   : > { %1827 = vst [vmem:[%s3984_s24 + $0xf8] sm:$0xff] %v1795_v9 }
 0x329   : > { %3284 = shalt.err (!%p3281_p7)
}
 0x32a   : > { %s3285_s26 = scalar_lea.hbm %s4051_s3, 4096  ;;  %s3289_s20 = scalar_lea.hbm %s4108_s7, 8192 }
 0x32b   : > { %p3286_p11 = scmp.ne.s32.totalorder %s4051_s3, %s3285_s26  ;;  %p3290_p2 = scmp.lt.s32.totalorder %s4051_s3, %s4108_s7 }
 0x32c   : > { %p3291_p4 = scmp.lt.s32.totalorder %s3289_s20, %s3285_s26 }
 0x32d   : > { %p3287_p10 = pnand %p3286_p11, %p4139_p8 }
 0x32e   : > { %p3292_p12 = por %p3291_p4, %p3290_p2 }
 0x32f   : > { %p3288_p1 = pneg %p3287_p10 }
 0x331   : > { %p3293_p6 = pnand %p3292_p12, %p3288_p1 }
 0x333   : > { %3296 = shalt.err (!%p3293_p6)
}
 0x334   : > { %s3367_s15 = smov 256   ;;  %s3368_s21 = smov 16  }
 0x335   : > { %2780 = dma.vmem_to_hbm [thread:$0]  (%p4139_p8), %s4053_s28, 4096, %s4051_s3, %s2189_s13, %s3367_s15, %s3367_s15, %s3368_s21  }
 0x336 PF: > { %s2261_s29 = sand.u32 1, %s3335_s30   ;;  %p4140_p3 = scmp.ne.s32.totalorder %s4122_s16, 0 }
 0x337   : > { %p4141_p9 = scmp.ge.s32.totalorder %s3347_s12, 2  ;;  %s2262_s18 = scalar_lea.sflag [#allocation4], %s2261_s29 }
 0x339   : > { %p2804_p13 = pnand %p4141_p9, %p4140_p3 }
 0x33b   : > { %p2805_p5 = pneg %p2804_p13 }
 0x33d   : > { %3326 = dma.done.wait (%p2805_p5), %s2262_s18, 4096  }
 0x33e   : > { %3328 = vsyncadd (%p2805_p5), %s2262_s18, 4294963200  ;;  %s4142_s25 = sadd.s32 4294967294, %s3347_s12  }
 0x33f   : > { %s2270_s23 = sand.u32 1, %s4142_s25  }
 0x340   : > { %s2271_s26 = scalar_lea.sflag [#allocation13], %s2270_s23 }
 0x341   : > { %3330 = dma.done.wait (%p2805_p5), %s2271_s26, 3072  }
 0x342   : > { %3332 = vsyncadd (%p2805_p5), %s2271_s26, 4294964224  ;;  %p28_p8 = scmp.ge.s32.totalorder %s3512_s27, 4   ;;  %s4143_s30 = smov %s3339_s10 }
 0x343   : > { %s4144_s10 = smov %s3343_s11  ;;  %s4145_s11 = smov %s3521_s19 }
 0x344   : > { %s4146_s12 = smov %s3512_s27  ;;  %30 = sbr.rel (!%p28_p8) target bundleno = 13 (0xd), region = 141 }
 0x349   :  { %2285 = vsyncpa [#allocation3], 1 }
 0x34a   :  { %2287 = vsyncpa [#allocation3 + $0x1], 1 }
 0x34b   :  { %2288 = vsyncpa [#allocation6], 1 }
 0x34c   :  { %2289 = vsyncpa [#allocation9], 1 }
 0x34d   :  { %2290 = vsyncpa [#allocation4], 1 }
 0x34e   :  { %2292 = vsyncpa [#allocation4 + $0x1], 1 }
 0x34f   :  { %2293 = vsyncpa [#allocation13], 1 }
 0x350   :  { %2295 = vsyncpa [#allocation13 + $0x1], 1 }

// kernel: tpu_custom_call.1
= control target key start
LH: loop header
LB: loop body
LE: loop exit
PB: predicated region body
PF: predicated region fallthrough
CT: control target
= control target key end

     0   :  { %s4101_s0 = inlined_call_operand.hbm [shape: bf16[256,256], index: 0, kind: input, shape index: {}]   ;;  %s4102_s1 = inlined_call_operand.hbm [shape: bf16[256,512], index: 1, kind: input, shape index: {}]   ;;  %s4103_s2 = inlined_call_operand.hbm [shape: f32[1,512], index: 2, kind: input, shape index: {}]   ;;  %s4104_s3 = inlined_call_operand.hbm [shape: bf16[256,256], index: 3, kind: input, shape index: {}]   ;;  %s4105_s4 = inlined_call_operand.vmem [shape: f32[1,256], index: 4, kind: input, shape index: {}]   ;;  %s4106_s5 = inlined_call_operand.hbm [shape: bf16[256,128], index: 5, kind: input, shape index: {}]   ;;  %s4107_s6 = inlined_call_operand.vmem [shape: f32[1,128], index: 6, kind: input, shape index: {}]   ;;  %s4108_s7 = inlined_call_operand.hbm [shape: f32[256,256], index: 7, kind: output, shape index: {0}]   ;;  %s4109_s8 = inlined_call_operand.hbm [shape: bf16[256,128], index: 8, kind: output, shape index: {1}]   ;;  %s4110_s9 = inlined_call_operand.hbm [shape: bf16[256,256], index: 9, kind: output, shape index: {2}]  }
   0x1   :  { %4118 = sst [smem:[#allocation20_spill]] %s4102_s1 }
   0x2   :  { %4119 = sst [smem:[#allocation21_spill]] %s4103_s2 }
   0x3   :  { %4120 = sst [smem:[#allocation22_spill]] %s4104_s3 }
   0x4   :  { %15 = vsyncpa [#allocation3], 0 }
   0x5   :  { %17 = vsyncpa [#allocation3 + $0x1], 0 }
   0x6   :  { %18 = vsyncpa [#allocation6], 0 }
   0x7   :  { %19 = vsyncpa [#allocation9], 0 }
   0x8   :  { %20 = vsyncpa [#allocation4], 0 }
   0x9   :  { %22 = vsyncpa [#allocation4 + $0x1], 0 }
   0xa   :  { %23 = vsyncpa [#allocation13], 0 }
   0xb   :  { %25 = vsyncpa [#allocation13 + $0x1], 0  ;;  %s3419_s30 = smov 0   ;;  %s3421_s10 = smov 0  }
   0xc   :  { %s3423_s11 = smov 0   ;;  %s3425_s12 = smov 0  }
   0xd LB: > { %s3440_s13 = sadd.s32 4294967295, %s3347_s12   ;;  %s4114_s14 = sadd.s32 4294967294, %s3347_s12   ;;  %s3347_s12 = sphi %s3425_s12, %s4146_s12   ;;  %s3343_s11 = sphi %s3423_s11, %s4145_s11   ;;  %s3339_s10 = sphi %s3421_s10, %s4144_s10   ;;  %s3335_s30 = sphi %s3419_s30, %s4143_s30  }
   0xe   : > { %p51_p0 = scmp.ne.s32.totalorder %s3339_s10, %s3335_s30  ;;  %p4111_p1 = scmp.eq.s32.totalorder %s3440_s13, 0 }
   0xf   : > { %p207_p3 = scmp.eq.s32.totalorder %s4114_s14, 1  ;;  %p2419_p5 = scmp.ge.s32.totalorder %s3347_s12, 1 }
  0x10   : > { %p3451_p4 = por %p4111_p1, %p51_p0  ;;  %p266_p7 = scmp.lt.s32.totalorder %s3347_s12, 3 }
  0x11   : > { %p3456_p6 = por %p207_p3, %p51_p0  ;;  %s3349_s18 = smov [#allocation5]  }
  0x12   : > { %s4121_s15 = scalar_select %p3451_p4, 1, 0 }
  0x13   : > { %s4122_s16 = scalar_select %p3456_p6, 1, 0 }
  0x14   : > { %p3461_p8 = pnand %p2419_p5, %p266_p7  ;;  %s278_s19 = sshll.u32 %s3349_s18, 4  ;;  %s279_s19 = int_to_ptr.vmem [resolvable:$true] %s278_s19 }
  0x15   : > { %s3350_s21 = smov [#allocation8]   ;;  %s3098_s23 = scalar_lea.vmem %s279_s19, 8192 }
  0x16   : > { %s4123_s17 = scalar_select %p3461_p8, 1, 0 }
  0x17   : > { %p2786_p9 = pneg %p3461_p8  ;;  %s302_s22 = sshll.u32 %s3350_s21, 4  ;;  %s303_s22 = int_to_ptr.vmem [resolvable:$true] %s302_s22 }
  0x18   : > { %p3099_p13 = scmp.ne.s32.totalorder %s279_s19, %s3098_s23  ;;  %p3106_p5 = scmp.lt.s32.totalorder %s279_s19, %s279_s19 }
  0x19   : > { %p3470_p11 = pnand %p2786_p9, %p4111_p1  ;;  %p3107_p7 = scmp.lt.s32.totalorder %s3098_s23, %s3098_s23 }
  0x1b   : > { %p3089_p12 = pneg %p3470_p11  ;;  %p3108_p10 = por %p3107_p7, %p3106_p5 }
  0x1d   : > { %p3101_p0 = pnand %p3099_p13, %p3089_p12 }
  0x1f   : > { %p3102_p3 = pneg %p3101_p0 }
  0x21   : > { %p3109_p9 = pnand %p3108_p10, %p3102_p3 }
  0x23   : > { %3112 = shalt.err (!%p3109_p9)
}
  0x24   : > { %s3351_s24 = smov 256   ;;  %s3352_s25 = smov 16  }
  0x25   : > { %s4125_s1 = sld [smem:[#allocation20_spill]]  ;;  %s3124_s28 = scalar_lea.vmem %s303_s22, 4096 }
  0x26   : > { %p3125_p1 = scmp.ne.s32.totalorder %s303_s22, %s3124_s28  ;;  %p3132_p2 = scmp.lt.s32.totalorder %s303_s22, %s303_s22 }
  0x27   : > { %p3133_p6 = scmp.lt.s32.totalorder %s3124_s28, %s3124_s28 }
  0x28   : > { %p3127_p13 = pnand %p3125_p1, %p3089_p12 }
  0x29   : > { %p3134_p5 = por %p3133_p6, %p3132_p2 }
  0x2a   : > { %p3128_p0 = pneg %p3127_p13 }
  0x2b   : > { %2789 = dma.hbm_to_vmem [thread:$0]  (!%p3470_p11), %s4125_s1, 8192, %s279_s19, [#allocation6], %s3351_s24, %s3351_s24, %s3352_s25  }
  0x2c   : > { %p3135_p10 = pnand %p3134_p5, %p3128_p0 }
  0x2e   : > { %3138 = shalt.err (!%p3135_p10)
}
  0x2f   : > { %s4115_s29 = smov 128   ;;  %s4116_s18 = smov 8  }
  0x30   : > { %s4126_s3 = sld [smem:[#allocation22_spill]]  ;;  %s3355_s23 = smov [#allocation7]  }
  0x31   : > { %s292_s24 = sshll.u32 %s3355_s23, 4  ;;  %s3356_s25 = smov [#allocation10]   ;;  %s293_s24 = int_to_ptr.vmem [resolvable:$true] %s292_s24 }
  0x32   : > { %s318_s26 = sshll.u32 %s3356_s25, 4  ;;  %s3150_s27 = scalar_lea.vmem %s293_s24, 64  ;;  %s319_s26 = int_to_ptr.vmem [resolvable:$true] %s318_s26 }
  0x33   : > { %p3151_p1 = scmp.ne.s32.totalorder %s293_s24, %s3150_s27  ;;  %p3158_p3 = scmp.lt.s32.totalorder %s293_s24, %s293_s24 }
  0x34   : > { %p3159_p7 = scmp.lt.s32.totalorder %s3150_s27, %s3150_s27 }
  0x35   : > { %p3153_p2 = pnand %p3151_p1, %p3089_p12 }
  0x36   : > { %2795 = dma.hbm_to_vmem [thread:$0]  (!%p3470_p11), %s4126_s3, 4096, %s303_s22, [#allocation9], %s4115_s29, %s4115_s29, %s4116_s18  }
  0x37   : > { %p3154_p6 = pneg %p3153_p2  ;;  %p3160_p9 = por %p3159_p7, %p3158_p3 }
  0x39   : > { %p3161_p13 = pnand %p3160_p9, %p3154_p6 }
  0x3b   : > { %3164 = shalt.err (!%p3161_p13)
}
  0x3c   : > { %s4127_s2 = sld [smem:[#allocation21_spill]]  ;;  %s3176_s19 = scalar_lea.vmem %s319_s26, 2048 }
  0x3d   : > { %p3177_p0 = scmp.ne.s32.totalorder %s319_s26, %s3176_s19  ;;  %p3184_p1 = scmp.lt.s32.totalorder %s319_s26, %s319_s26 }
  0x3e   : > { %p3185_p2 = scmp.lt.s32.totalorder %s3176_s19, %s3176_s19 }
  0x3f   : > { %p3179_p5 = pnand %p3177_p0, %p3089_p12 }
  0x40   : > { %p3186_p4 = por %p3185_p2, %p3184_p1 }
  0x41   : > { %p3180_p10 = pneg %p3179_p5 }
  0x42   : > { %2792 = dma.hbm_to_vmem [thread:$0]  (!%p3470_p11), %s4127_s2, 64, %s293_s24, [#allocation6]  }
  0x43   : > { %p3187_p8 = pnand %p3186_p4, %p3180_p10 }
  0x45   : > { %3190 = shalt.err (!%p3187_p8)
}
  0x46   : > { %s3357_s21 = smov 64   ;;  %s3358_s23 = smov 4  }
  0x47   : > { %2798 = dma.hbm_to_vmem [thread:$0]  (!%p3470_p11), %s4106_s5, 2048, %s319_s26, [#allocation9], %s3357_s21, %s3357_s21, %s3358_s23  }
  0x48   : > { %s3512_s27 = sadd.s32 1, %s3347_s12   ;;  %s38_s28 = sadd.s32 1, %s3343_s11 }
  0x49   : > { %s35_s22 = ssub.s32 %s3347_s12, %s3512_s27  ;;  %p45_p8 = scmp.ne.s32.totalorder %s3343_s11, %s3339_s10 }
  0x4a   : > { %p36_p4 = scmp.eq.s32.totalorder %s35_s22, 0  ;;  %p46_p12 = scmp.eq.s32.totalorder %s3347_s12, 0 }
  0x4b   : > { %p4128_p3 = scmp.eq.s32.totalorder %s3440_s13, 1  ;;  %p2817_p9 = scmp.lt.s32.totalorder %s3347_s12, 2 }
  0x4c   : > { %s3521_s19 = scalar_select %p36_p4, %s3343_s11, %s38_s28  }
  0x4d   : > { %p47_p6 = por %p46_p12, %p45_p8  ;;  %p3525_p7 = por %p4128_p3, %p45_p8 }
  0x4e   : > { %s335_s20 = sand.u32 1, %s3343_s11   ;;  %s2613_s26 = sshll.u32 %s3347_s12, 11 }
  0x4f   : > { %s4129_s14 = scalar_select %p3525_p7, 1, 0 }
  0x50   : > { %s2425_s24 = sshll.u32 %s335_s20, 7  ;;  %s3535_s25 = scalar_lea.hbm %s4101_s0, %s2613_s26 }
  0x51   : > { %s339_s22 = scalar_lea.vmem [#allocation2], %s2425_s24  ;;  %p3539_p11 = pnand %p2817_p9, %p47_p6 }
  0x52   : > { %s347_s28 = sshll.u32 %s339_s22, 4  ;;  %s3543_s18 = scalar_lea.sflag [#allocation3], %s335_s20  ;;  %s3537_s28 = int_to_ptr.vmem [resolvable:$true] %s347_s28 }
  0x53   : > { %s3191_s1 = scalar_lea.hbm %s3535_s25, 2048  ;;  %p3193_p0 = pneg %p3539_p11 }
  0x54   : > { %p3192_p13 = scmp.ne.s32.totalorder %s3535_s25, %s3191_s1  ;;  %s3196_s24 = scalar_lea.hbm %s4101_s0, 4096 }
  0x55   : > { %p3197_p1 = scmp.lt.s32.totalorder %s3535_s25, %s4101_s0  ;;  %p3198_p2 = scmp.lt.s32.totalorder %s3196_s24, %s3191_s1 }
  0x56   : > { %p3194_p5 = pnand %p3193_p0, %p3192_p13 }
  0x57   : > { %p3199_p4 = por %p3198_p2, %p3197_p1 }
  0x58   : > { %p3195_p10 = pneg %p3194_p5 }
  0x5a   : > { %p3200_p8 = pnand %p3199_p4, %p3195_p10 }
  0x5c   : > { %3203 = shalt.err (!%p3200_p8)
}
  0x5d   : > { %s3204_s20 = scalar_lea.vmem %s3537_s28, 2048  ;;  %s3359_s2 = smov [#allocation2]  }
  0x5e   : > { %p3205_p12 = scmp.ne.s32.totalorder %s3537_s28, %s3204_s20  ;;  %s3209_s3 = sshll.u32 %s3359_s2, 4  ;;  %s3210_s3 = int_to_ptr.vmem [resolvable:$false] %s3209_s3 }
  0x5f   : > { %s3211_s26 = scalar_lea.vmem %s3210_s3, 4096  ;;  %p3212_p9 = scmp.lt.s32.totalorder %s3537_s28, %s3210_s3 }
  0x60   : > { %p3207_p6 = pnand %p3205_p12, %p3193_p0  ;;  %p3213_p13 = scmp.lt.s32.totalorder %s3211_s26, %s3204_s20 }
  0x62   : > { %p3208_p3 = pneg %p3207_p6  ;;  %p3214_p5 = por %p3213_p13, %p3212_p9 }
  0x64   : > { %p3215_p7 = pnand %p3214_p5, %p3208_p3 }
  0x66   : > { %3218 = shalt.err (!%p3215_p7)
}
  0x67   : > { %s4131_s1 = smov 8   ;;  %s4132_s21 = smov 128  }
  0x68   : > { %2802 = dma.hbm_to_vmem [thread:$0]  (!%p3539_p11), %s3535_s25, 2048, %s3537_s28, %s3543_s18, %s4132_s21, %s4132_s21, %s4131_s1  }
  0x69   : > { %p4133_p0 = scmp.ne.s32.totalorder %s4123_s17, 0 }
  0x6a   : > { %s3570_s2 = sand.u32 (!%p4133_p0), 1, %s3339_s10   ;;  %p4134_p7 = scmp.ne.s32.totalorder (!%p4133_p0), %s4121_s15, 0 }
  0x6b   : > { %359 = sbr.rel (%p4133_p0) target bundleno = 822 (0x336), region = 48  ;;  %s2430_s3 = sshll.u32 (!%p4133_p0), %s3570_s2, 7 }
  0x6c   : > { %s362_s24 = scalar_lea.sflag (!%p4133_p0), [#allocation3], %s3570_s2  ;;  %s3576_s29 = scalar_lea.vmem (!%p4133_p0), [#allocation2], %s2430_s3 }
  0x70   : > { %3314 = dma.done.wait (%p4134_p7), %s362_s24, 2048  }
  0x71   : > { %3316 = vsyncadd (%p4134_p7), %s362_s24, 4294965248  ;;  %p4135_p11 = scmp.eq.s32.totalorder %s3440_s13, 0 }
  0x73   : > { %3318 = dma.done.wait (%p4135_p11), [#allocation6], 8256   ;;  %p4136_p10 = pmov %p4135_p11 }
  0x75   : > { %3320 = vsyncadd (%p4136_p10), [#allocation6], 4294959040  ;;  %p4137_p1 = pmov %p4136_p10 }
  0x77   : > { %3322 = dma.done.wait (%p4137_p1), [#allocation9], 6144   ;;  %p4138_p2 = pmov %p4137_p1 }
  0x78   : > { %v2871_v0 = vld [vmem:[#allocation5 + $0xe4] ss:$16 sps:$4 sm:$0xff]   ;;  %v2873_v1 = vld [vmem:[#allocation5 + $0xe0] ss:$16 sps:$4 sm:$0xff]   ;;  %v2943_v20 = vld [vmem:[#allocation5 + $0xec] ss:$16 sps:$4 sm:$0xff]  }
  0x79   : > { %3324 = vsyncadd (%p4138_p2), [#allocation9], 4294961152  ;;  %933 = vmatprep.subr.bf16.mxu0 %v2871_v0  ;;  %v2874_v2 = vld [vmem:[#allocation5 + $0xc4] ss:$16 sps:$4 sm:$0xff]   ;;  %v2876_v3 = vld [vmem:[#allocation5 + $0xc0] ss:$16 sps:$4 sm:$0xff]   ;;  %1046 = vmatprep.subr.bf16.mxu1 %v2943_v20 }
  0x7a   : > { %934 = vmatpush1.bf16.msra.mxu0 %v2873_v1  ;;  %v2877_v4 = vld [vmem:[#allocation5 + $0xa4] ss:$16 sps:$4 sm:$0xff]   ;;  %v2879_v5 = vld [vmem:[#allocation5 + $0xa0] ss:$16 sps:$4 sm:$0xff]   ;;  %v2945_v21 = vld [vmem:[#allocation5 + $0xe8] ss:$16 sps:$4 sm:$0xff]  }
  0x7b   : > { %935 = vmatprep.subr.bf16.mxu0 %v2874_v2  ;;  %v2880_v6 = vld [vmem:[#allocation5 + $0x84] ss:$16 sps:$4 sm:$0xff]   ;;  %v2882_v7 = vld [vmem:[#allocation5 + $0x80] ss:$16 sps:$4 sm:$0xff]   ;;  %v2946_v23 = vld [vmem:[#allocation5 + $0xcc] ss:$16 sps:$4 sm:$0xff]   ;;  %1047 = vmatpush1.bf16.msra.mxu1 %v2945_v21 }
  0x7c   : > { %v2883_v8 = vld [vmem:[#allocation5 + $0x64] ss:$16 sps:$4 sm:$0xff]   ;;  %v2885_v9 = vld [vmem:[#allocation5 + $0x60] ss:$16 sps:$4 sm:$0xff]   ;;  %v2948_v25 = vld [vmem:[#allocation5 + $0xc8] ss:$16 sps:$4 sm:$0xff]   ;;  %1048 = vmatprep.subr.bf16.mxu1 %v2946_v23 }
  0x7d   : > { %v2886_v10 = vld [vmem:[#allocation5 + $0x44] ss:$16 sps:$4 sm:$0xff]   ;;  %v2888_v11 = vld [vmem:[#allocation5 + $0x40] ss:$16 sps:$4 sm:$0xff]   ;;  %v2949_v26 = vld [vmem:[#allocation5 + $0xac] ss:$16 sps:$4 sm:$0xff]  }
  0x7e   : > { %936 = vmatpush1.bf16.msra.mxu0 %v2876_v3  ;;  %v2889_v12 = vld [vmem:[#allocation5 + $0x24] ss:$16 sps:$4 sm:$0xff]   ;;  %v2891_v14 = vld [vmem:[#allocation5 + $0x20] ss:$16 sps:$4 sm:$0xff]   ;;  %v2951_v29 = vld [vmem:[#allocation5 + $0xa8] ss:$16 sps:$4 sm:$0xff]  }
  0x7f   : > { %937 = vmatprep.subr.bf16.mxu0 %v2877_v4  ;;  %v2921_v13 = vld [vmem:[%s3576_s29 + $0x4] ss:$8 sps:$4 sm:$0xff]   ;;  %v2894_v16 = vld [vmem:[#allocation5] ss:$16 sps:$4 sm:$0xff]   ;;  %1049 = vmatpush1.bf16.msra.mxu1 %v2948_v25  ;;  %v2954_v33 = vld [vmem:[#allocation5 + $0x88] ss:$16 sps:$4 sm:$0xff]  }
  0x80   : > { %v2892_v15 = vld [vmem:[#allocation5 + $0x4] ss:$16 sps:$4 sm:$0xff]   ;;  %965 = vmatprep.mubr.bf16.mxu0 %v2921_v13  ;;  %1078 = vmatprep.mubr.bf16.mxu1 %v2921_v13  ;;  %v2897_v18 = vld [vmem:[#allocation5 + $0x1e0] ss:$16 sps:$4 sm:$0xff]   ;;  %v2952_v30 = vld [vmem:[#allocation5 + $0x8c] ss:$16 sps:$4 sm:$0xff]  }
  0x81   : > { %v2895_v17 = vld [vmem:[#allocation5 + $0x1e4] ss:$16 sps:$4 sm:$0xff]   ;;  %v2900_v22 = vld [vmem:[#allocation5 + $0x1c0] ss:$16 sps:$4 sm:$0xff]   ;;  %1050 = vmatprep.subr.bf16.mxu1 %v2949_v26  ;;  %v2955_v34 = vld [vmem:[#allocation5 + $0x6c] ss:$16 sps:$4 sm:$0xff]  }
  0x82   : > { %938 = vmatpush1.bf16.msra.mxu0 %v2879_v5  ;;  %v2898_v19 = vld [vmem:[#allocation5 + $0x1c4] ss:$16 sps:$4 sm:$0xff]   ;;  %v2903_v27 = vld [vmem:[#allocation5 + $0x1a0] ss:$16 sps:$4 sm:$0xff]   ;;  %v2957_v37 = vld [vmem:[#allocation5 + $0x68] ss:$16 sps:$4 sm:$0xff]  }
  0x83   : > { %939 = vmatprep.subr.bf16.mxu0 %v2880_v6  ;;  %v2901_v24 = vld [vmem:[#allocation5 + $0x1a4] ss:$16 sps:$4 sm:$0xff]   ;;  %v2906_v31 = vld [vmem:[#allocation5 + $0x180] ss:$16 sps:$4 sm:$0xff]   ;;  %1051 = vmatpush1.bf16.msra.mxu1 %v2951_v29  ;;  %v2958_v38 = vld [vmem:[#allocation5 + $0x4c] ss:$16 sps:$4 sm:$0xff]  }
  0x84   : > { %v2904_v28 = vld [vmem:[#allocation5 + $0x184] ss:$16 sps:$4 sm:$0xff]   ;;  %1052 = vmatprep.subr.bf16.mxu1 %v2952_v30  ;;  %v2909_v35 = vld [vmem:[#allocation5 + $0x160] ss:$16 sps:$4 sm:$0xff]   ;;  %v2960_v41 = vld [vmem:[#allocation5 + $0x48] ss:$16 sps:$4 sm:$0xff]  }
  0x85   : > { %v2907_v32 = vld [vmem:[#allocation5 + $0x164] ss:$16 sps:$4 sm:$0xff]   ;;  %v2912_v39 = vld [vmem:[#allocation5 + $0x140] ss:$16 sps:$4 sm:$0xff]   ;;  %v2961_v42 = vld [vmem:[#allocation5 + $0x2c] ss:$16 sps:$4 sm:$0xff]  }
  0x86   : > { %940 = vmatpush1.bf16.msra.mxu0 %v2882_v7  ;;  %v2910_v36 = vld [vmem:[#allocation5 + $0x144] ss:$16 sps:$4 sm:$0xff]   ;;  %v2915_v43 = vld [vmem:[#allocation5 + $0x120] ss:$16 sps:$4 sm:$0xff]   ;;  %v2963_v44 = vld [vmem:[#allocation5 + $0x28] ss:$16 sps:$4 sm:$0xff]  }
  0x87   : > { %941 = vmatprep.subr.bf16.mxu0 %v2883_v8  ;;  %1053 = vmatpush1.bf16.msra.mxu1 %v2954_v33  ;;  %v2913_v40 = vld [vmem:[#allocation5 + $0x124] ss:$16 sps:$4 sm:$0xff]   ;;  %v2964_v46 = vld [vmem:[#allocation5 + $0xc] ss:$16 sps:$4 sm:$0xff]   ;;  %v2918_v47 = vld [vmem:[#allocation5 + $0x100] ss:$16 sps:$4 sm:$0xff]  }
  0x88   : > { %1054 = vmatprep.subr.bf16.mxu1 %v2955_v34  ;;  %v2916_v45 = vld [vmem:[#allocation5 + $0x104] ss:$16 sps:$4 sm:$0xff]   ;;  %v2966_v48 = vld [vmem:[#allocation5 + $0x8] ss:$16 sps:$4 sm:$0xff]   ;;  %v2967_v49 = vld [vmem:[#allocation5 + $0x1ec] ss:$16 sps:$4 sm:$0xff]  }
  0x89   : > { %v2919_v50 = vld [vmem:[%s3576_s29] ss:$8 sps:$4 sm:$0xff]   ;;  %v2922_v51 = vld [vmem:[%s3576_s29 + $0x14] ss:$8 sps:$4 sm:$0xff]   ;;  %v2924_v56 = vld [vmem:[%s3576_s29 + $0x10] ss:$8 sps:$4 sm:$0xff]  }
  0x8a   : > { %942 = vmatpush1.bf16.msra.mxu0 %v2885_v9  ;;  %v2969_v52 = vld [vmem:[#allocation5 + $0x1e8] ss:$16 sps:$4 sm:$0xff]   ;;  %v2970_v53 = vld [vmem:[#allocation5 + $0x1cc] ss:$16 sps:$4 sm:$0xff]   ;;  %s3828_s15 = scalar_lea.vmem [#allocation14], %s2430_s3  ;;  %s2436_s25 = sshll.u32 %s3570_s2, 6 }
  0x8b   : > { %943 = vmatprep.subr.bf16.mxu0 %v2886_v10  ;;  %1055 = vmatpush1.bf16.msra.mxu1 %v2957_v37  ;;  %v2972_v54 = vld [vmem:[#allocation5 + $0x1c8] ss:$16 sps:$4 sm:$0xff]   ;;  %v2973_v55 = vld [vmem:[#allocation5 + $0x1ac] ss:$16 sps:$4 sm:$0xff]   ;;  %s3882_s28 = scalar_lea.vmem [#allocation12], %s2436_s25  ;;  %s2193_s23 = sand.u32 1, %s3440_s13  }
  0x8c   : > { %1056 = vmatprep.subr.bf16.mxu1 %v2958_v38  ;;  %v2925_v57 = vld [vmem:[%s3576_s29 + $0x24] ss:$8 sps:$4 sm:$0xff]   ;;  %v2975_v58 = vld [vmem:[#allocation5 + $0x1a8] ss:$16 sps:$4 sm:$0xff]   ;;  %v2928_v63 = vld [vmem:[%s3576_s29 + $0x34] ss:$8 sps:$4 sm:$0xff]  }
  0x8d   : > { %v2976_v59 = vld [vmem:[#allocation5 + $0x18c] ss:$16 sps:$4 sm:$0xff]   ;;  %v2978_v60 = vld [vmem:[#allocation5 + $0x188] ss:$16 sps:$4 sm:$0xff]   ;;  %s2648_s22 = sshll.u32 %s3440_s13, 10  ;;  %s2229_s20 = sshll.u32 %s3882_s28, 4  ;;  %s3913_s20 = int_to_ptr.vmem [resolvable:$true] %s2229_s20 }
  0x8e   : > { %944 = vmatpush1.bf16.msra.mxu0 %v2888_v11  ;;  %v2979_v61 = vld [vmem:[#allocation5 + $0x16c] ss:$16 sps:$4 sm:$0xff]   ;;  %v2927_v62 = vld [vmem:[%s3576_s29 + $0x20] ss:$8 sps:$4 sm:$0xff]   ;;  %v2930_v4 = vld [vmem:[%s3576_s29 + $0x30] ss:$8 sps:$4 sm:$0xff]   ;;  %s3911_s21 = scalar_lea.hbm %s4109_s8, %s2648_s22 }
  0x8f   : > { %945 = vmatprep.subr.bf16.mxu0 %v2889_v12  ;;  %1057 = vmatpush1.bf16.msra.mxu1 %v2960_v41  ;;  %v2981_v0 = vld [vmem:[#allocation5 + $0x168] ss:$16 sps:$4 sm:$0xff]   ;;  %v2982_v1 = vld [vmem:[#allocation5 + $0x14c] ss:$16 sps:$4 sm:$0xff]   ;;  %s2650_s3 = sshll.u32 %s3440_s13, 11  ;;  %s3917_s24 = scalar_lea.sflag [#allocation13], %s2193_s23 }
  0x90   : > { %1058 = vmatprep.subr.bf16.mxu1 %v2961_v42  ;;  %v2984_v2 = vld [vmem:[#allocation5 + $0x148] ss:$16 sps:$4 sm:$0xff]   ;;  %v2985_v3 = vld [vmem:[#allocation5 + $0x12c] ss:$16 sps:$4 sm:$0xff]   ;;  %p4139_p8 = scmp.ne.s32.totalorder %s4129_s14, 0  ;;  %s3360_s17 = smov [#allocation12]  }
  0x91   : > { %v2931_v5 = vld [vmem:[%s3576_s29 + $0x44] ss:$8 sps:$4 sm:$0xff]   ;;  %v2987_v6 = vld [vmem:[#allocation5 + $0x128] ss:$16 sps:$4 sm:$0xff]   ;;  %v2934_v10 = vld [vmem:[%s3576_s29 + $0x54] ss:$8 sps:$4 sm:$0xff]  }
  0x92   : > { %946 = vmatpush1.bf16.msra.mxu0 %v2891_v14  ;;  %v2988_v7 = vld [vmem:[#allocation5 + $0x10c] ss:$16 sps:$4 sm:$0xff]   ;;  %v2990_v8 = vld [vmem:[#allocation5 + $0x108] ss:$16 sps:$4 sm:$0xff]   ;;  %s3223_s18 = sshll.u32 %s3360_s17, 4  ;;  %s3224_s18 = int_to_ptr.vmem [resolvable:$false] %s3223_s18 }
  0x93   : > { %947 = vmatprep.subr.bf16.mxu0 %v2892_v15  ;;  %1059 = vmatpush1.bf16.msra.mxu1 %v2963_v44  ;;  %v2933_v9 = vld [vmem:[%s3576_s29 + $0x40] ss:$8 sps:$4 sm:$0xff]   ;;  %v2936_v11 = vld [vmem:[%s3576_s29 + $0x50] ss:$8 sps:$4 sm:$0xff]   ;;  %v2937_v12 = vld [vmem:[%s3576_s29 + $0x64] ss:$8 sps:$4 sm:$0xff]   ;;  %p3226_p3 = scmp.lt.s32.totalorder %s3913_s20, %s3224_s18 }
  0x94   : > { %1060 = vmatprep.subr.bf16.mxu1 %v2964_v46  ;;  %v2939_v13 = vld [vmem:[%s3576_s29 + $0x60] ss:$8 sps:$4 sm:$0xff]   ;;  %v2940_v14 = vld [vmem:[%s3576_s29 + $0x74] ss:$8 sps:$4 sm:$0xff]   ;;  %v2942_v15 = vld [vmem:[%s3576_s29 + $0x70] ss:$8 sps:$4 sm:$0xff]  }
  0x95   : > { %v2998_v20 = vld [vmem:[#allocation8 + $0x64] ss:$8 sps:$4 sm:$0xff]   ;;  %v2999_v21 = vld [vmem:[#allocation10 + $0x70] sm:$0xff]   ;;  %v2996_v23 = vld [vmem:[#allocation8 + $0x60] ss:$8 sps:$4 sm:$0xff]   ;;  %s3219_s29 = scalar_lea.vmem %s3913_s20, 1024 }
  0x96   : > { %948 = vmatpush1.bf16.msra.mxu0 %v2894_v16  ;;  %v2991_v16 = vld [vmem:[#allocation10 + $0x78] sm:$0xff]   ;;  %v3008_v26 = vld [vmem:[#allocation10 + $0x28] sm:$0xff]   ;;  %v3016_v30 = vld [vmem:[#allocation10 + $0x20] sm:$0xff]   ;;  %p3220_p4 = scmp.ne.s32.totalorder %s3913_s20, %s3219_s29  ;;  %s3225_s25 = scalar_lea.vmem %s3224_s18, 2048 }
  0x97   : > { %949 = vmatprep.subr.bf16.mxu0 %v2895_v17  ;;  %1061 = vmatpush1.bf16.msra.mxu1 %v2966_v48  ;;  %v2992_v17 = vld [vmem:[#allocation10 + $0x38] sm:$0xff]   ;;  %v3006_v29 = vld [vmem:[#allocation8 + $0x44] ss:$8 sps:$4 sm:$0xff]   ;;  %v3032_v38 = vld [vmem:[#allocation10 + $0x10] sm:$0xff]   ;;  %v513_v48 = vlaneseq  ;;  %p3227_p9 = scmp.lt.s32.totalorder %s3225_s25, %s3219_s29 }
  0x98   : > { %1062 = vmatprep.subr.bf16.mxu1 %v2967_v49  ;;  %v3003_v25 = vld [vmem:[#allocation8 + $0x54] ss:$8 sps:$4 sm:$0xff]   ;;  %v3014_v37 = vld [vmem:[#allocation8 + $0x24] ss:$8 sps:$4 sm:$0xff]   ;;  %v3017_v41 = vld [vmem:[#allocation8 + $0x10] ss:$8 sps:$4 sm:$0xff]   ;;  %p3221_p12 = pnand %p3220_p4, %p4139_p8 }
  0x99   : > { %v3011_v33 = vld [vmem:[#allocation8 + $0x34] ss:$8 sps:$4 sm:$0xff]   ;;  %v3022_v42 = vld [vmem:[#allocation8 + $0x4] ss:$8 sps:$4 sm:$0xff]   ;;  %v3606_v49 = vshrl.u32 %v513_v48, 7  ;;  %p3228_p13 = por %p3227_p9, %p3226_p3 }
  0x9a   : > { %950 = vmatpush2.bf16.msra.mxu0 %v2897_v18  ;;  %v2993_v18 = vld [vmem:[#allocation8 + $0x70] ss:$8 sps:$4 sm:$0xff]   ;;  %v3027_v44 = vld [vmem:[#allocation8 + $0xf4] ss:$8 sps:$4 sm:$0xff]   ;;  %v3030_v46 = vld [vmem:[#allocation8 + $0xe4] ss:$8 sps:$4 sm:$0xff]   ;;  %p3222_p6 = pneg %p3221_p12 }
  0x9b   : > { %951 = vmatprep.subr.bf16.mxu0 %v2898_v19  ;;  %1063 = vmatpush2.bf16.msra.mxu1 %v2969_v52  ;;  %v2995_v19 = vld [vmem:[#allocation8 + $0x74] ss:$8 sps:$4 sm:$0xff]   ;;  %v519_v52 = vsub.s32 1, %v3606_v49 }
  0x9c   : > { %1064 = vmatprep.subr.bf16.mxu1 %v2970_v53  ;;  %v3024_v34 = vld [vmem:[#allocation10 + $0x18] sm:$0xff]   ;;  %p3229_p5 = pnand %p3228_p13, %p3222_p6 }
  0x9e   : > { %952 = vmatpush2.bf16.msra.mxu0 %v2900_v22  ;;  %v3000_v22 = vld [vmem:[#allocation10 + $0x30] sm:$0xff]  }
  0x9f   : > { %953 = vmatprep.subr.bf16.mxu0 %v2901_v24  ;;  %1065 = vmatpush2.bf16.msra.mxu1 %v2972_v54  ;;  %v3007_v24 = vld [vmem:[#allocation10 + $0x68] sm:$0xff]  }
  0xa0   : > { %1066 = vmatprep.subr.bf16.mxu1 %v2973_v55 }
  0xa2   : > { %954 = vmatpush2.bf16.msra.mxu0 %v2903_v27  ;;  %v3001_v27 = vld [vmem:[#allocation8 + $0x50] ss:$8 sps:$4 sm:$0xff]  }
  0xa3   : > { %955 = vmatprep.subr.bf16.mxu0 %v2904_v28  ;;  %1067 = vmatpush2.bf16.msra.mxu1 %v2975_v58  ;;  %v3015_v28 = vld [vmem:[#allocation10 + $0x60] sm:$0xff]  }
  0xa4   : > { %1068 = vmatprep.subr.bf16.mxu1 %v2976_v59 }
  0xa6   : > { %956 = vmatpush2.bf16.msra.mxu0 %v2906_v31  ;;  %v3004_v31 = vld [vmem:[#allocation8 + $0x40] ss:$8 sps:$4 sm:$0xff]  }
  0xa7   : > { %957 = vmatprep.subr.bf16.mxu0 %v2907_v32  ;;  %1069 = vmatpush2.bf16.msra.mxu1 %v2978_v60  ;;  %v3023_v32 = vld [vmem:[#allocation10 + $0x58] sm:$0xff]  }
  0xa8   : > { %1070 = vmatprep.subr.bf16.mxu1 %v2979_v61 }
  0xaa   : > { %958 = vmatpush2.bf16.msra.mxu0 %v2909_v35  ;;  %v3009_v35 = vld [vmem:[#allocation8 + $0x30] ss:$8 sps:$4 sm:$0xff]  }
  0xab   : > { %959 = vmatprep.subr.bf16.mxu0 %v2910_v36  ;;  %1071 = vmatpush2.bf16.msra.mxu1 %v2981_v0  ;;  %v3031_v36 = vld [vmem:[#allocation10 + $0x50] sm:$0xff]  }
  0xac   : > { %1072 = vmatprep.subr.bf16.mxu1 %v2982_v1 }
  0xae   : > { %960 = vmatpush2.bf16.msra.mxu0 %v2912_v39  ;;  %v3012_v39 = vld [vmem:[#allocation8 + $0x20] ss:$8 sps:$4 sm:$0xff]  }
  0xaf   : > { %961 = vmatprep.subr.bf16.mxu0 %v2913_v40  ;;  %1073 = vmatpush2.bf16.msra.mxu1 %v2984_v2  ;;  %v3019_v40 = vld [vmem:[#allocation8 + $0x14] ss:$8 sps:$4 sm:$0xff]  }
  0xb0   : > { %1074 = vmatprep.subr.bf16.mxu1 %v2985_v3 }
  0xb2   : > { %962 = vmatpush2.bf16.msra.mxu0 %v2915_v43  ;;  %v3020_v43 = vld [vmem:[#allocation8] ss:$8 sps:$4 sm:$0xff]  }
  0xb3   : > { %963 = vmatprep.subr.bf16.mxu0 %v2916_v45  ;;  %1075 = vmatpush2.bf16.msra.mxu1 %v2987_v6  ;;  %v3025_v45 = vld [vmem:[#allocation8 + $0xf0] ss:$8 sps:$4 sm:$0xff]  }
  0xb4   : > { %1076 = vmatprep.subr.bf16.mxu1 %v2988_v7 }
  0xb6   : > { %964 = vmatpush2.bf16.msra.mxu0 %v2918_v47  ;;  %v3028_v47 = vld [vmem:[#allocation8 + $0xe0] ss:$8 sps:$4 sm:$0xff]  }
  0xb7   : > { %1077 = vmatpush2.bf16.msra.mxu1 %v2990_v8  ;;  %1607 = vmatprep.subr.bf16.mxu0 %v2995_v19 }
  0xb8   : > { %2698 = vmatprep.subr.bf16.mxu1 %v2991_v16 }
  0xb9   : > { %966 = vmatmul.mubr.bf16.vlgmr.msra.gmra.mxu0 %v2919_v50 }
  0xba   : > { %975 = vmatprep.mubr.bf16.mxu0 %v2922_v51  ;;  %1079 = vmatmul.mubr.bf16.vlgmr.msra.gmra.mxu1 %v2919_v50  ;;  %v515_v50 = vsub.s32 0, %v3606_v49 }
  0xbb   : > { %1088 = vmatprep.mubr.bf16.mxu1 %v2922_v51  ;;  %2699 = vmatpush3.bf16.msra.mxu1 %v2992_v17  ;;  %v3609_v51 = vld [vmem:[#allocation7] sm:$0xf] }
  0xbc   : > { %1608 = vmatpush1.bf16.msra.mxu0 %v2993_v18  ;;  %2700 = vmatprep.subr.bf16.mxu1 %v2999_v21  ;;  %v3615_v53 = vrot.slane %v3609_v51, %v515_v50  ;;  %v3620_v54 = vrot.slane %v3609_v51, %v519_v52  ;;  %v3035_v21 = vld [vmem:[#allocation8 + $0xd4] ss:$8 sps:$4 sm:$0xff]  }
  0xbd   : > { %1609 = vmatprep.subr.bf16.mxu0 %v2998_v20 }
  0xbf   : > { %2701 = vmatpush3.bf16.msra.mxu1 %v3000_v22  ;;  %v3036_v22 = vld [vmem:[#allocation10 + $0x48] sm:$0xff]  }
  0xc0   : > { %1610 = vmatpush1.bf16.msra.mxu0 %v2996_v23  ;;  %2702 = vmatprep.subr.bf16.mxu1 %v3007_v24 }
  0xc1   : > { %976 = vmatmul.mubr.bf16.gmra.mxu0 %v2924_v56  ;;  %1611 = vmatprep.subr.bf16.mxu0 %v3003_v25  ;;  %v3033_v25 = vld [vmem:[#allocation8 + $0xd0] ss:$8 sps:$4 sm:$0xff]  }
  0xc2   : > { %985 = vmatprep.mubr.bf16.mxu0 %v2925_v57  ;;  %1089 = vmatmul.mubr.bf16.gmra.mxu1 %v2924_v56 }
  0xc3   : > { %1098 = vmatprep.mubr.bf16.mxu1 %v2925_v57  ;;  %2703 = vmatpush3.bf16.msra.mxu1 %v3008_v26  ;;  %v3037_v26 = vld [vmem:[#allocation10 + $0x8] sm:$0xff]  }
  0xc4   : > { %1612 = vmatpush1.bf16.msra.mxu0 %v3001_v27  ;;  %2704 = vmatprep.subr.bf16.mxu1 %v3015_v28 }
  0xc5   : > { %1613 = vmatprep.subr.bf16.mxu0 %v3006_v29 }
  0xc7   : > { %2705 = vmatpush3.bf16.msra.mxu1 %v3016_v30 }
  0xc8   : > { %1614 = vmatpush1.bf16.msra.mxu0 %v3004_v31  ;;  %2706 = vmatprep.subr.bf16.mxu1 %v3023_v32  ;;  %v3040_v32 = vld [vmem:[#allocation8 + $0xc4] ss:$8 sps:$4 sm:$0xff]  }
  0xc9   : > { %986 = vmatmul.mubr.bf16.gmra.mxu0 %v2927_v62  ;;  %1615 = vmatprep.subr.bf16.mxu0 %v3011_v33  ;;  %v3041_v33 = vld [vmem:[#allocation10 + $0x40] sm:$0xff]  }
  0xca   : > { %995 = vmatprep.mubr.bf16.mxu0 %v2928_v63  ;;  %1099 = vmatmul.mubr.bf16.gmra.mxu1 %v2927_v62 }
  0xcb   : > { %1108 = vmatprep.mubr.bf16.mxu1 %v2928_v63  ;;  %2707 = vmatpush3.bf16.msra.mxu1 %v3024_v34 }
  0xcc   : > { %1616 = vmatpush1.bf16.msra.mxu0 %v3009_v35  ;;  %2708 = vmatprep.subr.bf16.mxu1 %v3031_v36  ;;  %v3038_v36 = vld [vmem:[#allocation8 + $0xc0] ss:$8 sps:$4 sm:$0xff]  }
  0xcd   : > { %1617 = vmatprep.subr.bf16.mxu0 %v3014_v37  ;;  %v3042_v37 = vld [vmem:[#allocation10] sm:$0xff]  }
  0xcf   : > { %2709 = vmatpush3.bf16.msra.mxu1 %v3032_v38 }
  0xd0   : > { %1618 = vmatpush1.bf16.msra.mxu0 %v3012_v39  ;;  %2710 = vmatprep.subr.bf16.mxu1 %v3036_v22 }
  0xd1   : > { %996 = vmatmul.mubr.bf16.gmra.mxu0 %v2930_v4  ;;  %1619 = vmatprep.subr.bf16.mxu0 %v3019_v40 }
  0xd2   : > { %1005 = vmatprep.mubr.bf16.mxu0 %v2931_v5  ;;  %1109 = vmatmul.mubr.bf16.gmra.mxu1 %v2930_v4 }
  0xd3   : > { %1118 = vmatprep.mubr.bf16.mxu1 %v2931_v5  ;;  %2711 = vmatpush3.bf16.msra.mxu1 %v3037_v26 }
  0xd4   : > { %1620 = vmatpush1.bf16.msra.mxu0 %v3017_v41  ;;  %2712 = vmatprep.subr.bf16.mxu1 %v3041_v33  ;;  %v3054_v33 = vld [vmem:[#allocation8 + $0x84] ss:$8 sps:$4 sm:$0xff]  }
  0xd5   : > { %1621 = vmatprep.subr.bf16.mxu0 %v3022_v42 }
  0xd7   : > { %2713 = vmatpush3.bf16.msra.mxu1 %v3042_v37 }
  0xd8   : > { %1622 = vmatpush1.bf16.msra.mxu0 %v3020_v43  ;;  %v3045_v43 = vld [vmem:[#allocation8 + $0xb4] ss:$8 sps:$4 sm:$0xff]  }
  0xd9   : > { %1006 = vmatmul.mubr.bf16.gmra.mxu0 %v2933_v9  ;;  %1623 = vmatprep.subr.bf16.mxu0 %v3027_v44 }
  0xda   : > { %1015 = vmatprep.mubr.bf16.mxu0 %v2934_v10  ;;  %1119 = vmatmul.mubr.bf16.gmra.mxu1 %v2933_v9 }
  0xdb   : > { %1128 = vmatprep.mubr.bf16.mxu1 %v2934_v10 }
  0xdc   : > { %1624 = vmatpush2.bf16.msra.mxu0 %v3025_v45 }
  0xdd   : > { %1625 = vmatprep.subr.bf16.mxu0 %v3030_v46  ;;  %v523_v46 = vsub.s32 2, %v3606_v49 }
  0xe0   : > { %1626 = vmatpush2.bf16.msra.mxu0 %v3028_v47  ;;  %v3043_v47 = vld [vmem:[#allocation8 + $0xb0] ss:$8 sps:$4 sm:$0xff]  }
  0xe1   : > { %1016 = vmatmul.mubr.bf16.gmra.mxu0 %v2936_v11  ;;  %1627 = vmatprep.subr.bf16.mxu0 %v3035_v21  ;;  %v3049_v21 = vld [vmem:[#allocation8 + $0x90] ss:$8 sps:$4 sm:$0xff]  }
  0xe2   : > { %1025 = vmatprep.mubr.bf16.mxu0 %v2937_v12  ;;  %1129 = vmatmul.mubr.bf16.gmra.mxu1 %v2936_v11 }
  0xe3   : > { %1138 = vmatprep.mubr.bf16.mxu1 %v2937_v12 }
  0xe4   : > { %1628 = vmatpush2.bf16.msra.mxu0 %v3033_v25 }
  0xe5   : > { %1629 = vmatprep.subr.bf16.mxu0 %v3040_v32 }
  0xe8   : > { %1630 = vmatpush2.bf16.msra.mxu0 %v3038_v36 }
  0xe9   : > { %1026 = vmatmul.mubr.bf16.gmra.mxu0 %v2939_v13  ;;  %1631 = vmatprep.subr.bf16.mxu0 %v3045_v43 }
  0xea   : > { %1035 = vmatprep.mubr.bf16.mxu0 %v2940_v14  ;;  %1139 = vmatmul.mubr.bf16.gmra.mxu1 %v2939_v13 }
  0xeb   : > { %1148 = vmatprep.mubr.bf16.mxu1 %v2940_v14 }
  0xec   : > { %1632 = vmatpush2.bf16.msra.mxu0 %v3043_v47 }
  0xf1   : > { %1036 = vmatmul.mubr.bf16.gmra.mxu0 %v2942_v15 }
  0xf2   : > { %1149 = vmatmul.mubr.bf16.gmra.mxu1 %v2942_v15 }
 0x179   : > { %v967_v55 = vpop.f32.mrf.mxu0 }
 0x17a   : > { %v3623_v56 = vadd.f32 %v967_v55, %v3615_v53  ;;  %v527_v55 = vsub.s32 3, %v3606_v49 }
 0x17b   : > { %v969_v57 = vpop.f32.mrf.mxu0 }
 0x17c   : > { %v3626_v58 = vadd.f32 %v969_v57, %v3620_v54  ;;  %v1159_v61 = vmul.f32 %v3623_v56, %v3623_v56 }
 0x17d   : > { %v971_v59 = vpop.f32.mrf.mxu0 }
 0x17e   : > { %v3629_v60 = vadd.f32 %v971_v59, %v3615_v53  ;;  %v1160_v62 = vmul.f32 %v3626_v58, %v3626_v58 }
 0x17f   : > { %v973_v63 = vpop.f32.mrf.mxu0 }
 0x180   : > { %v3636_v0 = vadd.f32 %v973_v63, %v3620_v54  ;;  %v1191_v1 = vadd.f32 %v1160_v62, %v1159_v61  ;;  %v1161_v3 = vmul.f32 %v3629_v60, %v3629_v60  ;;  %v3048_v63 = vld [vmem:[#allocation8 + $0xa4] ss:$8 sps:$4 sm:$0xff]  }
 0x181   : > { %v977_v2 = vpop.f32.mrf.mxu0  ;;  %1633 = vmatprep.subr.bf16.mxu0 %v3048_v63 }
 0x182   : > { %v1162_v4 = vmul.f32 %v3636_v0, %v3636_v0  ;;  %v3643_v5 = vadd.f32 %v977_v2, %v3615_v53  ;;  %1192 = vadd.xlane.f32.xlu0 %v1191_v1 }
 0x183   : > { %v979_v6 = vpop.f32.mrf.mxu0 }
 0x184   : > { %v3646_v7 = vadd.f32 %v979_v6, %v3620_v54  ;;  %v1194_v8 = vadd.f32 %v1162_v4, %v1161_v3  ;;  %v1163_v11 = vmul.f32 %v3643_v5, %v3643_v5  ;;  %v3701_v3 = vrot.slane %v3609_v51, %v523_v46  ;;  %v3046_v4 = vld [vmem:[#allocation8 + $0xa0] ss:$8 sps:$4 sm:$0xff]  }
 0x185   : > { %v981_v9 = vpop.f32.mrf.mxu0  ;;  %1634 = vmatpush2.bf16.msra.mxu0 %v3046_v4 }
 0x186   : > { %v3649_v10 = vadd.f32 %v981_v9, %v3615_v53  ;;  %1195 = vadd.xlane.f32.xlu0 %v1194_v8  ;;  %v1164_v12 = vmul.f32 %v3646_v7, %v3646_v7  ;;  %v1080_v8 = vpop.f32.mrf.mxu1  ;;  %v3704_v9 = vrot.slane %v3609_v51, %v527_v55 }
 0x187   : > { %v983_v13 = vpop.f32.mrf.mxu0 }
 0x188   : > { %v3656_v14 = vadd.f32 %v983_v13, %v3620_v54  ;;  %v1197_v15 = vadd.f32 %v1164_v12, %v1163_v11  ;;  %v1165_v17 = vmul.f32 %v3649_v10, %v3649_v10 }
 0x189   : > { %v987_v16 = vpop.f32.mrf.mxu0 }
 0x18a   : > { %v1166_v18 = vmul.f32 %v3656_v14, %v3656_v14  ;;  %v3663_v19 = vadd.f32 %v987_v16, %v3615_v53  ;;  %1198 = vadd.xlane.f32.xlu1 %v1197_v15  ;;  %v1082_v16 = vpop.f32.mrf.mxu1 }
 0x18b   : > { %v989_v20 = vpop.f32.mrf.mxu0  ;;  %v1083_v25 = vadd.f32 %v1082_v16, %v3704_v9 }
 0x18c   : > { %v3666_v23 = vadd.f32 %v989_v20, %v3620_v54  ;;  %v1200_v24 = vadd.f32 %v1166_v18, %v1165_v17  ;;  %v1167_v28 = vmul.f32 %v3663_v19, %v3663_v19  ;;  %v3051_v17 = vld [vmem:[#allocation8 + $0x94] ss:$8 sps:$4 sm:$0xff]   ;;  %v1081_v20 = vadd.f32 %v1080_v8, %v3701_v3  ;;  %v1084_v26 = vpop.f32.mrf.mxu1 }
 0x18d   : > { %v991_v27 = vpop.f32.mrf.mxu0  ;;  %1635 = vmatprep.subr.bf16.mxu0 %v3051_v17 }
 0x18e   : > { %v1168_v29 = vmul.f32 %v3666_v23, %v3666_v23  ;;  %v3673_v30 = vadd.f32 %v991_v27, %v3615_v53  ;;  %1201 = vadd.xlane.f32.xlu1 %v1200_v24  ;;  %1636 = vmatpush2.bf16.msra.mxu0 %v3049_v21  ;;  %v1086_v32 = vpop.f32.mrf.mxu1  ;;  %v1828_v37 = vmax.f32 %v1081_v20, 0.0 }
 0x18f   : > { %v993_v31 = vpop.f32.mrf.mxu0  ;;  %v1087_v43 = vadd.f32 %v1086_v32, %v3704_v9  ;;  %1637 = vmatprep.subr.bf16.mxu0 %v3054_v33 }
 0x190   : > { %v3676_v34 = vadd.f32 %v993_v31, %v3620_v54  ;;  %v1203_v35 = vadd.f32 %v1168_v29, %v1167_v28  ;;  %v1169_v39 = vmul.f32 %v3673_v30, %v3673_v30  ;;  %v1085_v29 = vadd.f32 %v1084_v26, %v3701_v3 }
 0x191   : > { %v997_v38 = vpop.f32.mrf.mxu0 }
 0x192   : > { %v1170_v40 = vmul.f32 %v3676_v34, %v3676_v34  ;;  %v3683_v41 = vadd.f32 %v997_v38, %v3615_v53  ;;  %1204 = vadd.xlane.f32.xlu0 %v1203_v35  ;;  %v1830_v38 = vmax.f32 %v1085_v29, 0.0 }
 0x193   : > { %v999_v42 = vpop.f32.mrf.mxu0 }
 0x194   : > { %v3686_v44 = vadd.f32 %v999_v42, %v3620_v54  ;;  %v1206_v45 = vadd.f32 %v1170_v40, %v1169_v39  ;;  %v1171_v57 = vmul.f32 %v3683_v41, %v3683_v41  ;;  %v3052_v39 = vld [vmem:[#allocation8 + $0x80] ss:$8 sps:$4 sm:$0xff]   ;;  %v1829_v42 = vmax.f32 %v1083_v25, 0.0 }
 0x195   : > { %v1001_v48 = vpop.f32.mrf.mxu0  ;;  %1638 = vmatpush2.bf16.msra.mxu0 %v3052_v39 }
 0x196   : > { %v1172_v59 = vmul.f32 %v3686_v44, %v3686_v44  ;;  %v3695_v61 = vadd.f32 %v1001_v48, %v3615_v53  ;;  %1207 = vadd.xlane.f32.xlu1 %v1206_v45  ;;  %v1090_v45 = vpop.f32.mrf.mxu1 }
 0x197   : > { %v1003_v62 = vpop.f32.mrf.mxu0  ;;  %v1091_v4 = vadd.f32 %v1090_v45, %v3701_v3 }
 0x198   : > { %v3698_v1 = vadd.f32 %v1003_v62, %v3620_v54  ;;  %v1209_v2 = vadd.f32 %v1172_v59, %v1171_v57  ;;  %v1173_v11 = vmul.f32 %v3695_v61, %v3695_v61  ;;  %v1831_v57 = vmax.f32 %v1087_v43, 0.0  ;;  %v1092_v59 = vpop.f32.mrf.mxu1 }
 0x199   : > { %v1007_v6 = vpop.f32.mrf.mxu0  ;;  %v1832_v25 = vmax.f32 %v1091_v4, 0.0 }
 0x19a   : > { %v1174_v12 = vmul.f32 %v3698_v1, %v3698_v1  ;;  %v3711_v13 = vadd.f32 %v1007_v6, %v3615_v53  ;;  %1210 = vadd.xlane.f32.xlu0 %v1209_v2  ;;  %v1860_v2 = vpack.c.bf16 %v1830_v38, %v1828_v37  ;;  %v1861_v8 = vpack.c.bf16 %v1831_v57, %v1829_v42 }
 0x19b   : > { %v1009_v15 = vpop.f32.mrf.mxu0 }
 0x19c   : > { %v3714_v18 = vadd.f32 %v1009_v15, %v3620_v54  ;;  %v1212_v51 = vadd.f32 %v1174_v12, %v1173_v11  ;;  %v1175_v22 = vmul.f32 %v3711_v13, %v3711_v13  ;;  %v1093_v11 = vadd.f32 %v1092_v59, %v3704_v9  ;;  %v1094_v12 = vpop.f32.mrf.mxu1  ;;  %2043 = vmatprep.mubr.bf16.mxu1 %v1861_v8 }
 0x19d   : > { %v1011_v24 = vpop.f32.mrf.mxu0  ;;  %2044 = vmatmul.mubr.bf16.vlgmr.msra.gmra.mxu1 %v1860_v2 }
 0x19e   : > { %v1176_v27 = vmul.f32 %v3714_v18, %v3714_v18  ;;  %v3723_v28 = vadd.f32 %v1011_v24, %v3615_v53  ;;  %1213 = vadd.xlane.f32.xlu1 %v1212_v51  ;;  %v1095_v51 = vadd.f32 %v1094_v12, %v3701_v3  ;;  %v1096_v21 = vpop.f32.mrf.mxu1  ;;  %v1833_v29 = vmax.f32 %v1093_v11, 0.0 }
 0x19f   : > { %v1013_v31 = vpop.f32.mrf.mxu0 }
 0x1a0   : > { %v3727_v35 = vadd.f32 %v1013_v31, %v3620_v54  ;;  %v1215_v36 = vadd.f32 %v1176_v27, %v1175_v22  ;;  %v1177_v46 = vmul.f32 %v3723_v28, %v3723_v28  ;;  %v1834_v26 = vmax.f32 %v1095_v51, 0.0  ;;  %v1100_v32 = vpop.f32.mrf.mxu1 }
 0x1a1   : > { %v1017_v40 = vpop.f32.mrf.mxu0  ;;  %v1097_v31 = vadd.f32 %v1096_v21, %v3704_v9 }
 0x1a2   : > { %v1178_v47 = vmul.f32 %v3727_v35, %v3727_v35  ;;  %v3735_v48 = vadd.f32 %v1017_v40, %v3615_v53  ;;  %1216 = vadd.xlane.f32.xlu0 %v1215_v36  ;;  %v1102_v40 = vpop.f32.mrf.mxu1  ;;  %v1862_v45 = vpack.c.bf16 %v1834_v26, %v1832_v25 }
 0x1a3   : > { %v1019_v55 = vpop.f32.mrf.mxu0  ;;  %v1835_v39 = vmax.f32 %v1097_v31, 0.0  ;;  %v1103_v57 = vadd.f32 %v1102_v40, %v3704_v9 }
 0x1a4   : > { %v3738_v62 = vadd.f32 %v1019_v55, %v3620_v54  ;;  %v1218_v63 = vadd.f32 %v1178_v47, %v1177_v46  ;;  %v1179_v15 = vmul.f32 %v3735_v48, %v3735_v48  ;;  %v1101_v46 = vadd.f32 %v1100_v32, %v3701_v3  ;;  %v1104_v59 = vpop.f32.mrf.mxu1 }
 0x1a5   : > { %v1021_v6 = vpop.f32.mrf.mxu0  ;;  %v1863_v55 = vpack.c.bf16 %v1835_v39, %v1833_v29  ;;  %v1837_v21 = vmax.f32 %v1103_v57, 0.0 }
 0x1a6   : > { %v1180_v16 = vmul.f32 %v3738_v62, %v3738_v62  ;;  %v3747_v17 = vadd.f32 %v1021_v6, %v3615_v53  ;;  %1219 = vadd.xlane.f32.xlu1 %v1218_v63  ;;  %v1105_v6 = vadd.f32 %v1104_v59, %v3701_v3  ;;  %v1106_v11 = vpop.f32.mrf.mxu1 }
 0x1a7   : > { %v1023_v20 = vpop.f32.mrf.mxu0  ;;  %2051 = vmatprep.mubr.bf16.mxu1 %v1863_v55 }
 0x1a8   : > { %v3751_v22 = vadd.f32 %v1023_v20, %v3620_v54  ;;  %v1221_v24 = vadd.f32 %v1180_v16, %v1179_v15  ;;  %v1181_v33 = vmul.f32 %v3747_v17, %v3747_v17  ;;  %v1836_v16 = vmax.f32 %v1101_v46, 0.0  ;;  %2052 = vmatmul.mubr.bf16.gmra.mxu1 %v1862_v45  ;;  %v1110_v25 = vpop.f32.mrf.mxu1 }
 0x1a9   : > { %v1027_v27 = vpop.f32.mrf.mxu0  ;;  %v1838_v51 = vmax.f32 %v1105_v6, 0.0  ;;  %v1111_v40 = vadd.f32 %v1110_v25, %v3701_v3 }
 0x1aa   : > { %v1182_v36 = vmul.f32 %v3751_v22, %v3751_v22  ;;  %v3759_v37 = vadd.f32 %v1027_v27, %v3615_v53  ;;  %1222 = vadd.xlane.f32.xlu0 %v1221_v24  ;;  %v1107_v24 = vadd.f32 %v1106_v11, %v3704_v9 }
 0x1ab   : > { %v1029_v38 = vpop.f32.mrf.mxu0  ;;  %v1864_v39 = vpack.c.bf16 %v1838_v51, %v1836_v16 }
 0x1ac   : > { %v3762_v42 = vadd.f32 %v1029_v38, %v3620_v54  ;;  %v1224_v43 = vadd.f32 %v1182_v36, %v1181_v33  ;;  %v1183_v63 = vmul.f32 %v3759_v37, %v3759_v37  ;;  %v1839_v32 = vmax.f32 %v1107_v24, 0.0  ;;  %v1112_v33 = vpop.f32.mrf.mxu1 }
 0x1ad   : > { %v1031_v47 = vpop.f32.mrf.mxu0  ;;  %v1113_v46 = vadd.f32 %v1112_v33, %v3704_v9 }
 0x1ae   : > { %v1184_v2 = vmul.f32 %v3762_v42, %v3762_v42  ;;  %v3771_v4 = vadd.f32 %v1031_v47, %v3615_v53  ;;  %1225 = vadd.xlane.f32.xlu1 %v1224_v43  ;;  %v1865_v45 = vpack.c.bf16 %v1839_v32, %v1837_v21  ;;  %v1114_v47 = vpop.f32.mrf.mxu1 }
 0x1af   : > { %v1033_v8 = vpop.f32.mrf.mxu0  ;;  %v1841_v51 = vmax.f32 %v1113_v46, 0.0 }
 0x1b0   : > { %v3775_v12 = vadd.f32 %v1033_v8, %v3620_v54  ;;  %v1227_v15 = vadd.f32 %v1184_v2, %v1183_v63  ;;  %v1185_v26 = vmul.f32 %v3771_v4, %v3771_v4  ;;  %v1115_v63 = vadd.f32 %v1114_v47, %v3701_v3  ;;  %2059 = vmatprep.mubr.bf16.mxu1 %v1865_v45  ;;  %v1116_v6 = vpop.f32.mrf.mxu1 }
 0x1b1   : > { %v1037_v20 = vpop.f32.mrf.mxu0  ;;  %2060 = vmatmul.mubr.bf16.gmra.mxu1 %v1864_v39 }
 0x1b2   : > { %v1186_v27 = vmul.f32 %v3775_v12, %v3775_v12  ;;  %v3783_v29 = vadd.f32 %v1037_v20, %v3615_v53  ;;  %1228 = vadd.xlane.f32.xlu0 %v1227_v15  ;;  %v1840_v15 = vmax.f32 %v1111_v40, 0.0  ;;  %v1842_v16 = vmax.f32 %v1115_v63, 0.0  ;;  %v1120_v21 = vpop.f32.mrf.mxu1 }
 0x1b3   : > { %v1039_v31 = vpop.f32.mrf.mxu0  ;;  %v1117_v20 = vadd.f32 %v1116_v6, %v3704_v9 }
 0x1b4   : > { %v3786_v36 = vadd.f32 %v1039_v31, %v3620_v54  ;;  %v1230_v38 = vadd.f32 %v1186_v27, %v1185_v26  ;;  %v1187_v55 = vmul.f32 %v3783_v29, %v3783_v29  ;;  %v1122_v26 = vpop.f32.mrf.mxu1  ;;  %v1121_v31 = vadd.f32 %v1120_v21, %v3701_v3 }
 0x1b5   : > { %v1041_v43 = vpop.f32.mrf.mxu0  ;;  %v1843_v25 = vmax.f32 %v1117_v20, 0.0  ;;  %v1123_v32 = vadd.f32 %v1122_v26, %v3704_v9 }
 0x1b6   : > { %v1188_v57 = vmul.f32 %v3786_v36, %v3786_v36  ;;  %v3795_v59 = vadd.f32 %v1041_v43, %v3615_v53  ;;  %1231 = vadd.xlane.f32.xlu1 %v1230_v38  ;;  %v1124_v38 = vpop.f32.mrf.mxu1  ;;  %v1844_v43 = vmax.f32 %v1121_v31, 0.0 }
 0x1b7   : > { %v1043_v2 = vpop.f32.mrf.mxu0  ;;  %v1867_v33 = vpack.c.bf16 %v1843_v25, %v1841_v51  ;;  %v1125_v39 = vadd.f32 %v1124_v38, %v3701_v3  ;;  %v1845_v45 = vmax.f32 %v1123_v32, 0.0 }
 0x1b8   : > { %v3799_v8 = vadd.f32 %v1043_v2, %v3620_v54  ;;  %v1233_v11 = vadd.f32 %v1188_v57, %v1187_v55  ;;  %v1189_v53 = vmul.f32 %v3795_v59, %v3795_v59  ;;  %v1866_v54 = vpack.c.bf16 %v1842_v16, %v1840_v15  ;;  %v1126_v40 = vpop.f32.mrf.mxu1 }
 0x1b9   : > { %2067 = vmatprep.mubr.bf16.mxu1 %v1867_v33  ;;  %v1846_v46 = vmax.f32 %v1125_v39, 0.0  ;;  %v1127_v47 = vadd.f32 %v1126_v40, %v3704_v9 }
 0x1ba   : > { %v1190_v24 = vmul.f32 %v3799_v8, %v3799_v8  ;;  %1234 = vadd.xlane.f32.xlu0 %v1233_v11  ;;  %2068 = vmatmul.mubr.bf16.gmra.mxu1 %v1866_v54  ;;  %v1130_v55 = vpop.f32.mrf.mxu1 }
 0x1bb   : > { %v1847_v57 = vmax.f32 %v1127_v47, 0.0  ;;  %v1868_v2 = vpack.c.bf16 %v1846_v46, %v1844_v43  ;;  %v1131_v11 = vadd.f32 %v1130_v55, %v3701_v3 }
 0x1bc   : > { %v1236_v27 = vadd.f32 %v1190_v24, %v1189_v53  ;;  %v1132_v63 = vpop.f32.mrf.mxu1 }
 0x1bd   : > { %v1869_v6 = vpack.c.bf16 %v1847_v57, %v1845_v45  ;;  %v1133_v15 = vadd.f32 %v1132_v63, %v3704_v9  ;;  %v1848_v21 = vmax.f32 %v1131_v11, 0.0 }
 0x1be   : > { %1237 = vadd.xlane.f32.xlu1 %v1236_v27  ;;  %v1134_v16 = vpop.f32.mrf.mxu1 }
 0x1bf   : > { %v1135_v51 = vadd.f32 %v1134_v16, %v3701_v3  ;;  %2075 = vmatprep.mubr.bf16.mxu1 %v1869_v6  ;;  %v1849_v53 = vmax.f32 %v1133_v15, 0.0 }
 0x1c0   : > { %v1136_v20 = vpop.f32.mrf.mxu1 }
 0x1c1   : > { %v1850_v24 = vmax.f32 %v1135_v51, 0.0  ;;  %v1137_v25 = vadd.f32 %v1136_v20, %v3704_v9 }
 0x1c2   : > { %2076 = vmatmul.mubr.bf16.gmra.mxu1 %v1868_v2  ;;  %v1140_v26 = vpop.f32.mrf.mxu1 }
 0x1c3   : > { %v1851_v27 = vmax.f32 %v1137_v25, 0.0  ;;  %v1870_v31 = vpack.c.bf16 %v1850_v24, %v1848_v21  ;;  %v1141_v33 = vadd.f32 %v1140_v26, %v3701_v3 }
 0x1c4   : > { %v1142_v54 = vpop.f32.mrf.mxu1 }
 0x1c5   : > { %v1871_v32 = vpack.c.bf16 %v1851_v27, %v1849_v53  ;;  %v1143_v38 = vadd.f32 %v1142_v54, %v3704_v9  ;;  %v1852_v45 = vmax.f32 %v1141_v33, 0.0 }
 0x1c6   : > { %v1144_v39 = vpop.f32.mrf.mxu1 }
 0x1c7   : > { %v1145_v40 = vadd.f32 %v1144_v39, %v3701_v3  ;;  %2083 = vmatprep.mubr.bf16.mxu1 %v1871_v32  ;;  %v1853_v46 = vmax.f32 %v1143_v38, 0.0 }
 0x1c8   : > { %v1146_v43 = vpop.f32.mrf.mxu1 }
 0x1c9   : > { %v1854_v47 = vmax.f32 %v1145_v40, 0.0  ;;  %v1147_v55 = vadd.f32 %v1146_v43, %v3704_v9 }
 0x1ca   : > { %2084 = vmatmul.mubr.bf16.gmra.mxu1 %v1870_v31  ;;  %v1150_v57 = vpop.f32.mrf.mxu1 }
 0x1cb   : > { %v1855_v63 = vmax.f32 %v1147_v55, 0.0  ;;  %v1872_v6 = vpack.c.bf16 %v1854_v47, %v1852_v45  ;;  %v1151_v15 = vadd.f32 %v1150_v57, %v3701_v3 }
 0x1cc   : > { %v1152_v2 = vpop.f32.mrf.mxu1 }
 0x1cd   : > { %v1873_v11 = vpack.c.bf16 %v1855_v63, %v1853_v46  ;;  %v1153_v16 = vadd.f32 %v1152_v2, %v3704_v9  ;;  %v1856_v53 = vmax.f32 %v1151_v15, 0.0 }
 0x1ce   : > { %v1154_v51 = vpop.f32.mrf.mxu1 }
 0x1cf   : > { %v1155_v20 = vadd.f32 %v1154_v51, %v3701_v3  ;;  %2091 = vmatprep.mubr.bf16.mxu1 %v1873_v11  ;;  %v1857_v24 = vmax.f32 %v1153_v16, 0.0 }
 0x1d0   : > { %v1156_v21 = vpop.f32.mrf.mxu1 }
 0x1d1   : > { %v1858_v25 = vmax.f32 %v1155_v20, 0.0  ;;  %v1157_v26 = vadd.f32 %v1156_v21, %v3704_v9 }
 0x1d2   : > { %2092 = vmatmul.mubr.bf16.gmra.mxu1 %v1872_v6 }
 0x1d3   : > { %v1859_v27 = vmax.f32 %v1157_v26, 0.0  ;;  %v1874_v54 = vpack.c.bf16 %v1858_v25, %v1856_v53 }
 0x1d5   : > { %v1875_v31 = vpack.c.bf16 %v1859_v27, %v1857_v24 }
 0x1d7   : > { %2099 = vmatprep.mubr.bf16.mxu1 %v1875_v31 }
 0x1da   : > { %2100 = vmatmul.mubr.bf16.gmra.mxu1 %v1874_v54 }
 0x20b   : > { %v1193_v32 = vpop.xlane.xlu0 %1192 }
 0x20c   : > { %v1239_v33 = vmax.f32 %v1193_v32, 1e-24 }
 0x20e   : > { %3055 = vrsqrt.f32 %v1239_v33 }
 0x20f   : > { %v1196_v38 = vpop.xlane.xlu0 %1195 }
 0x210   : > { %v1240_v39 = vmax.f32 %v1196_v38, 1e-24 }
 0x212   : > { %3057 = vrsqrt.f32 %v1240_v39 }
 0x213   : > { %v1199_v3 = vpop.xlane.xlu1 %1198 }
 0x214   : > { %v1241_v40 = vmax.f32 %v1199_v3, 1e-24 }
 0x216   : > { %3059 = vrsqrt.f32 %v1241_v40 }
 0x217   : > { %v1202_v43 = vpop.xlane.xlu1 %1201 }
 0x218   : > { %v1242_v45 = vmax.f32 %v1202_v43, 1e-24 }
 0x21a   : > { %3061 = vrsqrt.f32 %v1242_v45 }
 0x21b   : > { %v3056_v9 = vpop.eup %3055  ;;  %v1205_v46 = vpop.xlane.xlu0 %1204 }
 0x21c   : > { %v1243_v47 = vmax.f32 %v1205_v46, 1e-24  ;;  %v1271_v55 = vmul.f32 %v3056_v9, %v3623_v56  ;;  %v1272_v57 = vmul.f32 %v3056_v9, %v3626_v58 }
 0x21e   : > { %3063 = vrsqrt.f32 %v1243_v47  ;;  %v2614_v63 = vpack.c.bf16 %v1272_v57, %v1271_v55 }
 0x21f   : > { %v3058_v2 = vpop.eup %3057  ;;  %v1208_v6 = vpop.xlane.xlu1 %1207 }
 0x220   : > { %v1244_v11 = vmax.f32 %v1208_v6, 1e-24  ;;  %v1273_v15 = vmul.f32 %v3058_v2, %v3629_v60  ;;  %v1274_v16 = vmul.f32 %v3058_v2, %v3636_v0  ;;  %1399 = vst [vmem:[%s3828_s15] sm:$0xff] %v2614_v63 }
 0x222   : > { %3065 = vrsqrt.f32 %v1244_v11  ;;  %v1304_v51 = vpack.c.bf16 %v1274_v16, %v1272_v57  ;;  %v2615_v56 = vpack.c.bf16 %v1274_v16, %v1273_v15  ;;  %v1303_v20 = vpack.c.bf16 %v1273_v15, %v1271_v55 }
 0x223   : > { %v3060_v58 = vpop.eup %3059  ;;  %v1211_v21 = vpop.xlane.xlu0 %1210 }
 0x224   : > { %v1245_v53 = vmax.f32 %v1211_v21, 1e-24  ;;  %1400 = vst [vmem:[%s3828_s15 + $0x8] sm:$0xff] %v2615_v56  ;;  %1639 = vmatprep.mubr.bf16.mxu0 %v1304_v51  ;;  %v1276_v60 = vmul.f32 %v3060_v58, %v3646_v7  ;;  %v1275_v0 = vmul.f32 %v3060_v58, %v3643_v5 }
 0x225   : > { %1640 = vmatmul.mubr.bf16.vlgmr.msra.gmra.mxu0 %v1303_v20 }
 0x226   : > { %3067 = vrsqrt.f32 %v1245_v53  ;;  %v2616_v24 = vpack.c.bf16 %v1276_v60, %v1275_v0 }
 0x227   : > { %v3062_v25 = vpop.eup %3061  ;;  %v1214_v26 = vpop.xlane.xlu1 %1213 }
 0x228   : > { %v1246_v27 = vmax.f32 %v1214_v26, 1e-24  ;;  %v1278_v54 = vmul.f32 %v3062_v25, %v3656_v14  ;;  %v1277_v31 = vmul.f32 %v3062_v25, %v3649_v10  ;;  %1401 = vst [vmem:[%s3828_s15 + $0x10] sm:$0xff] %v2616_v24 }
 0x22a   : > { %3069 = vrsqrt.f32 %v1246_v27  ;;  %v1306_v32 = vpack.c.bf16 %v1278_v54, %v1276_v60  ;;  %v1305_v33 = vpack.c.bf16 %v1277_v31, %v1275_v0  ;;  %v2617_v38 = vpack.c.bf16 %v1278_v54, %v1277_v31 }
 0x22b   : > { %v3064_v7 = vpop.eup %3063  ;;  %v1217_v39 = vpop.xlane.xlu0 %1216 }
 0x22c   : > { %v1247_v5 = vmax.f32 %v1217_v39, 1e-24  ;;  %1649 = vmatprep.mubr.bf16.mxu0 %v1306_v32  ;;  %1402 = vst [vmem:[%s3828_s15 + $0x18] sm:$0xff] %v2617_v38  ;;  %v1280_v3 = vmul.f32 %v3064_v7, %v3666_v23  ;;  %v1279_v40 = vmul.f32 %v3064_v7, %v3663_v19 }
 0x22d   : > { %1650 = vmatmul.mubr.bf16.gmra.mxu0 %v1305_v33 }
 0x22e   : > { %3071 = vrsqrt.f32 %v1247_v5  ;;  %v2618_v14 = vpack.c.bf16 %v1280_v3, %v1279_v40 }
 0x22f   : > { %v3066_v10 = vpop.eup %3065  ;;  %v1220_v43 = vpop.xlane.xlu1 %1219 }
 0x230   : > { %v1248_v45 = vmax.f32 %v1220_v43, 1e-24  ;;  %v1282_v9 = vmul.f32 %v3066_v10, %v3676_v34  ;;  %v1281_v46 = vmul.f32 %v3066_v10, %v3673_v30  ;;  %1403 = vst [vmem:[%s3828_s15 + $0x20] sm:$0xff] %v2618_v14 }
 0x232   : > { %3073 = vrsqrt.f32 %v1248_v45  ;;  %v1308_v47 = vpack.c.bf16 %v1282_v9, %v1280_v3  ;;  %v1307_v55 = vpack.c.bf16 %v1281_v46, %v1279_v40  ;;  %v2619_v57 = vpack.c.bf16 %v1282_v9, %v1281_v46 }
 0x233   : > { %v3068_v23 = vpop.eup %3067  ;;  %v1223_v63 = vpop.xlane.xlu0 %1222 }
 0x234   : > { %v1249_v19 = vmax.f32 %v1223_v63, 1e-24  ;;  %1659 = vmatprep.mubr.bf16.mxu0 %v1308_v47  ;;  %1404 = vst [vmem:[%s3828_s15 + $0x28] sm:$0xff] %v2619_v57  ;;  %v1284_v2 = vmul.f32 %v3068_v23, %v3686_v44  ;;  %v1283_v6 = vmul.f32 %v3068_v23, %v3683_v41 }
 0x235   : > { %1660 = vmatmul.mubr.bf16.gmra.mxu0 %v1307_v55 }
 0x236   : > { %3075 = vrsqrt.f32 %v1249_v19  ;;  %v2620_v34 = vpack.c.bf16 %v1284_v2, %v1283_v6 }
 0x237   : > { %v3070_v30 = vpop.eup %3069  ;;  %v1226_v11 = vpop.xlane.xlu1 %1225 }
 0x238   : > { %v1250_v15 = vmax.f32 %v1226_v11, 1e-24  ;;  %v1286_v16 = vmul.f32 %v3070_v30, %v3698_v1  ;;  %v1285_v51 = vmul.f32 %v3070_v30, %v3695_v61  ;;  %1405 = vst [vmem:[%s3828_s15 + $0x30] sm:$0xff] %v2620_v34 }
 0x23a   : > { %3077 = vrsqrt.f32 %v1250_v15  ;;  %v1310_v56 = vpack.c.bf16 %v1286_v16, %v1284_v2  ;;  %v1309_v20 = vpack.c.bf16 %v1285_v51, %v1283_v6  ;;  %v2621_v58 = vpack.c.bf16 %v1286_v16, %v1285_v51 }
 0x23b   : > { %v3072_v44 = vpop.eup %3071  ;;  %v1229_v21 = vpop.xlane.xlu0 %1228 }
 0x23c   : > { %v1251_v41 = vmax.f32 %v1229_v21, 1e-24  ;;  %1669 = vmatprep.mubr.bf16.mxu0 %v1310_v56  ;;  %1406 = vst [vmem:[%s3828_s15 + $0x38] sm:$0xff] %v2621_v58  ;;  %v1288_v53 = vmul.f32 %v3072_v44, %v3714_v18  ;;  %v1287_v60 = vmul.f32 %v3072_v44, %v3711_v13 }
 0x23d   : > { %1670 = vmatmul.mubr.bf16.gmra.mxu0 %v1309_v20 }
 0x23e   : > { %3079 = vrsqrt.f32 %v1251_v41  ;;  %v2622_v1 = vpack.c.bf16 %v1288_v53, %v1287_v60 }
 0x23f   : > { %v3074_v61 = vpop.eup %3073  ;;  %v1232_v0 = vpop.xlane.xlu1 %1231 }
 0x240   : > { %v1252_v24 = vmax.f32 %v1232_v0, 1e-24  ;;  %v1290_v25 = vmul.f32 %v3074_v61, %v3727_v35  ;;  %v1289_v26 = vmul.f32 %v3074_v61, %v3723_v28  ;;  %1407 = vst [vmem:[%s3828_s15 + $0x40] sm:$0xff] %v2622_v1 }
 0x242   : > { %3081 = vrsqrt.f32 %v1252_v24  ;;  %v1312_v27 = vpack.c.bf16 %v1290_v25, %v1288_v53  ;;  %v1311_v54 = vpack.c.bf16 %v1289_v26, %v1287_v60  ;;  %v2623_v31 = vpack.c.bf16 %v1290_v25, %v1289_v26 }
 0x243   : > { %v3076_v18 = vpop.eup %3075  ;;  %v1235_v32 = vpop.xlane.xlu0 %1234 }
 0x244   : > { %v1253_v13 = vmax.f32 %v1235_v32, 1e-24  ;;  %1679 = vmatprep.mubr.bf16.mxu0 %v1312_v27  ;;  %1408 = vst [vmem:[%s3828_s15 + $0x48] sm:$0xff] %v2623_v31  ;;  %v1292_v33 = vmul.f32 %v3076_v18, %v3738_v62  ;;  %v1291_v38 = vmul.f32 %v3076_v18, %v3735_v48 }
 0x245   : > { %1680 = vmatmul.mubr.bf16.gmra.mxu0 %v1311_v54 }
 0x246   : > { %3083 = vrsqrt.f32 %v1253_v13  ;;  %v2624_v35 = vpack.c.bf16 %v1292_v33, %v1291_v38 }
 0x247   : > { %v3078_v28 = vpop.eup %3077  ;;  %v1238_v7 = vpop.xlane.xlu1 %1237 }
 0x248   : > { %v1254_v39 = vmax.f32 %v1238_v7, 1e-24  ;;  %v1294_v5 = vmul.f32 %v3078_v28, %v3751_v22  ;;  %v1293_v3 = vmul.f32 %v3078_v28, %v3747_v17  ;;  %1409 = vst [vmem:[%s3828_s15 + $0x50] sm:$0xff] %v2624_v35 }
 0x24a   : > { %3085 = vrsqrt.f32 %v1254_v39  ;;  %v1314_v40 = vpack.c.bf16 %v1294_v5, %v1292_v33  ;;  %v1313_v14 = vpack.c.bf16 %v1293_v3, %v1291_v38  ;;  %v2625_v10 = vpack.c.bf16 %v1294_v5, %v1293_v3 }
 0x24b   : > { %v3080_v62 = vpop.eup %3079 }
 0x24c   : > { %1689 = vmatprep.mubr.bf16.mxu0 %v1314_v40  ;;  %1410 = vst [vmem:[%s3828_s15 + $0x58] sm:$0xff] %v2625_v10  ;;  %v1296_v48 = vmul.f32 %v3080_v62, %v3762_v42  ;;  %v1295_v43 = vmul.f32 %v3080_v62, %v3759_v37 }
 0x24d   : > { %1690 = vmatmul.mubr.bf16.gmra.mxu0 %v1313_v14 }
 0x24e   : > { %v2626_v45 = vpack.c.bf16 %v1296_v48, %v1295_v43 }
 0x24f   : > { %v3082_v9 = vpop.eup %3081 }
 0x250   : > { %v1298_v22 = vmul.f32 %v3082_v9, %v3775_v12  ;;  %v1297_v17 = vmul.f32 %v3082_v9, %v3771_v4  ;;  %1411 = vst [vmem:[%s3828_s15 + $0x60] sm:$0xff] %v2626_v45 }
 0x252   : > { %v1316_v46 = vpack.c.bf16 %v1298_v22, %v1296_v48  ;;  %v1315_v47 = vpack.c.bf16 %v1297_v17, %v1295_v43  ;;  %v2627_v55 = vpack.c.bf16 %v1298_v22, %v1297_v17 }
 0x253   : > { %v3084_v57 = vpop.eup %3083 }
 0x254   : > { %1699 = vmatprep.mubr.bf16.mxu0 %v1316_v46  ;;  %1412 = vst [vmem:[%s3828_s15 + $0x68] sm:$0xff] %v2627_v55  ;;  %v1300_v42 = vmul.f32 %v3084_v57, %v3786_v36  ;;  %v1299_v37 = vmul.f32 %v3084_v57, %v3783_v29  ;;  %v3877_v29 = vld [vmem:[%s4107_s6] ss:$0 sm:$0xff] }
 0x255   : > { %1700 = vmatmul.mubr.bf16.gmra.mxu0 %v1315_v47 }
 0x256   : > { %v2628_v23 = vpack.c.bf16 %v1300_v42, %v1299_v37 }
 0x257   : > { %v3086_v63 = vpop.eup %3085 }
 0x258   : > { %v1302_v12 = vmul.f32 %v3086_v63, %v3799_v8  ;;  %v1301_v4 = vmul.f32 %v3086_v63, %v3795_v59  ;;  %1413 = vst [vmem:[%s3828_s15 + $0x70] sm:$0xff] %v2628_v23 }
 0x25a   : > { %v1318_v19 = vpack.c.bf16 %v1302_v12, %v1300_v42  ;;  %v1317_v2 = vpack.c.bf16 %v1301_v4, %v1299_v37  ;;  %v2629_v6 = vpack.c.bf16 %v1302_v12, %v1301_v4 }
 0x25c   : > { %1709 = vmatprep.mubr.bf16.mxu0 %v1318_v19  ;;  %1414 = vst [vmem:[%s3828_s15 + $0x78] sm:$0xff] %v2629_v6 }
 0x25d   : > { %1710 = vmatmul.mubr.bf16.gmra.mxu0 %v1317_v2  ;;  %v2714_v34 = vpop.f32.mrf.mxu1 }
 0x25f   : > { %v2715_v30 = vpop.f32.mrf.mxu1 }
 0x260   : > { %v2716_v36 = vadd.f32 %v2715_v30, %v2714_v34 }
 0x261   : > { %v2717_v11 = vpop.f32.mrf.mxu1 }
 0x262   : > { %v2046_v15 = vadd.f32 %v2716_v36, %v3877_v29 }
 0x263   : > { %v2718_v8 = vpop.f32.mrf.mxu1 }
 0x264   : > { %v2719_v59 = vadd.f32 %v2718_v8, %v2717_v11 }
 0x266   : > { %v2049_v51 = vadd.f32 %v2719_v59, %v3877_v29 }
 0x268   : > { %v2720_v16 = vpop.f32.mrf.mxu1  ;;  %v2654_v20 = vpack.c.bf16 %v2049_v51, %v2046_v15 }
 0x26a   : > { %v2721_v56 = vpop.f32.mrf.mxu1  ;;  %2655 = vst [vmem:[%s3882_s28] sm:$0xff] %v2654_v20  }
 0x26b   : > { %v2722_v58 = vadd.f32 %v2721_v56, %v2720_v16 }
 0x26c   : > { %v2723_v44 = vpop.f32.mrf.mxu1 }
 0x26d   : > { %v2054_v41 = vadd.f32 %v2722_v58, %v3877_v29 }
 0x26e   : > { %v2724_v21 = vpop.f32.mrf.mxu1 }
 0x26f   : > { %v2725_v53 = vadd.f32 %v2724_v21, %v2723_v44 }
 0x271   : > { %v2726_v60 = vpop.f32.mrf.mxu1  ;;  %v2057_v1 = vadd.f32 %v2725_v53, %v3877_v29 }
 0x273   : > { %v2727_v61 = vpop.f32.mrf.mxu1  ;;  %v2659_v0 = vpack.c.bf16 %v2057_v1, %v2054_v41 }
 0x274   : > { %v2728_v24 = vadd.f32 %v2727_v61, %v2726_v60 }
 0x275   : > { %v2729_v25 = vpop.f32.mrf.mxu1  ;;  %2691 = vst [vmem:[%s3882_s28 + $0x8] sm:$0xff] %v2659_v0  }
 0x276   : > { %v2062_v27 = vadd.f32 %v2728_v24, %v3877_v29 }
 0x277   : > { %v2730_v26 = vpop.f32.mrf.mxu1 }
 0x278   : > { %v2731_v54 = vadd.f32 %v2730_v26, %v2729_v25 }
 0x27a   : > { %v2732_v31 = vpop.f32.mrf.mxu1  ;;  %v2065_v18 = vadd.f32 %v2731_v54, %v3877_v29 }
 0x27c   : > { %v2733_v32 = vpop.f32.mrf.mxu1  ;;  %v2664_v13 = vpack.c.bf16 %v2065_v18, %v2062_v27 }
 0x27d   : > { %v2734_v33 = vadd.f32 %v2733_v32, %v2732_v31 }
 0x27e   : > { %v2735_v38 = vpop.f32.mrf.mxu1  ;;  %2692 = vst [vmem:[%s3882_s28 + $0x10] sm:$0xff] %v2664_v13  }
 0x27f   : > { %v2070_v28 = vadd.f32 %v2734_v33, %v3877_v29 }
 0x280   : > { %v2736_v35 = vpop.f32.mrf.mxu1 }
 0x281   : > { %v2737_v7 = vadd.f32 %v2736_v35, %v2735_v38 }
 0x282   : > { %v2738_v39 = vpop.f32.mrf.mxu1 }
 0x283   : > { %v2073_v5 = vadd.f32 %v2737_v7, %v3877_v29 }
 0x284   : > { %v2739_v3 = vpop.f32.mrf.mxu1 }
 0x285   : > { %v2669_v40 = vpack.c.bf16 %v2073_v5, %v2070_v28  ;;  %v2740_v14 = vadd.f32 %v2739_v3, %v2738_v39 }
 0x286   : > { %v2741_v10 = vpop.f32.mrf.mxu1 }
 0x287   : > { %2693 = vst [vmem:[%s3882_s28 + $0x18] sm:$0xff] %v2669_v40   ;;  %v2078_v48 = vadd.f32 %v2740_v14, %v3877_v29 }
 0x288   : > { %v2742_v62 = vpop.f32.mrf.mxu1 }
 0x289   : > { %v2743_v43 = vadd.f32 %v2742_v62, %v2741_v10 }
 0x28a   : > { %v2744_v45 = vpop.f32.mrf.mxu1 }
 0x28b   : > { %v2081_v9 = vadd.f32 %v2743_v43, %v3877_v29 }
 0x28c   : > { %v2745_v22 = vpop.f32.mrf.mxu1 }
 0x28d   : > { %v2674_v17 = vpack.c.bf16 %v2081_v9, %v2078_v48  ;;  %v2746_v46 = vadd.f32 %v2745_v22, %v2744_v45 }
 0x28e   : > { %v2747_v47 = vpop.f32.mrf.mxu1 }
 0x28f   : > { %2694 = vst [vmem:[%s3882_s28 + $0x20] sm:$0xff] %v2674_v17   ;;  %v2086_v57 = vadd.f32 %v2746_v46, %v3877_v29 }
 0x290   : > { %v2748_v55 = vpop.f32.mrf.mxu1 }
 0x291   : > { %v2749_v42 = vadd.f32 %v2748_v55, %v2747_v47 }
 0x292   : > { %v2750_v37 = vpop.f32.mrf.mxu1 }
 0x293   : > { %v2089_v23 = vadd.f32 %v2749_v42, %v3877_v29 }
 0x294   : > { %v2751_v63 = vpop.f32.mrf.mxu1 }
 0x295   : > { %v2679_v12 = vpack.c.bf16 %v2089_v23, %v2086_v57  ;;  %v2752_v4 = vadd.f32 %v2751_v63, %v2750_v37 }
 0x296   : > { %v2753_v19 = vpop.f32.mrf.mxu1 }
 0x297   : > { %2695 = vst [vmem:[%s3882_s28 + $0x28] sm:$0xff] %v2679_v12   ;;  %v2094_v6 = vadd.f32 %v2752_v4, %v3877_v29 }
 0x298   : > { %v2754_v2 = vpop.f32.mrf.mxu1 }
 0x299   : > { %v2755_v34 = vadd.f32 %v2754_v2, %v2753_v19 }
 0x29a   : > { %v2756_v30 = vpop.f32.mrf.mxu1 }
 0x29b   : > { %v2097_v36 = vadd.f32 %v2755_v34, %v3877_v29 }
 0x29c   : > { %v2757_v11 = vpop.f32.mrf.mxu1 }
 0x29d   : > { %v2684_v8 = vpack.c.bf16 %v2097_v36, %v2094_v6  ;;  %v2758_v15 = vadd.f32 %v2757_v11, %v2756_v30 }
 0x29e   : > { %v2759_v59 = vpop.f32.mrf.mxu1 }
 0x29f   : > { %2696 = vst [vmem:[%s3882_s28 + $0x30] sm:$0xff] %v2684_v8   ;;  %v2102_v51 = vadd.f32 %v2758_v15, %v3877_v29 }
 0x2a0   : > { %v2760_v16 = vpop.f32.mrf.mxu1 }
 0x2a1   : > { %v2761_v56 = vadd.f32 %v2760_v16, %v2759_v59 }
 0x2a3   : > { %v2105_v20 = vadd.f32 %v2761_v56, %v3877_v29 }
 0x2a5   : > { %v2689_v58 = vpack.c.bf16 %v2105_v20, %v2102_v51 }
 0x2a7   : > { %2697 = vst [vmem:[%s3882_s28 + $0x38] sm:$0xff] %v2689_v58  }
 0x2a8   : > { %3232 = shalt.err (!%p3229_p5)
}
 0x2a9   : > { %s3233_s28 = scalar_lea.hbm %s3911_s21, 1024  ;;  %s3237_s26 = scalar_lea.hbm %s4109_s8, 2048 }
 0x2aa   : > { %p3234_p0 = scmp.ne.s32.totalorder %s3911_s21, %s3233_s28  ;;  %p3238_p10 = scmp.lt.s32.totalorder %s3911_s21, %s4109_s8 }
 0x2ab   : > { %p3239_p1 = scmp.lt.s32.totalorder %s3237_s26, %s3233_s28 }
 0x2ac   : > { %p3235_p7 = pnand %p3234_p0, %p4139_p8 }
 0x2ad   : > { %p3240_p2 = por %p3239_p1, %p3238_p10 }
 0x2ae   : > { %p3236_p11 = pneg %p3235_p7 }
 0x2b0   : > { %p3241_p4 = pnand %p3240_p2, %p3236_p11 }
 0x2b2   : > { %3244 = shalt.err (!%p3241_p4)
}
 0x2b3   : > { %s3361_s29 = smov 64   ;;  %s3362_s18 = smov 4  }
 0x2b4   : > { %2781 = dma.vmem_to_hbm [thread:$0]  (%p4139_p8), %s3913_s20, 1024, %s3911_s21, %s3917_s24, %s3361_s29, %s3361_s29, %s3362_s18  }
 0x2b5   : > { %s3945_s22 = scalar_lea.hbm %s4110_s9, %s2650_s3  ;;  %s2246_s28 = sshll.u32 %s3828_s15, 4  ;;  %s3948_s28 = int_to_ptr.vmem [resolvable:$true] %s2246_s28 }
 0x2b6   : > { %s3245_s26 = scalar_lea.vmem %s3948_s28, 2048  ;;  %s3363_s1 = smov [#allocation14]  }
 0x2b7   : > { %p3246_p12 = scmp.ne.s32.totalorder %s3948_s28, %s3245_s26  ;;  %s3249_s17 = sshll.u32 %s3363_s1, 4  ;;  %s3250_s17 = int_to_ptr.vmem [resolvable:$false] %s3249_s17 }
 0x2b8   : > { %s3251_s20 = scalar_lea.vmem %s3250_s17, 4096  ;;  %p3252_p9 = scmp.lt.s32.totalorder %s3948_s28, %s3250_s17 }
 0x2b9   : > { %p3247_p6 = pnand %p3246_p12, %p4139_p8  ;;  %p3253_p13 = scmp.lt.s32.totalorder %s3251_s20, %s3245_s26 }
 0x2bb   : > { %p3248_p3 = pneg %p3247_p6  ;;  %p3254_p5 = por %p3253_p13, %p3252_p9 }
 0x2bd   : > { %p3255_p0 = pnand %p3254_p5, %p3248_p3 }
 0x2bf   : > { %3258 = shalt.err (!%p3255_p0)
}
 0x2c0   : > { %s3259_s15 = scalar_lea.hbm %s3945_s22, 2048  ;;  %s3263_s29 = scalar_lea.hbm %s4110_s9, 4096 }
 0x2c1   : > { %p3260_p7 = scmp.ne.s32.totalorder %s3945_s22, %s3259_s15  ;;  %p3264_p1 = scmp.lt.s32.totalorder %s3945_s22, %s4110_s9 }
 0x2c2   : > { %p3265_p2 = scmp.lt.s32.totalorder %s3263_s29, %s3259_s15 }
 0x2c3   : > { %p3261_p11 = pnand %p3260_p7, %p4139_p8 }
 0x2c4   : > { %p3266_p4 = por %p3265_p2, %p3264_p1 }
 0x2c5   : > { %p3262_p10 = pneg %p3261_p11 }
 0x2c7   : > { %p3267_p12 = pnand %p3266_p4, %p3262_p10 }
 0x2c9   : > { %3270 = shalt.err (!%p3267_p12)
}
 0x2ca   : > { %s3364_s23 = smov 128   ;;  %s3365_s26 = smov 8   ;;  %v1752_v29 = vld [vmem:[%s4105_s4] sm:$0x3] }
 0x2cb   : > { %2782 = dma.vmem_to_hbm [thread:$0]  (%p4139_p8), %s3948_s28, 2048, %s3945_s22, %s3917_s24, %s3364_s23, %s3364_s23, %s3365_s26   ;;  %v3977_v44 = vrot.slane %v1752_v29, %v515_v50  ;;  %v3981_v53 = vrot.slane %v1752_v29, %v519_v52 }
 0x2cc   : > { %s2435_s20 = sshll.u32 %s3570_s2, 8  ;;  %s2647_s22 = sshll.u32 %s3440_s13, 12 }
 0x2cd   : > { %s3984_s24 = scalar_lea.vmem [#allocation11], %s2435_s20  ;;  %s4051_s3 = scalar_lea.hbm %s4108_s7, %s2647_s22 }
 0x2ce   : > { %s2213_s28 = sshll.u32 %s3984_s24, 4  ;;  %s2189_s13 = scalar_lea.sflag [#allocation4], %s3570_s2  ;;  %s4053_s28 = int_to_ptr.vmem [resolvable:$true] %s2213_s28 }
 0x2cf   : > { %s3271_s29 = scalar_lea.vmem %s4053_s28, 4096  ;;  %s3366_s18 = smov [#allocation11]  }
 0x2d0   : > { %p3272_p6 = scmp.ne.s32.totalorder %s4053_s28, %s3271_s29  ;;  %s3275_s25 = sshll.u32 %s3366_s18, 4  ;;  %s3276_s25 = int_to_ptr.vmem [resolvable:$false] %s3275_s25 }
 0x2d1   : > { %s3277_s23 = scalar_lea.vmem %s3276_s25, 8192  ;;  %p3278_p13 = scmp.lt.s32.totalorder %s4053_s28, %s3276_s25 }
 0x2d2   : > { %p3273_p3 = pnand %p3272_p6, %p4139_p8  ;;  %p3279_p5 = scmp.lt.s32.totalorder %s3277_s23, %s3271_s29 }
 0x2d4   : > { %p3274_p9 = pneg %p3273_p3  ;;  %p3280_p0 = por %p3279_p5, %p3278_p13 }
 0x2d6   : > { %p3281_p7 = pnand %p3280_p0, %p3274_p9 }
 0x2e5   : > { %v1641_v21 = vpop.f32.mrf.mxu0 }
 0x2e6   : > { %v1720_v41 = vmul.f32 50.0, %v1641_v21 }
 0x2e7   : > { %v1643_v60 = vpop.f32.mrf.mxu0 }
 0x2e8   : > { %v1764_v1 = vadd.f32 %v3977_v44, %v1720_v41  ;;  %v1721_v61 = vmul.f32 50.0, %v1643_v60 }
 0x2e9   : > { %v1645_v0 = vpop.f32.mrf.mxu0 }
 0x2ea   : > { %1796 = vst [vmem:[%s3984_s24] sm:$0xff] %v1764_v1  ;;  %v1765_v50 = vadd.f32 %v3981_v53, %v1721_v61  ;;  %v1722_v24 = vmul.f32 50.0, %v1645_v0 }
 0x2eb   : > { %v1647_v25 = vpop.f32.mrf.mxu0 }
 0x2ec   : > { %1797 = vst [vmem:[%s3984_s24 + $0x8] sm:$0xff] %v1765_v50  ;;  %v1766_v49 = vadd.f32 %v3977_v44, %v1722_v24  ;;  %v1723_v52 = vmul.f32 50.0, %v1647_v25 }
 0x2ed   : > { %v1651_v26 = vpop.f32.mrf.mxu0 }
 0x2ee   : > { %1798 = vst [vmem:[%s3984_s24 + $0x10] sm:$0xff] %v1766_v49  ;;  %v1767_v27 = vadd.f32 %v3981_v53, %v1723_v52  ;;  %v1724_v54 = vmul.f32 50.0, %v1651_v26 }
 0x2ef   : > { %v1653_v31 = vpop.f32.mrf.mxu0 }
 0x2f0   : > { %1799 = vst [vmem:[%s3984_s24 + $0x18] sm:$0xff] %v1767_v27  ;;  %v1768_v18 = vadd.f32 %v3977_v44, %v1724_v54  ;;  %v1725_v32 = vmul.f32 50.0, %v1653_v31 }
 0x2f1   : > { %v1655_v13 = vpop.f32.mrf.mxu0 }
 0x2f2   : > { %1800 = vst [vmem:[%s3984_s24 + $0x20] sm:$0xff] %v1768_v18  ;;  %v1769_v33 = vadd.f32 %v3981_v53, %v1725_v32  ;;  %v1726_v38 = vmul.f32 50.0, %v1655_v13 }
 0x2f3   : > { %v1657_v35 = vpop.f32.mrf.mxu0 }
 0x2f4   : > { %1801 = vst [vmem:[%s3984_s24 + $0x28] sm:$0xff] %v1769_v33  ;;  %v1770_v28 = vadd.f32 %v3977_v44, %v1726_v38  ;;  %v1727_v7 = vmul.f32 50.0, %v1657_v35 }
 0x2f5   : > { %v1661_v39 = vpop.f32.mrf.mxu0 }
 0x2f6   : > { %1802 = vst [vmem:[%s3984_s24 + $0x30] sm:$0xff] %v1770_v28  ;;  %v1771_v5 = vadd.f32 %v3981_v53, %v1727_v7  ;;  %v1728_v3 = vmul.f32 50.0, %v1661_v39 }
 0x2f7   : > { %v1663_v40 = vpop.f32.mrf.mxu0 }
 0x2f8   : > { %1803 = vst [vmem:[%s3984_s24 + $0x38] sm:$0xff] %v1771_v5  ;;  %v1772_v14 = vadd.f32 %v3977_v44, %v1728_v3  ;;  %v1729_v10 = vmul.f32 50.0, %v1663_v40 }
 0x2f9   : > { %v1665_v62 = vpop.f32.mrf.mxu0 }
 0x2fa   : > { %1804 = vst [vmem:[%s3984_s24 + $0x40] sm:$0xff] %v1772_v14  ;;  %v1773_v48 = vadd.f32 %v3981_v53, %v1729_v10  ;;  %v1730_v43 = vmul.f32 50.0, %v1665_v62 }
 0x2fb   : > { %v1667_v45 = vpop.f32.mrf.mxu0 }
 0x2fc   : > { %1805 = vst [vmem:[%s3984_s24 + $0x48] sm:$0xff] %v1773_v48  ;;  %v1774_v9 = vadd.f32 %v3977_v44, %v1730_v43  ;;  %v1731_v22 = vmul.f32 50.0, %v1667_v45 }
 0x2fd   : > { %v1671_v17 = vpop.f32.mrf.mxu0 }
 0x2fe   : > { %1806 = vst [vmem:[%s3984_s24 + $0x50] sm:$0xff] %v1774_v9  ;;  %v1775_v46 = vadd.f32 %v3981_v53, %v1731_v22  ;;  %v1732_v47 = vmul.f32 50.0, %v1671_v17 }
 0x2ff   : > { %v1673_v55 = vpop.f32.mrf.mxu0 }
 0x300   : > { %1807 = vst [vmem:[%s3984_s24 + $0x58] sm:$0xff] %v1775_v46  ;;  %v1776_v57 = vadd.f32 %v3977_v44, %v1732_v47  ;;  %v1733_v42 = vmul.f32 50.0, %v1673_v55 }
 0x301   : > { %v1675_v37 = vpop.f32.mrf.mxu0 }
 0x302   : > { %1808 = vst [vmem:[%s3984_s24 + $0x60] sm:$0xff] %v1776_v57  ;;  %v1777_v23 = vadd.f32 %v3981_v53, %v1733_v42  ;;  %v1734_v63 = vmul.f32 50.0, %v1675_v37 }
 0x303   : > { %v1677_v12 = vpop.f32.mrf.mxu0 }
 0x304   : > { %1809 = vst [vmem:[%s3984_s24 + $0x68] sm:$0xff] %v1777_v23  ;;  %v1778_v4 = vadd.f32 %v3977_v44, %v1734_v63  ;;  %v1735_v19 = vmul.f32 50.0, %v1677_v12 }
 0x305   : > { %v1681_v2 = vpop.f32.mrf.mxu0 }
 0x306   : > { %1810 = vst [vmem:[%s3984_s24 + $0x70] sm:$0xff] %v1778_v4  ;;  %v1779_v6 = vadd.f32 %v3981_v53, %v1735_v19  ;;  %v1736_v34 = vmul.f32 50.0, %v1681_v2 }
 0x307   : > { %v1683_v30 = vpop.f32.mrf.mxu0 }
 0x308   : > { %1811 = vst [vmem:[%s3984_s24 + $0x78] sm:$0xff] %v1779_v6  ;;  %v1780_v36 = vadd.f32 %v3977_v44, %v1736_v34  ;;  %v1737_v11 = vmul.f32 50.0, %v1683_v30 }
 0x309   : > { %v1685_v8 = vpop.f32.mrf.mxu0 }
 0x30a   : > { %1812 = vst [vmem:[%s3984_s24 + $0x80] sm:$0xff] %v1780_v36  ;;  %v1781_v15 = vadd.f32 %v3981_v53, %v1737_v11  ;;  %v1738_v59 = vmul.f32 50.0, %v1685_v8 }
 0x30b   : > { %v1687_v16 = vpop.f32.mrf.mxu0 }
 0x30c   : > { %1813 = vst [vmem:[%s3984_s24 + $0x88] sm:$0xff] %v1781_v15  ;;  %v1782_v51 = vadd.f32 %v3977_v44, %v1738_v59  ;;  %v1739_v56 = vmul.f32 50.0, %v1687_v16 }
 0x30d   : > { %v1691_v20 = vpop.f32.mrf.mxu0 }
 0x30e   : > { %1814 = vst [vmem:[%s3984_s24 + $0x90] sm:$0xff] %v1782_v51  ;;  %v1783_v58 = vadd.f32 %v3981_v53, %v1739_v56  ;;  %v1740_v29 = vmul.f32 50.0, %v1691_v20 }
 0x30f   : > { %v1693_v21 = vpop.f32.mrf.mxu0 }
 0x310   : > { %1815 = vst [vmem:[%s3984_s24 + $0x98] sm:$0xff] %v1783_v58  ;;  %v1784_v41 = vadd.f32 %v3977_v44, %v1740_v29  ;;  %v1741_v60 = vmul.f32 50.0, %v1693_v21 }
 0x311   : > { %v1695_v1 = vpop.f32.mrf.mxu0 }
 0x312   : > { %1816 = vst [vmem:[%s3984_s24 + $0xa0] sm:$0xff] %v1784_v41  ;;  %v1785_v61 = vadd.f32 %v3981_v53, %v1741_v60  ;;  %v1742_v0 = vmul.f32 50.0, %v1695_v1 }
 0x313   : > { %v1697_v50 = vpop.f32.mrf.mxu0 }
 0x314   : > { %1817 = vst [vmem:[%s3984_s24 + $0xa8] sm:$0xff] %v1785_v61  ;;  %v1786_v24 = vadd.f32 %v3977_v44, %v1742_v0  ;;  %v1743_v25 = vmul.f32 50.0, %v1697_v50 }
 0x315   : > { %v1701_v49 = vpop.f32.mrf.mxu0 }
 0x316   : > { %1818 = vst [vmem:[%s3984_s24 + $0xb0] sm:$0xff] %v1786_v24  ;;  %v1787_v52 = vadd.f32 %v3981_v53, %v1743_v25  ;;  %v1744_v26 = vmul.f32 50.0, %v1701_v49 }
 0x317   : > { %v1703_v27 = vpop.f32.mrf.mxu0 }
 0x318   : > { %1819 = vst [vmem:[%s3984_s24 + $0xb8] sm:$0xff] %v1787_v52  ;;  %v1788_v54 = vadd.f32 %v3977_v44, %v1744_v26  ;;  %v1745_v31 = vmul.f32 50.0, %v1703_v27 }
 0x319   : > { %v1705_v18 = vpop.f32.mrf.mxu0 }
 0x31a   : > { %1820 = vst [vmem:[%s3984_s24 + $0xc0] sm:$0xff] %v1788_v54  ;;  %v1789_v32 = vadd.f32 %v3981_v53, %v1745_v31  ;;  %v1746_v13 = vmul.f32 50.0, %v1705_v18 }
 0x31b   : > { %v1707_v33 = vpop.f32.mrf.mxu0 }
 0x31c   : > { %1821 = vst [vmem:[%s3984_s24 + $0xc8] sm:$0xff] %v1789_v32  ;;  %v1790_v38 = vadd.f32 %v3977_v44, %v1746_v13  ;;  %v1747_v35 = vmul.f32 50.0, %v1707_v33 }
 0x31d   : > { %v1711_v28 = vpop.f32.mrf.mxu0 }
 0x31e   : > { %1822 = vst [vmem:[%s3984_s24 + $0xd0] sm:$0xff] %v1790_v38  ;;  %v1791_v7 = vadd.f32 %v3981_v53, %v1747_v35  ;;  %v1748_v39 = vmul.f32 50.0, %v1711_v28 }
 0x31f   : > { %v1713_v5 = vpop.f32.mrf.mxu0 }
 0x320   : > { %1823 = vst [vmem:[%s3984_s24 + $0xd8] sm:$0xff] %v1791_v7  ;;  %v1792_v3 = vadd.f32 %v3977_v44, %v1748_v39  ;;  %v1749_v40 = vmul.f32 50.0, %v1713_v5 }
 0x321   : > { %v1715_v14 = vpop.f32.mrf.mxu0 }
 0x322   : > { %1824 = vst [vmem:[%s3984_s24 + $0xe0] sm:$0xff] %v1792_v3  ;;  %v1793_v10 = vadd.f32 %v3981_v53, %v1749_v40  ;;  %v1750_v62 = vmul.f32 50.0, %v1715_v14 }
 0x323   : > { %v1717_v48 = vpop.f32.mrf.mxu0 }
 0x324   : > { %1825 = vst [vmem:[%s3984_s24 + $0xe8] sm:$0xff] %v1793_v10  ;;  %v1794_v43 = vadd.f32 %v3977_v44, %v1750_v62  ;;  %v1751_v45 = vmul.f32 50.0, %v1717_v48 }
 0x326   : > { %1826 = vst [vmem:[%s3984_s24 + $0xf0] sm:$0xff] %v1794_v43  ;;  %v1795_v9 = vadd.f32 %v3981_v53, %v1751_v45 }
 0x328   : > { %1827 = vst [vmem:[%s3984_s24 + $0xf8] sm:$0xff] %v1795_v9 }
 0x329   : > { %3284 = shalt.err (!%p3281_p7)
}
 0x32a   : > { %s3285_s26 = scalar_lea.hbm %s4051_s3, 4096  ;;  %s3289_s20 = scalar_lea.hbm %s4108_s7, 8192 }
 0x32b   : > { %p3286_p11 = scmp.ne.s32.totalorder %s4051_s3, %s3285_s26  ;;  %p3290_p2 = scmp.lt.s32.totalorder %s4051_s3, %s4108_s7 }
 0x32c   : > { %p3291_p4 = scmp.lt.s32.totalorder %s3289_s20, %s3285_s26 }
 0x32d   : > { %p3287_p10 = pnand %p3286_p11, %p4139_p8 }
 0x32e   : > { %p3292_p12 = por %p3291_p4, %p3290_p2 }
 0x32f   : > { %p3288_p1 = pneg %p3287_p10 }
 0x331   : > { %p3293_p6 = pnand %p3292_p12, %p3288_p1 }
 0x333   : > { %3296 = shalt.err (!%p3293_p6)
}
 0x334   : > { %s3367_s15 = smov 256   ;;  %s3368_s21 = smov 16  }
 0x335   : > { %2780 = dma.vmem_to_hbm [thread:$0]  (%p4139_p8), %s4053_s28, 4096, %s4051_s3, %s2189_s13, %s3367_s15, %s3367_s15, %s3368_s21  }
 0x336 PF: > { %s2261_s29 = sand.u32 1, %s3335_s30   ;;  %p4140_p3 = scmp.ne.s32.totalorder %s4122_s16, 0 }
 0x337   : > { %p4141_p9 = scmp.ge.s32.totalorder %s3347_s12, 2  ;;  %s2262_s18 = scalar_lea.sflag [#allocation4], %s2261_s29 }
 0x339   : > { %p2804_p13 = pnand %p4141_p9, %p4140_p3 }
 0x33b   : > { %p2805_p5 = pneg %p2804_p13 }
 0x33d   : > { %3326 = dma.done.wait (%p2805_p5), %s2262_s18, 4096  }
 0x33e   : > { %3328 = vsyncadd (%p2805_p5), %s2262_s18, 4294963200  ;;  %s4142_s25 = sadd.s32 4294967294, %s3347_s12  }
 0x33f   : > { %s2270_s23 = sand.u32 1, %s4142_s25  }
 0x340   : > { %s2271_s26 = scalar_lea.sflag [#allocation13], %s2270_s23 }
 0x341   : > { %3330 = dma.done.wait (%p2805_p5), %s2271_s26, 3072  }
 0x342   : > { %3332 = vsyncadd (%p2805_p5), %s2271_s26, 4294964224  ;;  %p28_p8 = scmp.ge.s32.totalorder %s3512_s27, 4   ;;  %s4143_s30 = smov %s3339_s10 }
 0x343   : > { %s4144_s10 = smov %s3343_s11  ;;  %s4145_s11 = smov %s3521_s19 }
 0x344   : > { %s4146_s12 = smov %s3512_s27  ;;  %30 = sbr.rel (!%p28_p8) target bundleno = 13 (0xd), region = 141 }
 0x349   :  { %2285 = vsyncpa [#allocation3], 1 }
 0x34a   :  { %2287 = vsyncpa [#allocation3 + $0x1], 1 }
 0x34b   :  { %2288 = vsyncpa [#allocation6], 1 }
 0x34c   :  { %2289 = vsyncpa [#allocation9], 1 }
 0x34d   :  { %2290 = vsyncpa [#allocation4], 1 }
 0x34e   :  { %2292 = vsyncpa [#allocation4 + $0x1], 1 }
 0x34f   :  { %2293 = vsyncpa [#allocation13], 1 }
 0x350   :  { %2295 = vsyncpa [#allocation13 + $0x1], 1 }

</bundles_post_ra>
